<compile_context>
chip_gen: v7x
topology: tpu7x:2x2x1
jax: 0.10.0
libtpu: 0.0.40
codegen_flags: <defaults>
</compile_context>

<pallas_src>
from functools import partial

import jax
import jax.numpy as jnp
import numpy as np
from jax import lax
from jax.experimental import pallas as pl
from jax.experimental.pallas import tpu as pltpu


# Target M = BB*U rows per grid step.  128 fills a v5e MXU row tile and keeps the
# f32 intermediates comfortably inside the vreg file; 256 is the v6e/v7x target if
# the bundle dump shows no spills.
TARGET_ROWS = 128


def _softmax(a):
    # f32 softmax; the reciprocal goes to the EUP (approx) instead of a VPU divide.
    m = jnp.max(a, axis=-1, keepdims=True)
    e = jnp.exp(a - m)
    return e * pl.reciprocal(jnp.sum(e, axis=-1, keepdims=True), approx=True)


def make_deltanet_kernel(H, D, E, U, BB, P):
    """One grid step = BB batch elements, all H heads, M = BB*U matmul rows."""
    M = BB * U

    def kernel(x_ref, wp_ref, w_ref, y_ref, wnew_ref):
        # x_ref:    (H, M, D)    f32   head-major input rows for this batch block
        # wp_ref:   (H, D, P)    bf16  fused [k | v1 | q | lr | 0-pad] projection
        # w_ref:    (H, D, E)    f32   old fast weights (VMEM-resident, const index)
        # y_ref:    (M, H*E)     f32   output rows, final packed layout
        # wnew_ref: (BB, D, H*E) f32   new fast weights, head-packed on lanes
        x = x_ref[...]                                        # (H, M, D) f32
        xs = _softmax(x).astype(jnp.bfloat16)                 # per-head softmax

        # One projection matmul per head: softmax(x) @ [k|v1|q|lr|pad] -> lane-dense
        # 128-wide MXU output; k/v1/q/lr are static 32-lane slices of the f32 result.
        proj = jnp.einsum('hmd,hdp->hmp', xs, wp_ref[...],
                          preferred_element_type=jnp.float32)          # (H, M, P)
        k = _softmax(proj[..., 0:D])                                   # (H, M, D)
        v1 = proj[..., D:D + E]                                        # (H, M, E)
        q = _softmax(proj[..., D + E:2 * D + E])                       # (H, M, D)
        lr = proj[..., 2 * D + E:2 * D + E + 1]                        # (H, M, 1)

        Wf = w_ref[...]                                       # (H, D, E) f32 (old W)
        Wb = Wf.astype(jnp.bfloat16)
        kb = k.astype(jnp.bfloat16)
        qb = q.astype(jnp.bfloat16)

        # Fused v2 + readout: row-stack k and q (free sublane concat) -> one MXU pass
        # against the OLD fast weights (matches the PyTorch ordering: y uses old W).
        kq = jnp.concatenate([kb, qb], axis=1)                          # (H, 2M, D)
        kqW = jnp.einsum('hmd,hde->hme', kq, Wb,
                         preferred_element_type=jnp.float32)            # (H, 2M, E)
        v2 = kqW[:, 0:M, :]                                             # (H, M, E)
        yh = kqW[:, M:2 * M, :]                                         # (H, M, E)

        # Delta-rule update, independently per (head, batch element): contract the U
        # update-step axis (transposed-LHS dot_general; no explicit k.T materialized).
        # TODO(synk): for long recurrent rollouts consider keeping this path in f32
        # (bf16 operands here add ~1e-2 relative error that compounds step to step).
        dv = (v1 - v2).astype(jnp.bfloat16).reshape(H * BB, U, E)
        k_g = kb.reshape(H * BB, U, D)
        ktv = lax.dot_general(k_g, dv, (((1,), (1,)), ((0,), (0,))),
                              preferred_element_type=jnp.float32)       # (H*BB, D, E)

        # PyTorch computes (sigmoid(lr) * k.T) @ (v1 - v2); because U == D (asserted
        # in the wrapper) that broadcast is exactly a per-row gate on k^T @ (v1 - v2)
        # (lr is indexed by the fast-weight row == update step).  Exact sigmoid here:
        # it feeds the recurrent state, so no approximate reciprocal on this path.
        gate = 1.0 / (1.0 + jnp.exp(-lr))                               # (H, M, 1)
        wnew = (Wf[:, None, :, :]
                + gate.reshape(H, BB, U, 1) * ktv.reshape(H, BB, D, E))  # (H, BB, D, E)

        # Lane-dense stores: y lands directly in the final (M, H*E) slab; wnew is
        # packed head-major on lanes as (BB, D, H*E) and unpacked in the wrapper.
        y_ref[...] = jnp.concatenate([yh[h] for h in range(H)], axis=-1)
        wnew_ref[...] = jnp.concatenate([wnew[h] for h in range(H)], axis=-1)

    return kernel


def _choose_block_batch(B, U, target_rows=TARGET_ROWS):
    """Largest BB with BB*U <= target_rows and BB | B, preferring >= 2 grid steps
    so both v7x TensorCores get work."""
    max_bb = max(1, target_rows // max(U, 1))
    divs = [d for d in range(1, B + 1) if B % d == 0 and d <= max_bb]
    multi = [d for d in divs if B // d >= 2]
    return max(multi) if multi else max(divs)


@partial(jax.jit, static_argnames=("heads",))
def deltanet_forward(x, slow, W_fast, *, heads):
    """x: (B, U, ins); slow: (H, D, S); W_fast: (H, D, E).
    Returns (y: (B, U, outs), W_new: (B, H, D, E))."""
    B, U, ins = x.shape
    H = heads
    D = ins // H
    S = slow.shape[-1]
    E = W_fast.shape[-1]
    assert S == 2 * D + E + 1
    # The PyTorch `sigmoid(lr) * k.T` broadcast is only defined for U == D (or U == 1).
    assert U == D or U == 1, "update_count must equal ins//heads (or 1)"

    BB = _choose_block_batch(B, U)
    M = BB * U
    G = B // BB
    P = pl.cdiv(S, 128) * 128                       # lane-dense projection width

    # One-time parameter prep: `slow` already stores [k | v1 | q | lr] contiguously,
    # so the fused projection weight is just a zero-pad to P lanes + bf16 cast.
    if P > S:
        slow_p = jnp.concatenate([slow, jnp.zeros((H, D, P - S), slow.dtype)], axis=-1)
    else:
        slow_p = slow
    wp = slow_p.astype(jnp.bfloat16)                                   # (H, D, P)

    # One-time input prep: head-major rows so per-head softmax / batched matmuls need
    # no in-kernel lane slicing.  (Tiny XLA transpose: B*U*ins*4 bytes.)
    x_hm = jnp.transpose(x.reshape(B, U, H, D), (2, 0, 1, 3)).reshape(H, B * U, D)

    kernel = make_deltanet_kernel(H, D, E, U, BB, P)
    const3 = lambda i: (0, 0, 0)   # weights: same block every step -> VMEM-resident

    flops = B * H * U * D * (2 * P + 6 * E)                 # proj + k|q@W + ktv
    transcendentals = B * H * U * (3 * D + 1)               # softmax exps + sigmoid
    bytes_accessed = (4 * (x.size + B * U * H * E + B * H * D * E + H * D * E)
                      + 2 * H * D * P)

    y_flat, w_packed = pl.pallas_call(
        kernel,
        out_shape=(
            jax.ShapeDtypeStruct((B * U, H * E), jnp.float32),
            jax.ShapeDtypeStruct((B, D, H * E), jnp.float32),
        ),
        grid=(G,),
        in_specs=[
            pl.BlockSpec((H, M, D), lambda i: (0, i, 0)),       # x rows, this block
            pl.BlockSpec((H, D, P), const3),                    # fused projection W
            pl.BlockSpec((H, D, E), const3),                    # old fast W
        ],
        out_specs=(
            pl.BlockSpec((M, H * E), lambda i: (i, 0)),         # y, final layout
            pl.BlockSpec((BB, D, H * E), lambda i: (i, 0, 0)),  # new fast W (packed)
        ),
        compiler_params=pltpu.CompilerParams(
            dimension_semantics=("parallel",)),                 # megacore on v7x
        cost_estimate=pl.CostEstimate(
            flops=flops, transcendentals=transcendentals,
            bytes_accessed=bytes_accessed),
    )(x_hm, wp, W_fast)

    y = y_flat.reshape(B, U, H * E)
    w_new = jnp.transpose(w_packed.reshape(B, D, H, E), (0, 2, 1, 3))  # (B, H, D, E)
    return y, w_new


def deltanet_reference(x, slow, W_fast, heads):
    """Pure-JAX (f32) transcription of the PyTorch forward, for verification."""
    B, U, ins = x.shape
    H = heads
    D = ins // H
    E = W_fast.shape[-1]
    sm = lambda a: jax.nn.softmax(a, axis=-1)
    xh = jnp.swapaxes(x.reshape(B, U, H, D), -2, -3)          # (B,H,U,D)
    full = sm(xh) @ slow                                      # (B,H,U,S)
    k = sm(full[..., 0:D])
    v1 = full[..., D:D + E]
    q = sm(full[..., D + E:2 * D + E])
    lr = full[..., 2 * D + E:2 * D + E + 1]
    v2 = k @ W_fast
    w_new = W_fast + (jax.nn.sigmoid(lr) * jnp.swapaxes(k, -1, -2)) @ (v1 - v2)
    y = q @ W_fast                                            # old W, like PyTorch
    y = jnp.swapaxes(y, -2, -3).reshape(B, U, H * E)
    return y, w_new


if __name__ == "__main__":
    # DeltaNet(ins=64, outs=64, heads=2), batched input (batch=8, update_count=32).
    # B=8 exercises batch blocking (BB=4 -> M=128 rows) with 2 parallel grid steps.
    # update_count == ins//heads so the module's lr*k.T broadcast is well-defined.
    B, heads, ins, outs = 8, 2, 64, 64
    D, E = ins // heads, outs // heads
    U = D
    S = 2 * D + E + 1  # = sum(split_sz) = ins//h + outs//h + ins//h + 1

    key = jax.random.PRNGKey(0)
    k1, k2, k3 = jax.random.split(key, 3)
    x = jax.random.normal(k1, (B, U, ins), dtype=jnp.float32)
    # slow = nn.Parameter(randn(h, ins//h, sum(split_sz)))
    slow = jax.random.normal(k2, (heads, D, S), dtype=jnp.float32)
    # fast = State((h, ins//h, outs//h)) -> randn * (ins//h)**-0.5
    W_fast = jax.random.normal(k3, (heads, D, E), dtype=jnp.float32) * (D ** -0.5)

    y, w_new = deltanet_forward(x, slow, W_fast, heads=heads)
    jax.block_until_ready((y, w_new))

    y_ref, w_ref = deltanet_reference(x, slow, W_fast, heads)
    # bf16 MXU operands + approx (EUP) softmax reciprocals => bf16-level tolerance.
    assert np.allclose(np.asarray(y), np.asarray(y_ref), atol=2e-2, rtol=2e-2), "y mismatch"
    assert np.allclose(np.asarray(w_new), np.asarray(w_ref), atol=2e-2, rtol=2e-2), "W mismatch"
    print("KERNEL_OK")
</pallas_src>

<mosaic_0001>
module attributes {stable_mosaic.version = 11 : i64} {
  func.func @kernel(%arg0: i32, %arg1: memref<2x128x32xf32, #tpu.memory_space<vmem>>, %arg2: memref<2x32x128xbf16, #tpu.memory_space<vmem>>, %arg3: memref<2x32x32xf32, #tpu.memory_space<vmem>>, %arg4: memref<128x64xf32, #tpu.memory_space<vmem>>, %arg5: memref<4x32x64xf32, #tpu.memory_space<vmem>>) attributes {dimension_semantics = [#tpu.dimension_semantics<parallel>], iteration_bounds = array<i64: 2>, scalar_prefetch = 0 : i64, scratch_operands = 0 : i64, tpu.core_type = #tpu.core_type<tc>, window_params = [{transform_indices = @transform_0, window_bounds = array<i64: 2, 128, 32>}, {pipeline_mode = #tpu.pipeline_mode<synchronous>, transform_indices = @transform_1, window_bounds = array<i64: 2, 32, 128>}, {pipeline_mode = #tpu.pipeline_mode<synchronous>, transform_indices = @transform_2, window_bounds = array<i64: 2, 32, 32>}, {transform_indices = @transform_3, window_bounds = array<i64: 128, 64>}, {transform_indices = @transform_4, window_bounds = array<i64: 4, 32, 64>}]} {
    %c0 = arith.constant 0 : index
    %c0_0 = arith.constant 0 : index
    %c0_1 = arith.constant 0 : index
    %0 = vector.load %arg1[%c0, %c0_0, %c0_1] : memref<2x128x32xf32, #tpu.memory_space<vmem>>, vector<2x128x32xf32>
    %cst = arith.constant dense<0xFF800000> : vector<2x128xf32>
    %1 = vector.multi_reduction <maximumf>, %0, %cst [2] : vector<2x128x32xf32> to vector<2x128xf32>
    %2 = vector.shape_cast %1 : vector<2x128xf32> to vector<2x128x1xf32>
    %3 = vector.broadcast %2 : vector<2x128x1xf32> to vector<2x128x32xf32>
    %4 = arith.subf %0, %3 : vector<2x128x32xf32>
    %5 = math.exp %4 : vector<2x128x32xf32>
    %cst_2 = arith.constant dense<0.000000e+00> : vector<2x128xf32>
    %6 = vector.multi_reduction <add>, %5, %cst_2 [2] : vector<2x128x32xf32> to vector<2x128xf32>
    %7 = vector.shape_cast %6 : vector<2x128xf32> to vector<2x128x1xf32>
    %8 = tpu.reciprocal %7 {approx = true} : vector<2x128x1xf32> -> vector<2x128x1xf32>
    %9 = vector.broadcast %8 : vector<2x128x1xf32> to vector<2x128x32xf32>
    %10 = arith.mulf %5, %9 : vector<2x128x32xf32>
    %11 = arith.truncf %10 : vector<2x128x32xf32> to vector<2x128x32xbf16>
    %c0_3 = arith.constant 0 : index
    %c0_4 = arith.constant 0 : index
    %c0_5 = arith.constant 0 : index
    %12 = vector.load %arg2[%c0_3, %c0_4, %c0_5] : memref<2x32x128xbf16, #tpu.memory_space<vmem>>, vector<2x32x128xbf16>
    "tpu.trace_start"() <{level = 10 : i32, message = "hmd,hdp->hmp"}> : () -> ()
    %cst_6 = arith.constant dense<0.000000e+00> : vector<2x128x128xf32>
    %13 = tpu.matmul %11, %12, %cst_6 {dimension_numbers = #tpu.dot_dimension_numbers<[2], [1], [1], [2], [0, 0, 0, 1, 1, 2], [0], [0]>} : vector<2x128x32xbf16>, vector<2x32x128xbf16>, vector<2x128x128xf32> -> vector<2x128x128xf32>
    "tpu.trace_stop"() : () -> ()
    %14 = vector.extract_strided_slice %13 {offsets = [0, 0, 0], sizes = [2, 128, 32], strides = [1, 1, 1]} : vector<2x128x128xf32> to vector<2x128x32xf32>
    %cst_7 = arith.constant dense<0xFF800000> : vector<2x128xf32>
    %15 = vector.multi_reduction <maximumf>, %14, %cst_7 [2] : vector<2x128x32xf32> to vector<2x128xf32>
    %16 = vector.shape_cast %15 : vector<2x128xf32> to vector<2x128x1xf32>
    %17 = vector.broadcast %16 : vector<2x128x1xf32> to vector<2x128x32xf32>
    %18 = arith.subf %14, %17 : vector<2x128x32xf32>
    %19 = math.exp %18 : vector<2x128x32xf32>
    %cst_8 = arith.constant dense<0.000000e+00> : vector<2x128xf32>
    %20 = vector.multi_reduction <add>, %19, %cst_8 [2] : vector<2x128x32xf32> to vector<2x128xf32>
    %21 = vector.shape_cast %20 : vector<2x128xf32> to vector<2x128x1xf32>
    %22 = tpu.reciprocal %21 {approx = true} : vector<2x128x1xf32> -> vector<2x128x1xf32>
    %23 = vector.broadcast %22 : vector<2x128x1xf32> to vector<2x128x32xf32>
    %24 = arith.mulf %19, %23 : vector<2x128x32xf32>
    %25 = vector.extract_strided_slice %13 {offsets = [0, 0, 32], sizes = [2, 128, 32], strides = [1, 1, 1]} : vector<2x128x128xf32> to vector<2x128x32xf32>
    %26 = vector.extract_strided_slice %13 {offsets = [0, 0, 64], sizes = [2, 128, 32], strides = [1, 1, 1]} : vector<2x128x128xf32> to vector<2x128x32xf32>
    %cst_9 = arith.constant dense<0xFF800000> : vector<2x128xf32>
    %27 = vector.multi_reduction <maximumf>, %26, %cst_9 [2] : vector<2x128x32xf32> to vector<2x128xf32>
    %28 = vector.shape_cast %27 : vector<2x128xf32> to vector<2x128x1xf32>
    %29 = vector.broadcast %28 : vector<2x128x1xf32> to vector<2x128x32xf32>
    %30 = arith.subf %26, %29 : vector<2x128x32xf32>
    %31 = math.exp %30 : vector<2x128x32xf32>
    %cst_10 = arith.constant dense<0.000000e+00> : vector<2x128xf32>
    %32 = vector.multi_reduction <add>, %31, %cst_10 [2] : vector<2x128x32xf32> to vector<2x128xf32>
    %33 = vector.shape_cast %32 : vector<2x128xf32> to vector<2x128x1xf32>
    %34 = tpu.reciprocal %33 {approx = true} : vector<2x128x1xf32> -> vector<2x128x1xf32>
    %35 = vector.broadcast %34 : vector<2x128x1xf32> to vector<2x128x32xf32>
    %36 = arith.mulf %31, %35 : vector<2x128x32xf32>
    %37 = vector.extract_strided_slice %13 {offsets = [0, 0, 96], sizes = [2, 128, 1], strides = [1, 1, 1]} : vector<2x128x128xf32> to vector<2x128x1xf32>
    %c0_11 = arith.constant 0 : index
    %c0_12 = arith.constant 0 : index
    %c0_13 = arith.constant 0 : index
    %38 = vector.load %arg3[%c0_11, %c0_12, %c0_13] : memref<2x32x32xf32, #tpu.memory_space<vmem>>, vector<2x32x32xf32>
    %39 = arith.truncf %38 : vector<2x32x32xf32> to vector<2x32x32xbf16>
    %40 = arith.truncf %24 : vector<2x128x32xf32> to vector<2x128x32xbf16>
    %41 = arith.truncf %36 : vector<2x128x32xf32> to vector<2x128x32xbf16>
    %42 = tpu.concatenate %40, %41 in 1 : vector<2x128x32xbf16>, vector<2x128x32xbf16> -> vector<2x256x32xbf16>
    "tpu.trace_start"() <{level = 10 : i32, message = "hmd,hde->hme"}> : () -> ()
    %cst_14 = arith.constant dense<0.000000e+00> : vector<2x256x32xf32>
    %43 = tpu.matmul %42, %39, %cst_14 {dimension_numbers = #tpu.dot_dimension_numbers<[2], [1], [1], [2], [0, 0, 0, 1, 1, 2], [0], [0]>} : vector<2x256x32xbf16>, vector<2x32x32xbf16>, vector<2x256x32xf32> -> vector<2x256x32xf32>
    "tpu.trace_stop"() : () -> ()
    %44 = vector.extract_strided_slice %43 {offsets = [0, 0, 0], sizes = [2, 128, 32], strides = [1, 1, 1]} : vector<2x256x32xf32> to vector<2x128x32xf32>
    %45 = vector.extract_strided_slice %43 {offsets = [0, 128, 0], sizes = [2, 128, 32], strides = [1, 1, 1]} : vector<2x256x32xf32> to vector<2x128x32xf32>
    %46 = arith.subf %25, %44 : vector<2x128x32xf32>
    %47 = arith.truncf %46 : vector<2x128x32xf32> to vector<2x128x32xbf16>
    %48 = vector.shape_cast %47 : vector<2x128x32xbf16> to vector<8x32x32xbf16>
    %49 = vector.shape_cast %40 : vector<2x128x32xbf16> to vector<8x32x32xbf16>
    %cst_15 = arith.constant dense<0.000000e+00> : vector<8x32x32xf32>
    %50 = tpu.matmul %49, %48, %cst_15 {dimension_numbers = #tpu.dot_dimension_numbers<[1], [1], [2], [2], [0, 0, 0, 2, 1, 2], [0], [0]>} : vector<8x32x32xbf16>, vector<8x32x32xbf16>, vector<8x32x32xf32> -> vector<8x32x32xf32>
    %cst_16 = arith.constant 0.000000e+00 : f32
    %51 = vector.broadcast %cst_16 : f32 to vector<2x128x1xf32>
    %52 = arith.subf %51, %37 : vector<2x128x1xf32>
    %53 = math.exp %52 : vector<2x128x1xf32>
    %cst_17 = arith.constant 1.000000e+00 : f32
    %54 = vector.broadcast %cst_17 : f32 to vector<2x128x1xf32>
    %55 = arith.addf %54, %53 : vector<2x128x1xf32>
    %cst_18 = arith.constant 1.000000e+00 : f32
    %56 = vector.broadcast %cst_18 : f32 to vector<2x128x1xf32>
    %57 = arith.divf %56, %55 : vector<2x128x1xf32>
    %58 = vector.shape_cast %38 : vector<2x32x32xf32> to vector<2x1x32x32xf32>
    %59 = vector.shape_cast %57 : vector<2x128x1xf32> to vector<2x4x32x1xf32>
    %60 = vector.shape_cast %50 : vector<8x32x32xf32> to vector<2x4x32x32xf32>
    %61 = vector.broadcast %59 : vector<2x4x32x1xf32> to vector<2x4x32x32xf32>
    %62 = arith.mulf %61, %60 : vector<2x4x32x32xf32>
    %63 = vector.broadcast %58 : vector<2x1x32x32xf32> to vector<2x4x32x32xf32>
    %64 = arith.addf %63, %62 : vector<2x4x32x32xf32>
    %65 = vector.extract_strided_slice %45 {offsets = [0, 0, 0], sizes = [1, 128, 32], strides = [1, 1, 1]} : vector<2x128x32xf32> to vector<1x128x32xf32>
    %66 = vector.shape_cast %65 : vector<1x128x32xf32> to vector<128x32xf32>
    %67 = vector.extract_strided_slice %45 {offsets = [1, 0, 0], sizes = [1, 128, 32], strides = [1, 1, 1]} : vector<2x128x32xf32> to vector<1x128x32xf32>
    %68 = vector.shape_cast %67 : vector<1x128x32xf32> to vector<128x32xf32>
    %69 = tpu.concatenate %66, %68 in 1 : vector<128x32xf32>, vector<128x32xf32> -> vector<128x64xf32>
    %c0_19 = arith.constant 0 : index
    %c0_20 = arith.constant 0 : index
    %70 = vector.load %arg4[%c0_19, %c0_20] : memref<128x64xf32, #tpu.memory_space<vmem>>, vector<128x64xf32>
    tpu.vector_store %arg4[%c0_19, %c0_20], %69 {strides = array<i32>} : memref<128x64xf32, #tpu.memory_space<vmem>>, vector<128x64xf32>,
    %71 = vector.extract_strided_slice %64 {offsets = [0, 0, 0, 0], sizes = [1, 4, 32, 32], strides = [1, 1, 1, 1]} : vector<2x4x32x32xf32> to vector<1x4x32x32xf32>
    %72 = vector.shape_cast %71 : vector<1x4x32x32xf32> to vector<4x32x32xf32>
    %73 = vector.extract_strided_slice %64 {offsets = [1, 0, 0, 0], sizes = [1, 4, 32, 32], strides = [1, 1, 1, 1]} : vector<2x4x32x32xf32> to vector<1x4x32x32xf32>
    %74 = vector.shape_cast %73 : vector<1x4x32x32xf32> to vector<4x32x32xf32>
    %75 = tpu.concatenate %72, %74 in 2 : vector<4x32x32xf32>, vector<4x32x32xf32> -> vector<4x32x64xf32>
    %c0_21 = arith.constant 0 : index
    %c0_22 = arith.constant 0 : index
    %c0_23 = arith.constant 0 : index
    %76 = vector.load %arg5[%c0_21, %c0_22, %c0_23] : memref<4x32x64xf32, #tpu.memory_space<vmem>>, vector<4x32x64xf32>
    tpu.vector_store %arg5[%c0_21, %c0_22, %c0_23], %75 {strides = array<i32>} : memref<4x32x64xf32, #tpu.memory_space<vmem>>, vector<4x32x64xf32>,
    return
  }
  func.func @transform_0(%arg0: i32) -> (i32, i32, i32) {
    %c0_i32 = arith.constant 0 : i32
    %c0_i32_0 = arith.constant 0 : i32
    %c0_i32_1 = arith.constant 0 : i32
    return %c0_i32, %arg0, %c0_i32_0 : i32, i32, i32
  }
  func.func @transform_1(%arg0: i32) -> (i32, i32, i32) {
    %c0_i32 = arith.constant 0 : i32
    %c0_i32_0 = arith.constant 0 : i32
    %c0_i32_1 = arith.constant 0 : i32
    %c0_i32_2 = arith.constant 0 : i32
    return %c0_i32, %c0_i32_0, %c0_i32_1 : i32, i32, i32
  }
  func.func @transform_2(%arg0: i32) -> (i32, i32, i32) {
    %c0_i32 = arith.constant 0 : i32
    %c0_i32_0 = arith.constant 0 : i32
    %c0_i32_1 = arith.constant 0 : i32
    %c0_i32_2 = arith.constant 0 : i32
    return %c0_i32, %c0_i32_0, %c0_i32_1 : i32, i32, i32
  }
  func.func @transform_3(%arg0: i32) -> (i32, i32) {
    %c0_i32 = arith.constant 0 : i32
    %c0_i32_0 = arith.constant 0 : i32
    return %arg0, %c0_i32 : i32, i32
  }
  func.func @transform_4(%arg0: i32) -> (i32, i32, i32) {
    %c0_i32 = arith.constant 0 : i32
    %c0_i32_0 = arith.constant 0 : i32
    %c0_i32_1 = arith.constant 0 : i32
    return %arg0, %c0_i32, %c0_i32_0 : i32, i32, i32
  }
}

</mosaic_0001>

<bundles_post_ra>
// kernel: deltanet_forward.1
= control target key start
LH: loop header
LB: loop body
LE: loop exit
PB: predicated region body
PF: predicated region fallthrough
CT: control target
= control target key end

     0   :  { %10 = vsyncpa [#allocation4], 0  ;;  %s7138_s0 = inlined_call_operand.vmem [shape: f32[2,256,32], index: 0, kind: input, shape index: {}]   ;;  %s7139_s1 = inlined_call_operand.vmem [shape: bf16[2,32,128], index: 1, kind: input, shape index: {}]   ;;  %s7140_s2 = inlined_call_operand.vmem [shape: f32[2,32,32], index: 2, kind: input, shape index: {}]   ;;  %s7141_s3 = inlined_call_operand.hbm [shape: f32[256,64], index: 3, kind: output, shape index: {0}]   ;;  %s7142_s4 = inlined_call_operand.vmem [shape: f32[8,32,64], index: 4, kind: output, shape index: {1}]  }
   0x1   :  { %12 = vsyncpa [#allocation4 + $0x1], 0  ;;  %s4947_s15 = smov 0   ;;  %s4949_s16 = smov 0  }
   0x2   :  { %s4951_s17 = smov 0   ;;  %s4953_s18 = smov 0  }
   0x3 LB: > { %s4968_s19 = sadd.s32 4294967295, %s4913_s18   ;;  %s3927_s20 = sadd.s32 4294967294, %s4913_s18   ;;  %s4913_s18 = sphi %s4953_s18, %s7423_s18   ;;  %s4909_s17 = sphi %s4951_s17, %s7422_s17   ;;  %s4905_s16 = sphi %s4949_s16, %s7421_s16   ;;  %s4901_s15 = sphi %s4947_s15, %s7420_s15  }
   0x4   : > { %s4972_s21 = sadd.s32 1, %s4913_s18   ;;  %s25_s22 = sadd.s32 1, %s4909_s17 }
   0x5   : > { %s22_s23 = ssub.s32 %s4913_s18, %s4972_s21  ;;  %p32_p0 = scmp.ne.s32.totalorder %s4909_s17, %s4905_s16 }
   0x6   : > { %p23_p1 = scmp.eq.s32.totalorder %s22_s23, 0  ;;  %p33_p2 = scmp.eq.s32.totalorder %s4913_s18, 0 }
   0x7   : > { %p104_p3 = scmp.eq.s32.totalorder %s4968_s19, 1  ;;  %p109_p4 = scmp.ne.s32.totalorder %s4905_s16, %s4901_s15 }
   0x8   : > { %s4984_s24 = scalar_select %p23_p1, %s4909_s17, %s25_s22  }
   0x9   : > { %p34_p5 = por %p33_p2, %p32_p0  ;;  %p4986_p6 = por %p104_p3, %p32_p0 }
   0xa   : > { %p110_p7 = scmp.eq.s32.totalorder %s3927_s20, 1  ;;  %p3929_p9 = scmp.ge.s32.totalorder %s4913_s18, 2 }
   0xc   : > { %p4990_p8 = por %p110_p7, %p109_p4  ;;  %158 = sbr.rel (%p3929_p9) target bundleno = 39 (0x27), region = 24 }
  0x13   : > { %161 = sbr.rel (!%p34_p5) target bundleno = 39 (0x27), region = 28  ;;  %s163_s27 = sand.u32 (%p34_p5), 1, %s4909_s17  }
  0x14   : > { %s4012_s28 = sshll.u32 (%p34_p5), %s4913_s18, 7  ;;  %s3930_s29 = sshll.u32 (%p34_p5), %s163_s27, 8 }
  0x15   : > { %s5002_s6 = scalar_lea.vmem (%p34_p5), %s7138_s0, %s4012_s28  ;;  %s5007_s7 = scalar_lea.vmem (%p34_p5), [#allocation2], %s3930_s29 }
  0x16   : > { %v258_v0 = vld [vmem:[%s5002_s6] sm:$0xff] (%p34_p5)  ;;  %v260_v1 = vld [vmem:[%s5002_s6 + $0x8] sm:$0xff] (%p34_p5)  ;;  %v262_v2 = vld [vmem:[%s5002_s6 + $0x10] sm:$0xff] (%p34_p5) }
  0x17   : > { %259 = vst [vmem:[%s5007_s7] sm:$0xff] (%p34_p5), %v258_v0  ;;  %261 = vst [vmem:[%s5007_s7 + $0x8] sm:$0xff] (%p34_p5), %v260_v1  ;;  %v264_v3 = vld [vmem:[%s5002_s6 + $0x18] sm:$0xff] (%p34_p5)  ;;  %v266_v4 = vld [vmem:[%s5002_s6 + $0x20] sm:$0xff] (%p34_p5) }
  0x18   : > { %263 = vst [vmem:[%s5007_s7 + $0x10] sm:$0xff] (%p34_p5), %v262_v2  ;;  %v268_v5 = vld [vmem:[%s5002_s6 + $0x28] sm:$0xff] (%p34_p5)  ;;  %265 = vst [vmem:[%s5007_s7 + $0x18] sm:$0xff] (%p34_p5), %v264_v3  ;;  %v270_v6 = vld [vmem:[%s5002_s6 + $0x30] sm:$0xff] (%p34_p5) }
  0x19   : > { %267 = vst [vmem:[%s5007_s7 + $0x20] sm:$0xff] (%p34_p5), %v266_v4  ;;  %269 = vst [vmem:[%s5007_s7 + $0x28] sm:$0xff] (%p34_p5), %v268_v5  ;;  %v272_v7 = vld [vmem:[%s5002_s6 + $0x38] sm:$0xff] (%p34_p5)  ;;  %v274_v8 = vld [vmem:[%s5002_s6 + $0x40] sm:$0xff] (%p34_p5) }
  0x1a   : > { %271 = vst [vmem:[%s5007_s7 + $0x30] sm:$0xff] %v270_v6  ;;  %273 = vst [vmem:[%s5007_s7 + $0x38] sm:$0xff] %v272_v7  ;;  %v276_v9 = vld [vmem:[%s5002_s6 + $0x48] sm:$0xff]  ;;  %v278_v10 = vld [vmem:[%s5002_s6 + $0x50] sm:$0xff] }
  0x1b   : > { %275 = vst [vmem:[%s5007_s7 + $0x40] sm:$0xff] %v274_v8  ;;  %v280_v11 = vld [vmem:[%s5002_s6 + $0x58] sm:$0xff]  ;;  %277 = vst [vmem:[%s5007_s7 + $0x48] sm:$0xff] %v276_v9  ;;  %v282_v12 = vld [vmem:[%s5002_s6 + $0x60] sm:$0xff] }
  0x1c   : > { %279 = vst [vmem:[%s5007_s7 + $0x50] sm:$0xff] %v278_v10  ;;  %281 = vst [vmem:[%s5007_s7 + $0x58] sm:$0xff] %v280_v11  ;;  %v284_v13 = vld [vmem:[%s5002_s6 + $0x68] sm:$0xff]  ;;  %v286_v14 = vld [vmem:[%s5002_s6 + $0x70] sm:$0xff] }
  0x1d   : > { %283 = vst [vmem:[%s5007_s7 + $0x60] sm:$0xff] %v282_v12  ;;  %285 = vst [vmem:[%s5007_s7 + $0x68] sm:$0xff] %v284_v13  ;;  %v288_v15 = vld [vmem:[%s5002_s6 + $0x78] sm:$0xff]  ;;  %v290_v16 = vld [vmem:[%s5002_s6 + $0x100] sm:$0xff] }
  0x1e   : > { %287 = vst [vmem:[%s5007_s7 + $0x70] sm:$0xff] %v286_v14  ;;  %v292_v17 = vld [vmem:[%s5002_s6 + $0x108] sm:$0xff]  ;;  %289 = vst [vmem:[%s5007_s7 + $0x78] sm:$0xff] %v288_v15  ;;  %v294_v18 = vld [vmem:[%s5002_s6 + $0x110] sm:$0xff] }
  0x1f   : > { %291 = vst [vmem:[%s5007_s7 + $0x80] sm:$0xff] %v290_v16  ;;  %293 = vst [vmem:[%s5007_s7 + $0x88] sm:$0xff] %v292_v17  ;;  %v296_v19 = vld [vmem:[%s5002_s6 + $0x118] sm:$0xff]  ;;  %v298_v20 = vld [vmem:[%s5002_s6 + $0x120] sm:$0xff] }
  0x20   : > { %295 = vst [vmem:[%s5007_s7 + $0x90] sm:$0xff] %v294_v18  ;;  %297 = vst [vmem:[%s5007_s7 + $0x98] sm:$0xff] %v296_v19  ;;  %v300_v21 = vld [vmem:[%s5002_s6 + $0x128] sm:$0xff]  ;;  %v302_v22 = vld [vmem:[%s5002_s6 + $0x130] sm:$0xff] }
  0x21   : > { %299 = vst [vmem:[%s5007_s7 + $0xa0] sm:$0xff] %v298_v20  ;;  %v304_v23 = vld [vmem:[%s5002_s6 + $0x138] sm:$0xff]  ;;  %301 = vst [vmem:[%s5007_s7 + $0xa8] sm:$0xff] %v300_v21  ;;  %v306_v24 = vld [vmem:[%s5002_s6 + $0x140] sm:$0xff] }
  0x22   : > { %303 = vst [vmem:[%s5007_s7 + $0xb0] sm:$0xff] %v302_v22  ;;  %305 = vst [vmem:[%s5007_s7 + $0xb8] sm:$0xff] %v304_v23  ;;  %v308_v25 = vld [vmem:[%s5002_s6 + $0x148] sm:$0xff]  ;;  %v310_v26 = vld [vmem:[%s5002_s6 + $0x150] sm:$0xff] }
  0x23   : > { %307 = vst [vmem:[%s5007_s7 + $0xc0] sm:$0xff] %v306_v24  ;;  %309 = vst [vmem:[%s5007_s7 + $0xc8] sm:$0xff] %v308_v25  ;;  %v312_v27 = vld [vmem:[%s5002_s6 + $0x158] sm:$0xff]  ;;  %v314_v28 = vld [vmem:[%s5002_s6 + $0x160] sm:$0xff] }
  0x24   : > { %311 = vst [vmem:[%s5007_s7 + $0xd0] sm:$0xff] %v310_v26  ;;  %v316_v29 = vld [vmem:[%s5002_s6 + $0x168] sm:$0xff]  ;;  %313 = vst [vmem:[%s5007_s7 + $0xd8] sm:$0xff] %v312_v27  ;;  %v318_v30 = vld [vmem:[%s5002_s6 + $0x170] sm:$0xff] }
  0x25   : > { %315 = vst [vmem:[%s5007_s7 + $0xe0] sm:$0xff] %v314_v28  ;;  %317 = vst [vmem:[%s5007_s7 + $0xe8] sm:$0xff] %v316_v29  ;;  %v320_v31 = vld [vmem:[%s5002_s6 + $0x178] sm:$0xff] }
  0x26   : > { %319 = vst [vmem:[%s5007_s7 + $0xf0] sm:$0xff] %v318_v30  ;;  %321 = vst [vmem:[%s5007_s7 + $0xf8] sm:$0xff] %v320_v31 }
  0x27 PF: > { %p3933_p10 = scmp.ge.s32.totalorder %s4913_s18, 1  ;;  %p326_p11 = scmp.lt.s32.totalorder %s4913_s18, 3 }
  0x29   : > { %p327_p12 = pnand %p3933_p10, %p326_p11 }
  0x2b   : > { %330 = sbr.rel (%p327_p12) target bundleno = 2196 (0x894), region = 66 }
  0x32   : > { %s5073_s8 = sand.u32 1, %s4905_s16   ;;  %vm406_vm0 = vcmask 261120   ;;  %vm1401_vm1 = vcmask 785920   ;;  %s4915_s28 = smov 64   ;;  %vm3696_vm2 = vcmask 523264  }
  0x33   : > { %s3934_s9 = sshll.u32 %s5073_s8, 8  ;;  %s4916_s30 = smov 32  }
  0x34   : > { %s5076_s10 = scalar_lea.vmem [#allocation2], %s3934_s9  ;;  %s3935_s5 = sshll.u32 %s5073_s8, 7 }
  0x35   : > { %v5079_v32 = vld [vmem:[%s5076_s10] sm:$0xff]  ;;  %v5082_v33 = vld [vmem:[%s5076_s10 + $0x10] sm:$0xff]  ;;  %v5085_v34 = vld [vmem:[%s5076_s10 + $0x8] sm:$0xff]  ;;  %s6819_s6 = scalar_lea.vmem [#allocation3], %s3935_s5  ;;  %s4014_s22 = sshll.u32 %s4968_s19, 11 }
  0x36   : > { %v407_v35 = vsel %vm406_vm0, %v5079_v32, -inf  ;;  %v413_v36 = vsel %vm406_vm0, %v5082_v33, -inf  ;;  %v5092_v37 = vld [vmem:[%s5076_s10 + $0x18] sm:$0xff]  ;;  %v410_v38 = vsel %vm406_vm0, %v5085_v34, -inf  ;;  %v5099_v40 = vld [vmem:[%s5076_s10 + $0x20] sm:$0xff]  ;;  %v5102_v41 = vld [vmem:[%s5076_s10 + $0x28] sm:$0xff]  ;;  %s6968_s29 = scalar_lea.hbm %s7141_s3, %s4014_s22 }
  0x37   : > { %408 = vmax.xlane.f32.xlu0 %v407_v35  ;;  %414 = vmax.xlane.f32.xlu1 %v413_v36  ;;  %v416_v39 = vsel %vm406_vm0, %v5092_v37, -inf  ;;  %v419_v42 = vsel %vm406_vm0, %v5099_v40, -inf  ;;  %v422_v43 = vsel %vm406_vm0, %v5102_v41, -inf  ;;  %v5109_v44 = vld [vmem:[%s5076_s10 + $0x30] sm:$0xff]  ;;  %v5112_v45 = vld [vmem:[%s5076_s10 + $0x38] sm:$0xff]  ;;  %v5119_v48 = vld [vmem:[%s5076_s10 + $0x40] sm:$0xff] }
  0x38   : > { %v425_v46 = vsel %vm406_vm0, %v5109_v44, -inf  ;;  %v428_v47 = vsel %vm406_vm0, %v5112_v45, -inf  ;;  %v5122_v49 = vld [vmem:[%s5076_s10 + $0x48] sm:$0xff]  ;;  %v431_v50 = vsel %vm406_vm0, %v5119_v48, -inf  ;;  %v5129_v52 = vld [vmem:[%s5076_s10 + $0x80] sm:$0xff]  ;;  %v5139_v56 = vld [vmem:[%s5076_s10 + $0x50] sm:$0xff] }
  0x39   : > { %v434_v51 = vsel %vm406_vm0, %v5122_v49, -inf  ;;  %v5132_v53 = vld [vmem:[%s5076_s10 + $0x88] sm:$0xff]  ;;  %v455_v54 = vsel %vm406_vm0, %v5129_v52, -inf  ;;  %v5142_v57 = vld [vmem:[%s5076_s10 + $0x58] sm:$0xff]  ;;  %v437_v58 = vsel %vm406_vm0, %v5139_v56, -inf  ;;  %v5149_v60 = vld [vmem:[%s5076_s10 + $0x90] sm:$0xff] }
  0x3a   : > { %v458_v55 = vsel %vm406_vm0, %v5132_v53, -inf  ;;  %v440_v59 = vsel %vm406_vm0, %v5142_v57, -inf  ;;  %v5152_v61 = vld [vmem:[%s5076_s10 + $0x98] sm:$0xff]  ;;  %v461_v62 = vsel %vm406_vm0, %v5149_v60, -inf  ;;  %v5159_v0 = vld [vmem:[%s5076_s10 + $0x60] sm:$0xff]  ;;  %v5162_v1 = vld [vmem:[%s5076_s10 + $0x68] sm:$0xff] }
  0x3b   : > { %411 = vmax.xlane.f32.xlu0 %v410_v38  ;;  %417 = vmax.xlane.f32.xlu1 %v416_v39  ;;  %v464_v63 = vsel %vm406_vm0, %v5152_v61, -inf  ;;  %v443_v2 = vsel %vm406_vm0, %v5159_v0, -inf  ;;  %v446_v3 = vsel %vm406_vm0, %v5162_v1, -inf  ;;  %v5169_v4 = vld [vmem:[%s5076_s10 + $0xa0] sm:$0xff]  ;;  %v5172_v5 = vld [vmem:[%s5076_s10 + $0xa8] sm:$0xff]  ;;  %v5179_v8 = vld [vmem:[%s5076_s10 + $0x70] sm:$0xff] }
  0x3c   : > { %v467_v6 = vsel %vm406_vm0, %v5169_v4, -inf  ;;  %v470_v7 = vsel %vm406_vm0, %v5172_v5, -inf  ;;  %v5182_v9 = vld [vmem:[%s5076_s10 + $0x78] sm:$0xff]  ;;  %v449_v10 = vsel %vm406_vm0, %v5179_v8, -inf  ;;  %v5189_v12 = vld [vmem:[%s5076_s10 + $0xb0] sm:$0xff]  ;;  %v5199_v16 = vld [vmem:[%s5076_s10 + $0xc0] sm:$0xff] }
  0x3d   : > { %v452_v11 = vsel %vm406_vm0, %v5182_v9, -inf  ;;  %v5192_v13 = vld [vmem:[%s5076_s10 + $0xb8] sm:$0xff]  ;;  %v473_v14 = vsel %vm406_vm0, %v5189_v12, -inf  ;;  %v5202_v17 = vld [vmem:[%s5076_s10 + $0xc8] sm:$0xff]  ;;  %v479_v18 = vsel %vm406_vm0, %v5199_v16, -inf  ;;  %v5209_v20 = vld [vmem:[%s5076_s10 + $0xd0] sm:$0xff] }
  0x3e   : > { %v476_v15 = vsel %vm406_vm0, %v5192_v13, -inf  ;;  %v482_v19 = vsel %vm406_vm0, %v5202_v17, -inf  ;;  %v5212_v21 = vld [vmem:[%s5076_s10 + $0xd8] sm:$0xff]  ;;  %v485_v22 = vsel %vm406_vm0, %v5209_v20, -inf  ;;  %v5219_v24 = vld [vmem:[%s5076_s10 + $0xe0] sm:$0xff]  ;;  %v5222_v25 = vld [vmem:[%s5076_s10 + $0xe8] sm:$0xff] }
  0x3f   : > { %420 = vmax.xlane.f32.xlu0 %v419_v42  ;;  %423 = vmax.xlane.f32.xlu1 %v422_v43  ;;  %v488_v23 = vsel %vm406_vm0, %v5212_v21, -inf  ;;  %v491_v26 = vsel %vm406_vm0, %v5219_v24, -inf  ;;  %v494_v27 = vsel %vm406_vm0, %v5222_v25, -inf  ;;  %v5229_v28 = vld [vmem:[%s5076_s10 + $0xf0] sm:$0xff]  ;;  %v5232_v29 = vld [vmem:[%s5076_s10 + $0xf8] sm:$0xff]  ;;  %s3810_s5 = scalar_lea.sflag [#allocation4], %s5073_s8 }
  0x40   : > { %v497_v30 = vsel %vm406_vm0, %v5229_v28, -inf  ;;  %v500_v31 = vsel %vm406_vm0, %v5232_v29, -inf }
  0x43   : > { %426 = vmax.xlane.f32.xlu0 %v425_v46  ;;  %429 = vmax.xlane.f32.xlu1 %v428_v47 }
  0x47   : > { %432 = vmax.xlane.f32.xlu0 %v431_v50  ;;  %435 = vmax.xlane.f32.xlu1 %v434_v51 }
  0x4b   : > { %456 = vmax.xlane.f32.xlu0 %v455_v54  ;;  %459 = vmax.xlane.f32.xlu1 %v458_v55 }
  0x4f   : > { %438 = vmax.xlane.f32.xlu0 %v437_v58  ;;  %441 = vmax.xlane.f32.xlu1 %v440_v59 }
  0x53   : > { %462 = vmax.xlane.f32.xlu0 %v461_v62  ;;  %465 = vmax.xlane.f32.xlu1 %v464_v63 }
  0x57   : > { %444 = vmax.xlane.f32.xlu0 %v443_v2  ;;  %447 = vmax.xlane.f32.xlu1 %v446_v3 }
  0x5b   : > { %468 = vmax.xlane.f32.xlu0 %v467_v6  ;;  %471 = vmax.xlane.f32.xlu1 %v470_v7 }
  0x5f   : > { %450 = vmax.xlane.f32.xlu0 %v449_v10  ;;  %453 = vmax.xlane.f32.xlu1 %v452_v11 }
  0x63   : > { %474 = vmax.xlane.f32.xlu0 %v473_v14  ;;  %477 = vmax.xlane.f32.xlu1 %v476_v15 }
  0x67   : > { %480 = vmax.xlane.f32.xlu0 %v479_v18  ;;  %483 = vmax.xlane.f32.xlu1 %v482_v19 }
  0x6b   : > { %486 = vmax.xlane.f32.xlu0 %v485_v22  ;;  %489 = vmax.xlane.f32.xlu1 %v488_v23 }
  0x6f   : > { %492 = vmax.xlane.f32.xlu0 %v491_v26  ;;  %495 = vmax.xlane.f32.xlu1 %v494_v27 }
  0x73   : > { %498 = vmax.xlane.f32.xlu0 %v497_v30  ;;  %501 = vmax.xlane.f32.xlu1 %v500_v31 }
  0xc4   : > { %v409_v35 = vpop.xlane.xlu0 %408  ;;  %v415_v36 = vpop.xlane.xlu1 %414 }
  0xc5   : > { %v503_v38 = vsub.f32 %v5079_v32, %v409_v35  ;;  %v505_v39 = vsub.f32 %v5082_v33, %v415_v36 }
  0xc7   : > { %v535_v42 = vmul.f32 1.442695, %v503_v38  ;;  %v539_v43 = vmul.f32 1.442695, %v505_v39 }
  0xc8   : > { %v412_v46 = vpop.xlane.xlu0 %411  ;;  %v418_v47 = vpop.xlane.xlu1 %417 }
  0xc9   : > { %4331 = vpow2.f32 %v535_v42  ;;  %v504_v50 = vsub.f32 %v5085_v34, %v412_v46  ;;  %v506_v51 = vsub.f32 %v5092_v37, %v418_v47 }
  0xca   : > { %4333 = vpow2.f32 %v539_v43 }
  0xcb   : > { %v537_v54 = vmul.f32 1.442695, %v504_v50  ;;  %v541_v55 = vmul.f32 1.442695, %v506_v51 }
  0xcc   : > { %v421_v58 = vpop.xlane.xlu0 %420  ;;  %v424_v59 = vpop.xlane.xlu1 %423 }
  0xcd   : > { %4335 = vpow2.f32 %v537_v54  ;;  %v507_v62 = vsub.f32 %v5099_v40, %v421_v58  ;;  %v508_v32 = vsub.f32 %v5102_v41, %v424_v59 }
  0xce   : > { %4337 = vpow2.f32 %v541_v55 }
  0xcf   : > { %v543_v33 = vmul.f32 1.442695, %v507_v62  ;;  %v545_v63 = vmul.f32 1.442695, %v508_v32 }
  0xd0   : > { %v427_v2 = vpop.xlane.xlu0 %426  ;;  %v430_v3 = vpop.xlane.xlu1 %429 }
  0xd1   : > { %4339 = vpow2.f32 %v543_v33  ;;  %v509_v34 = vsub.f32 %v5109_v44, %v427_v2  ;;  %v510_v37 = vsub.f32 %v5112_v45, %v430_v3 }
  0xd2   : > { %4341 = vpow2.f32 %v545_v63 }
  0xd3   : > { %v5246_v6 = vpop.eup %4331  ;;  %v547_v7 = vmul.f32 1.442695, %v509_v34  ;;  %v549_v10 = vmul.f32 1.442695, %v510_v37 }
  0xd4   : > { %v5248_v11 = vpop.eup %4333  ;;  %v433_v40 = vpop.xlane.xlu0 %432  ;;  %v599_v41 = vsel %vm406_vm0, %v5246_v6, 0.0 }
  0xd5   : > { %v436_v14 = vpop.xlane.xlu1 %435  ;;  %4343 = vpow2.f32 %v547_v7  ;;  %v511_v15 = vsub.f32 %v5119_v48, %v433_v40  ;;  %600 = vadd.xlane.f32.xlu0 %v599_v41  ;;  %v605_v45 = vsel %vm406_vm0, %v5248_v11, 0.0 }
  0xd6   : > { %v512_v44 = vsub.f32 %v5122_v49, %v436_v14  ;;  %4345 = vpow2.f32 %v549_v10 }
  0xd7   : > { %v5256_v18 = vpop.eup %4335  ;;  %v551_v19 = vmul.f32 1.442695, %v511_v15 }
  0xd8   : > { %v553_v22 = vmul.f32 1.442695, %v512_v44  ;;  %v5258_v23 = vpop.eup %4337  ;;  %v457_v26 = vpop.xlane.xlu0 %456  ;;  %v602_v27 = vsel %vm406_vm0, %v5256_v18, 0.0 }
  0xd9   : > { %v460_v30 = vpop.xlane.xlu1 %459  ;;  %4347 = vpow2.f32 %v551_v19  ;;  %v519_v48 = vsub.f32 %v5129_v52, %v457_v26  ;;  %606 = vadd.xlane.f32.xlu0 %v605_v45  ;;  %603 = vadd.xlane.f32.xlu1 %v602_v27  ;;  %v608_v31 = vsel %vm406_vm0, %v5258_v23, 0.0 }
  0xda   : > { %v520_v49 = vsub.f32 %v5132_v53, %v460_v30  ;;  %4349 = vpow2.f32 %v553_v22 }
  0xdb   : > { %v5266_v35 = vpop.eup %4339  ;;  %v567_v36 = vmul.f32 1.442695, %v519_v48 }
  0xdc   : > { %v569_v38 = vmul.f32 1.442695, %v520_v49  ;;  %v5268_v39 = vpop.eup %4341  ;;  %v439_v42 = vpop.xlane.xlu0 %438  ;;  %v611_v43 = vsel %vm406_vm0, %v5266_v35, 0.0 }
  0xdd   : > { %v442_v46 = vpop.xlane.xlu1 %441  ;;  %4351 = vpow2.f32 %v567_v36  ;;  %v513_v52 = vsub.f32 %v5139_v56, %v439_v42  ;;  %609 = vadd.xlane.f32.xlu1 %v608_v31  ;;  %612 = vadd.xlane.f32.xlu0 %v611_v43  ;;  %v614_v47 = vsel %vm406_vm0, %v5268_v39, 0.0 }
  0xde   : > { %v514_v53 = vsub.f32 %v5142_v57, %v442_v46  ;;  %4353 = vpow2.f32 %v569_v38 }
  0xdf   : > { %v5276_v50 = vpop.eup %4343  ;;  %v555_v51 = vmul.f32 1.442695, %v513_v52 }
  0xe0   : > { %v557_v54 = vmul.f32 1.442695, %v514_v53  ;;  %v5278_v55 = vpop.eup %4345  ;;  %v463_v58 = vpop.xlane.xlu0 %462  ;;  %v617_v59 = vsel %vm406_vm0, %v5276_v50, 0.0 }
  0xe1   : > { %v466_v62 = vpop.xlane.xlu1 %465  ;;  %4355 = vpow2.f32 %v555_v51  ;;  %v521_v56 = vsub.f32 %v5149_v60, %v463_v58  ;;  %615 = vadd.xlane.f32.xlu1 %v614_v47  ;;  %618 = vadd.xlane.f32.xlu0 %v617_v59  ;;  %v620_v32 = vsel %vm406_vm0, %v5278_v55, 0.0 }
  0xe2   : > { %v522_v57 = vsub.f32 %v5152_v61, %v466_v62  ;;  %4357 = vpow2.f32 %v557_v54 }
  0xe3   : > { %v5286_v33 = vpop.eup %4347  ;;  %v571_v63 = vmul.f32 1.442695, %v521_v56 }
  0xe4   : > { %v573_v2 = vmul.f32 1.442695, %v522_v57  ;;  %v5288_v3 = vpop.eup %4349  ;;  %v445_v34 = vpop.xlane.xlu0 %444  ;;  %v623_v37 = vsel %vm406_vm0, %v5286_v33, 0.0 }
  0xe5   : > { %v448_v7 = vpop.xlane.xlu1 %447  ;;  %4359 = vpow2.f32 %v571_v63  ;;  %v515_v60 = vsub.f32 %v5159_v0, %v445_v34  ;;  %621 = vadd.xlane.f32.xlu1 %v620_v32  ;;  %624 = vadd.xlane.f32.xlu0 %v623_v37  ;;  %v626_v10 = vsel %vm406_vm0, %v5288_v3, 0.0 }
  0xe6   : > { %v516_v61 = vsub.f32 %v5162_v1, %v448_v7  ;;  %4361 = vpow2.f32 %v573_v2 }
  0xe7   : > { %v5296_v40 = vpop.eup %4351  ;;  %v559_v41 = vmul.f32 1.442695, %v515_v60 }
  0xe8   : > { %v561_v14 = vmul.f32 1.442695, %v516_v61  ;;  %v5298_v15 = vpop.eup %4353  ;;  %v469_v44 = vpop.xlane.xlu0 %468  ;;  %v647_v45 = vsel %vm406_vm0, %v5296_v40, 0.0 }
  0xe9   : > { %v472_v19 = vpop.xlane.xlu1 %471  ;;  %4363 = vpow2.f32 %v559_v41  ;;  %v523_v0 = vsub.f32 %v5169_v4, %v469_v44  ;;  %627 = vadd.xlane.f32.xlu1 %v626_v10  ;;  %648 = vadd.xlane.f32.xlu0 %v647_v45  ;;  %v650_v22 = vsel %vm406_vm0, %v5298_v15, 0.0 }
  0xea   : > { %v524_v1 = vsub.f32 %v5172_v5, %v472_v19  ;;  %4365 = vpow2.f32 %v561_v14 }
  0xeb   : > { %v5306_v26 = vpop.eup %4355  ;;  %v575_v27 = vmul.f32 1.442695, %v523_v0 }
  0xec   : > { %v577_v30 = vmul.f32 1.442695, %v524_v1  ;;  %v5308_v48 = vpop.eup %4357  ;;  %v451_v49 = vpop.xlane.xlu0 %450  ;;  %v629_v31 = vsel %vm406_vm0, %v5306_v26, 0.0 }
  0xed   : > { %v454_v36 = vpop.xlane.xlu1 %453  ;;  %4367 = vpow2.f32 %v575_v27  ;;  %v517_v4 = vsub.f32 %v5179_v8, %v451_v49  ;;  %651 = vadd.xlane.f32.xlu1 %v650_v22  ;;  %630 = vadd.xlane.f32.xlu0 %v629_v31  ;;  %v632_v38 = vsel %vm406_vm0, %v5308_v48, 0.0  ;;  %v4327_v8 = vld [vmem:[%s7139_s1] sm:$0xff]  }
  0xee   : > { %v518_v5 = vsub.f32 %v5182_v9, %v454_v36  ;;  %4369 = vpow2.f32 %v577_v30  ;;  %4103 = vmatprep.subr.bf16.mxu0 %v4327_v8 }
  0xef   : > { %v5316_v42 = vpop.eup %4359  ;;  %v563_v43 = vmul.f32 1.442695, %v517_v4  ;;  %4104 = vmatpush3.bf16.msra.mxu0 %v4327_v8 }
  0xf0   : > { %v565_v46 = vmul.f32 1.442695, %v518_v5  ;;  %v5318_v52 = vpop.eup %4361  ;;  %v475_v53 = vpop.xlane.xlu0 %474  ;;  %v653_v47 = vsel %vm406_vm0, %v5316_v42, 0.0 }
  0xf1   : > { %v478_v51 = vpop.xlane.xlu1 %477  ;;  %4371 = vpow2.f32 %v563_v43  ;;  %v525_v9 = vsub.f32 %v5189_v12, %v475_v53  ;;  %633 = vadd.xlane.f32.xlu1 %v632_v38  ;;  %654 = vadd.xlane.f32.xlu0 %v653_v47  ;;  %v656_v58 = vsel %vm406_vm0, %v5318_v52, 0.0 }
  0xf2   : > { %v526_v54 = vsub.f32 %v5192_v13, %v478_v51  ;;  %4373 = vpow2.f32 %v565_v46  ;;  %v4328_v13 = vld [vmem:[%s7139_s1 + $0x8] sm:$0xff]  }
  0xf3   : > { %v5329_v59 = vpop.eup %4363  ;;  %v579_v62 = vmul.f32 1.442695, %v525_v9  ;;  %4105 = vmatprep.subr.bf16.mxu0 %v4328_v13 }
  0xf4   : > { %v581_v56 = vmul.f32 1.442695, %v526_v54  ;;  %v5331_v57 = vpop.eup %4365  ;;  %v481_v32 = vpop.xlane.xlu0 %480  ;;  %v635_v12 = vsel %vm406_vm0, %v5329_v59, 0.0  ;;  %4106 = vmatpush3.bf16.msra.mxu0 %v4328_v13 }
  0xf5   : > { %v484_v63 = vpop.xlane.xlu1 %483  ;;  %4375 = vpow2.f32 %v579_v62  ;;  %v527_v2 = vsub.f32 %v5199_v16, %v481_v32  ;;  %657 = vadd.xlane.f32.xlu1 %v656_v58  ;;  %636 = vadd.xlane.f32.xlu0 %v635_v12  ;;  %v638_v37 = vsel %vm406_vm0, %v5331_v57, 0.0  ;;  %v4329_v32 = vld [vmem:[%s7139_s1 + $0x10] sm:$0xff]  }
  0xf6   : > { %v528_v34 = vsub.f32 %v5202_v17, %v484_v63  ;;  %4377 = vpow2.f32 %v581_v56  ;;  %4123 = vmatprep.subr.bf16.mxu1 %v4329_v32 }
  0xf7   : > { %v5342_v7 = vpop.eup %4367  ;;  %v583_v60 = vmul.f32 1.442695, %v527_v2  ;;  %4124 = vmatpush3.bf16.msra.mxu1 %v4329_v32 }
  0xf8   : > { %v585_v61 = vmul.f32 1.442695, %v528_v34  ;;  %v5344_v10 = vpop.eup %4369  ;;  %v487_v41 = vpop.xlane.xlu0 %486  ;;  %v659_v16 = vsel %vm406_vm0, %v5342_v7, 0.0  ;;  %v4330_v34 = vld [vmem:[%s7139_s1 + $0x18] sm:$0xff]  }
  0xf9   : > { %v490_v14 = vpop.xlane.xlu1 %489  ;;  %4379 = vpow2.f32 %v583_v60  ;;  %v529_v17 = vsub.f32 %v5209_v20, %v487_v41  ;;  %639 = vadd.xlane.f32.xlu1 %v638_v37  ;;  %660 = vadd.xlane.f32.xlu0 %v659_v16  ;;  %v662_v45 = vsel %vm406_vm0, %v5344_v10, 0.0 }
  0xfa   : > { %v530_v44 = vsub.f32 %v5212_v21, %v490_v14  ;;  %4381 = vpow2.f32 %v585_v61  ;;  %4125 = vmatprep.subr.bf16.mxu1 %v4330_v34 }
  0xfb   : > { %v5352_v19 = vpop.eup %4371  ;;  %v587_v0 = vmul.f32 1.442695, %v529_v17  ;;  %4126 = vmatpush3.bf16.msra.mxu1 %v4330_v34 }
  0xfc   : > { %v589_v1 = vmul.f32 1.442695, %v530_v44  ;;  %v5354_v22 = vpop.eup %4373  ;;  %v493_v27 = vpop.xlane.xlu0 %492  ;;  %v641_v30 = vsel %vm406_vm0, %v5352_v19, 0.0 }
  0xfd   : > { %v496_v49 = vpop.xlane.xlu1 %495  ;;  %4383 = vpow2.f32 %v587_v0  ;;  %v531_v20 = vsub.f32 %v5219_v24, %v493_v27  ;;  %663 = vadd.xlane.f32.xlu1 %v662_v45  ;;  %642 = vadd.xlane.f32.xlu0 %v641_v30  ;;  %v644_v31 = vsel %vm406_vm0, %v5354_v22, 0.0 }
  0xfe   : > { %v532_v21 = vsub.f32 %v5222_v25, %v496_v49  ;;  %4385 = vpow2.f32 %v589_v1 }
  0xff   : > { %v5362_v36 = vpop.eup %4375  ;;  %v591_v4 = vmul.f32 1.442695, %v531_v20 }
 0x100   : > { %v593_v5 = vmul.f32 1.442695, %v532_v21  ;;  %v5364_v38 = vpop.eup %4377  ;;  %v499_v43 = vpop.xlane.xlu0 %498  ;;  %v665_v46 = vsel %vm406_vm0, %v5362_v36, 0.0 }
 0x101   : > { %v502_v53 = vpop.xlane.xlu1 %501  ;;  %4387 = vpow2.f32 %v591_v4  ;;  %v533_v24 = vsub.f32 %v5229_v28, %v499_v43  ;;  %645 = vadd.xlane.f32.xlu1 %v644_v31  ;;  %666 = vadd.xlane.f32.xlu0 %v665_v46  ;;  %v668_v47 = vsel %vm406_vm0, %v5364_v38, 0.0 }
 0x102   : > { %v534_v25 = vsub.f32 %v5232_v29, %v502_v53  ;;  %4389 = vpow2.f32 %v593_v5 }
 0x103   : > { %v5372_v51 = vpop.eup %4379  ;;  %v595_v8 = vmul.f32 1.442695, %v533_v24 }
 0x104   : > { %v597_v9 = vmul.f32 1.442695, %v534_v25  ;;  %v5374_v54 = vpop.eup %4381  ;;  %v671_v58 = vsel %vm406_vm0, %v5372_v51, 0.0 }
 0x105   : > { %4391 = vpow2.f32 %v595_v8  ;;  %669 = vadd.xlane.f32.xlu1 %v668_v47  ;;  %672 = vadd.xlane.f32.xlu0 %v671_v58  ;;  %v674_v28 = vsel %vm406_vm0, %v5374_v54, 0.0 }
 0x106   : > { %4393 = vpow2.f32 %v597_v9 }
 0x107   : > { %v5380_v29 = vpop.eup %4383 }
 0x108   : > { %v5382_v62 = vpop.eup %4385  ;;  %v677_v56 = vsel %vm406_vm0, %v5380_v29, 0.0 }
 0x109   : > { %675 = vadd.xlane.f32.xlu1 %v674_v28  ;;  %678 = vadd.xlane.f32.xlu0 %v677_v56  ;;  %v680_v12 = vsel %vm406_vm0, %v5382_v62, 0.0 }
 0x10b   : > { %v5391_v63 = vpop.eup %4387 }
 0x10c   : > { %v5393_v13 = vpop.eup %4389  ;;  %v683_v2 = vsel %vm406_vm0, %v5391_v63, 0.0 }
 0x10d   : > { %681 = vadd.xlane.f32.xlu1 %v680_v12  ;;  %684 = vadd.xlane.f32.xlu0 %v683_v2  ;;  %v686_v37 = vsel %vm406_vm0, %v5393_v13, 0.0 }
 0x10f   : > { %v5402_v60 = vpop.eup %4391 }
 0x110   : > { %v5404_v61 = vpop.eup %4393  ;;  %v689_v41 = vsel %vm406_vm0, %v5402_v60, 0.0 }
 0x111   : > { %687 = vadd.xlane.f32.xlu1 %v686_v37  ;;  %690 = vadd.xlane.f32.xlu0 %v689_v41  ;;  %v692_v16 = vsel %vm406_vm0, %v5404_v61, 0.0 }
 0x115   : > { %693 = vadd.xlane.f32.xlu1 %v692_v16 }
 0x162   : > { %v601_v14 = vpop.xlane.xlu0 %600 }
 0x163   : > { %4395 = vrcp.f32 %v601_v14 }
 0x166   : > { %v604_v17 = vpop.xlane.xlu1 %603  ;;  %v607_v44 = vpop.xlane.xlu0 %606 }
 0x167   : > { %4397 = vrcp.f32 %v604_v17 }
 0x168   : > { %4399 = vrcp.f32 %v607_v44 }
 0x16a   : > { %v610_v45 = vpop.xlane.xlu1 %609  ;;  %v613_v0 = vpop.xlane.xlu0 %612 }
 0x16b   : > { %4401 = vrcp.f32 %v610_v45 }
 0x16c   : > { %4403 = vrcp.f32 %v613_v0 }
 0x16d   : > { %v4396_v30 = vpop.eup %4395 }
 0x16e   : > { %v616_v1 = vpop.xlane.xlu1 %615  ;;  %v619_v27 = vpop.xlane.xlu0 %618  ;;  %v727_v31 = vmul.f32 %v4396_v30, %v5246_v6 }
 0x16f   : > { %4405 = vrcp.f32 %v616_v1 }
 0x170   : > { %4407 = vrcp.f32 %v619_v27 }
 0x171   : > { %v4398_v49 = vpop.eup %4397 }
 0x172   : > { %v622_v20 = vpop.xlane.xlu1 %621  ;;  %v625_v21 = vpop.xlane.xlu0 %624  ;;  %v728_v4 = vmul.f32 %v4398_v49, %v5256_v18 }
 0x173   : > { %v4400_v5 = vpop.eup %4399  ;;  %4409 = vrcp.f32 %v622_v20 }
 0x174   : > { %v759_v43 = vpack.c.bf16 %v728_v4, %v727_v31  ;;  %4411 = vrcp.f32 %v625_v21  ;;  %v729_v25 = vmul.f32 %v4400_v5, %v5248_v11 }
 0x175   : > { %v4402_v46 = vpop.eup %4401 }
 0x176   : > { %v628_v53 = vpop.xlane.xlu1 %627  ;;  %4107 = vmatprep.mubr.msk.bf16.mxu0 %vm406_vm0, %v759_v43  ;;  %v649_v24 = vpop.xlane.xlu0 %648  ;;  %v730_v47 = vmul.f32 %v4402_v46, %v5258_v23 }
 0x177   : > { %v4404_v8 = vpop.eup %4403  ;;  %4413 = vrcp.f32 %v628_v53 }
 0x178   : > { %v760_v9 = vpack.c.bf16 %v730_v47, %v729_v25  ;;  %4415 = vrcp.f32 %v649_v24  ;;  %v731_v28 = vmul.f32 %v4404_v8, %v5266_v35 }
 0x179   : > { %v4406_v58 = vpop.eup %4405 }
 0x17a   : > { %v652_v6 = vpop.xlane.xlu1 %651  ;;  %4108 = vmatmul.mubr.msk.bf16.vlgmr.msra.gmra.mrb[0].mxu0 %vm406_vm0, %v760_v9  ;;  %v631_v18 = vpop.xlane.xlu0 %630  ;;  %v732_v56 = vmul.f32 %v4406_v58, %v5268_v39 }
 0x17b   : > { %v4408_v32 = vpop.eup %4407  ;;  %4417 = vrcp.f32 %v652_v6 }
 0x17c   : > { %v761_v12 = vpack.c.bf16 %v732_v56, %v731_v28  ;;  %4419 = vrcp.f32 %v631_v18  ;;  %v733_v34 = vmul.f32 %v4408_v32, %v5276_v50 }
 0x17d   : > { %v4410_v2 = vpop.eup %4409 }
 0x17e   : > { %v634_v11 = vpop.xlane.xlu1 %633  ;;  %4111 = vmatprep.mubr.msk.bf16.mxu0 %vm406_vm0, %v761_v12  ;;  %v655_v23 = vpop.xlane.xlu0 %654  ;;  %v734_v37 = vmul.f32 %v4410_v2, %v5278_v55 }
 0x17f   : > { %v4412_v41 = vpop.eup %4411  ;;  %4421 = vrcp.f32 %v634_v11 }
 0x180   : > { %v762_v16 = vpack.c.bf16 %v734_v37, %v733_v34  ;;  %4423 = vrcp.f32 %v655_v23  ;;  %v735_v17 = vmul.f32 %v4412_v41, %v5286_v33 }
 0x181   : > { %v4414_v14 = vpop.eup %4413 }
 0x182   : > { %v658_v35 = vpop.xlane.xlu1 %657  ;;  %4112 = vmatmul.mubr.msk.bf16.gmra.mrb[4].mxu0 %vm406_vm0, %v762_v16  ;;  %v637_v39 = vpop.xlane.xlu0 %636  ;;  %v736_v44 = vmul.f32 %v4414_v14, %v5288_v3 }
 0x183   : > { %v4416_v45 = vpop.eup %4415  ;;  %4425 = vrcp.f32 %v658_v35 }
 0x184   : > { %v763_v0 = vpack.c.bf16 %v736_v44, %v735_v17  ;;  %4427 = vrcp.f32 %v637_v39  ;;  %v743_v27 = vmul.f32 %v4416_v45, %v5296_v40 }
 0x185   : > { %v4418_v1 = vpop.eup %4417 }
 0x186   : > { %v640_v50 = vpop.xlane.xlu1 %639  ;;  %4115 = vmatprep.mubr.msk.bf16.mxu0 %vm406_vm0, %v763_v0  ;;  %v661_v55 = vpop.xlane.xlu0 %660  ;;  %v744_v30 = vmul.f32 %v4418_v1, %v5298_v15 }
 0x187   : > { %v4420_v49 = vpop.eup %4419  ;;  %4429 = vrcp.f32 %v640_v50 }
 0x188   : > { %v767_v20 = vpack.c.bf16 %v744_v30, %v743_v27  ;;  %4431 = vrcp.f32 %v661_v55  ;;  %v737_v31 = vmul.f32 %v4420_v49, %v5306_v26 }
 0x189   : > { %v4422_v21 = vpop.eup %4421 }
 0x18a   : > { %v664_v33 = vpop.xlane.xlu1 %663  ;;  %4127 = vmatprep.mubr.msk.bf16.mxu1 %vm406_vm0, %v767_v20  ;;  %v643_v3 = vpop.xlane.xlu0 %642  ;;  %v738_v4 = vmul.f32 %v4422_v21, %v5308_v48 }
 0x18b   : > { %v4424_v5 = vpop.eup %4423  ;;  %4433 = vrcp.f32 %v664_v33 }
 0x18c   : > { %v764_v43 = vpack.c.bf16 %v738_v4, %v737_v31  ;;  %4435 = vrcp.f32 %v643_v3  ;;  %v745_v53 = vmul.f32 %v4424_v5, %v5316_v42 }
 0x18d   : > { %v4426_v46 = vpop.eup %4425 }
 0x18e   : > { %v646_v40 = vpop.xlane.xlu1 %645  ;;  %4116 = vmatmul.mubr.msk.bf16.gmra.mrb[8].mxu0 %vm406_vm0, %v764_v43  ;;  %v667_v15 = vpop.xlane.xlu0 %666  ;;  %v746_v24 = vmul.f32 %v4426_v46, %v5318_v52 }
 0x18f   : > { %v4428_v25 = vpop.eup %4427  ;;  %4437 = vrcp.f32 %v646_v40 }
 0x190   : > { %v768_v47 = vpack.c.bf16 %v746_v24, %v745_v53  ;;  %4439 = vrcp.f32 %v667_v15  ;;  %v739_v9 = vmul.f32 %v4428_v25, %v5329_v59 }
 0x191   : > { %v4430_v8 = vpop.eup %4429 }
 0x192   : > { %v670_v26 = vpop.xlane.xlu1 %669  ;;  %4128 = vmatmul.mubr.msk.bf16.vlgmr.msra.gmra.mrb[0].mxu1 %vm406_vm0, %v768_v47  ;;  %v673_v48 = vpop.xlane.xlu0 %672  ;;  %v740_v58 = vmul.f32 %v4430_v8, %v5331_v57 }
 0x193   : > { %v4432_v6 = vpop.eup %4431  ;;  %4441 = vrcp.f32 %v670_v26 }
 0x194   : > { %v765_v18 = vpack.c.bf16 %v740_v58, %v739_v9  ;;  %4443 = vrcp.f32 %v673_v48  ;;  %v747_v56 = vmul.f32 %v4432_v6, %v5342_v7 }
 0x195   : > { %v4434_v28 = vpop.eup %4433 }
 0x196   : > { %v676_v42 = vpop.xlane.xlu1 %675  ;;  %4119 = vmatprep.mubr.msk.bf16.mxu0 %vm406_vm0, %v765_v18  ;;  %v679_v52 = vpop.xlane.xlu0 %678  ;;  %v748_v32 = vmul.f32 %v4434_v28, %v5344_v10 }
 0x197   : > { %v4436_v12 = vpop.eup %4435  ;;  %4445 = vrcp.f32 %v676_v42 }
 0x198   : > { %v769_v2 = vpack.c.bf16 %v748_v32, %v747_v56  ;;  %4447 = vrcp.f32 %v679_v52  ;;  %v741_v23 = vmul.f32 %v4436_v12, %v5352_v19 }
 0x199   : > { %v4438_v11 = vpop.eup %4437 }
 0x19a   : > { %v682_v59 = vpop.xlane.xlu1 %681  ;;  %4131 = vmatprep.mubr.msk.bf16.mxu1 %vm406_vm0, %v769_v2  ;;  %v685_v57 = vpop.xlane.xlu0 %684  ;;  %v742_v34 = vmul.f32 %v4438_v11, %v5354_v22 }
 0x19b   : > { %v4440_v37 = vpop.eup %4439  ;;  %4449 = vrcp.f32 %v682_v59 }
 0x19c   : > { %v766_v41 = vpack.c.bf16 %v742_v34, %v741_v23  ;;  %4451 = vrcp.f32 %v685_v57  ;;  %v749_v14 = vmul.f32 %v4440_v37, %v5362_v36 }
 0x19d   : > { %v4442_v16 = vpop.eup %4441 }
 0x19e   : > { %v688_v7 = vpop.xlane.xlu1 %687  ;;  %4120 = vmatmul.mubr.msk.bf16.gmra.mrb[12].mxu0 %vm406_vm0, %v766_v41  ;;  %v691_v10 = vpop.xlane.xlu0 %690  ;;  %v750_v35 = vmul.f32 %v4442_v16, %v5364_v38 }
 0x19f   : > { %v4444_v39 = vpop.eup %4443  ;;  %4453 = vrcp.f32 %v688_v7 }
 0x1a0   : > { %v770_v17 = vpack.c.bf16 %v750_v35, %v749_v14  ;;  %4455 = vrcp.f32 %v691_v10  ;;  %v751_v22 = vmul.f32 %v4444_v39, %v5372_v51 }
 0x1a1   : > { %v4446_v44 = vpop.eup %4445 }
 0x1a2   : > { %v694_v19 = vpop.xlane.xlu1 %693  ;;  %4132 = vmatmul.mubr.msk.bf16.gmra.mrb[4].mxu1 %vm406_vm0, %v770_v17  ;;  %v752_v45 = vmul.f32 %v4446_v44, %v5374_v54  ;;  %v4448_v0 = vpop.eup %4447 }
 0x1a3   : > { %4457 = vrcp.f32 %v694_v19  ;;  %v753_v36 = vmul.f32 %v4448_v0, %v5380_v29 }
 0x1a4   : > { %v771_v1 = vpack.c.bf16 %v752_v45, %v751_v22 }
 0x1a5   : > { %v4450_v50 = vpop.eup %4449 }
 0x1a6   : > { %4135 = vmatprep.mubr.msk.bf16.mxu1 %vm406_vm0, %v771_v1  ;;  %v754_v38 = vmul.f32 %v4450_v50, %v5382_v62  ;;  %v4452_v55 = vpop.eup %4451 }
 0x1a7   : > { %v755_v49 = vmul.f32 %v4452_v55, %v5391_v63 }
 0x1a8   : > { %v772_v27 = vpack.c.bf16 %v754_v38, %v753_v36 }
 0x1a9   : > { %v4454_v30 = vpop.eup %4453 }
 0x1aa   : > { %4136 = vmatmul.mubr.msk.bf16.gmra.mrb[8].mxu1 %vm406_vm0, %v772_v27  ;;  %v756_v51 = vmul.f32 %v4454_v30, %v5393_v13  ;;  %v4456_v54 = vpop.eup %4455 }
 0x1ab   : > { %v757_v33 = vmul.f32 %v4456_v54, %v5402_v60 }
 0x1ac   : > { %v773_v20 = vpack.c.bf16 %v756_v51, %v755_v49 }
 0x1ad   : > { %v4458_v21 = vpop.eup %4457 }
 0x1ae   : > { %4139 = vmatprep.mubr.msk.bf16.mxu1 %vm406_vm0, %v773_v20  ;;  %v758_v29 = vmul.f32 %v4458_v21, %v5404_v61 }
 0x1b0   : > { %v774_v3 = vpack.c.bf16 %v758_v29, %v757_v33 }
 0x1b2   : > { %4140 = vmatmul.mubr.msk.bf16.gmra.mrb[12].mxu1 %vm406_vm0, %v774_v3 }
 0x24d   : > { %v5458_v62 = vpop.f32.mrb[0].mxu0 }
 0x24e   : > { %7236 = vst [vmem:[#allocation6_spill] sm:$0xff] %v5458_v62  ;;  %v5460_v31 = vpop.f32.mrb[1].mxu0  ;;  %v1055_v63 = vsel %vm406_vm0, %v5458_v62, -inf  ;;  %v1408_v28 = vsel %vm1401_vm1, %v5458_v62, -inf }
 0x24f   : > { %7237 = vst [vmem:[#allocation7_spill] sm:$0xff] %v5460_v31  ;;  %1056 = vmax.xlane.f32.xlu0 %v1055_v63  ;;  %v5464_v13 = vpop.f32.mrb[2].mxu0  ;;  %v1049_v23 = vsel %vm406_vm0, %v5460_v31, -inf  ;;  %v1402_v44 = vsel %vm1401_vm1, %v5460_v31, -inf }
 0x250   : > { %7238 = vst [vmem:[#allocation8_spill] sm:$0xff] %v5464_v13  ;;  %v5466_v4 = vpop.f32.mrb[3].mxu0  ;;  %v1058_v60 = vsel %vm406_vm0, %v5464_v13, -inf  ;;  %v1411_v52 = vsel %vm1401_vm1, %v5464_v13, -inf }
 0x251   : > { %7239 = vst [vmem:[#allocation9_spill] sm:$0xff] %v5466_v4  ;;  %1059 = vmax.xlane.f32.xlu1 %v1058_v60  ;;  %v1052_v7 = vsel %vm406_vm0, %v5466_v4, -inf  ;;  %v1405_v22 = vsel %vm1401_vm1, %v5466_v4, -inf }
 0x255   : > { %v5470_v61 = vpop.f32.mrb[4].mxu0 }
 0x256   : > { %7240 = vst [vmem:[#allocation10_spill] sm:$0xff] %v5470_v61  ;;  %v5472_v5 = vpop.f32.mrb[5].mxu0  ;;  %v1067_v30 = vsel %vm406_vm0, %v5470_v61, -inf }
 0x257   : > { %7241 = vst [vmem:[#allocation11_spill] sm:$0xff] %v5472_v5  ;;  %v5474_v43 = vpop.f32.mrb[6].mxu0 }
 0x258   : > { %7242 = vst [vmem:[#allocation12_spill] sm:$0xff] %v5474_v43  ;;  %v5476_v46 = vpop.f32.mrb[7].mxu0  ;;  %v1070_v54 = vsel %vm406_vm0, %v5474_v43, -inf }
 0x259   : > { %7243 = vst [vmem:[#allocation13_spill] sm:$0xff] %v5476_v46 }
 0x261   : > { %v5478_v40 = vpop.f32.mrb[8].mxu0 }
 0x262   : > { %7244 = vst [vmem:[#allocation14_spill] sm:$0xff] %v5478_v40  ;;  %v5480_v15 = vpop.f32.mrb[9].mxu0  ;;  %v5484_v53 = vsel %vm1401_vm1, %v5478_v40, -inf }
 0x263   : > { %7245 = vst [vmem:[#allocation15_spill] sm:$0xff] %v5480_v15  ;;  %v5486_v24 = vpop.f32.mrb[10].mxu0  ;;  %v5490_v25 = vsel %vm1401_vm1, %v5480_v15, -inf }
 0x264   : > { %7246 = vst [vmem:[#allocation16_spill] sm:$0xff] %v5486_v24  ;;  %v5492_v47 = vpop.f32.mrb[11].mxu0  ;;  %v5496_v8 = vsel %vm1401_vm1, %v5486_v24, -inf }
 0x265   : > { %7247 = vst [vmem:[#allocation17_spill] sm:$0xff] %v5492_v47  ;;  %v5498_v26 = vpop.f32.mrb[0].mxu1  ;;  %v5514_v42 = vsel %vm1401_vm1, %v5492_v47, -inf }
 0x266   : > { %7248 = vst [vmem:[#allocation18_spill] sm:$0xff] %v5498_v26  ;;  %v5500_v48 = vpop.f32.mrb[1].mxu1  ;;  %v1103_v58 = vsel %vm406_vm0, %v5498_v26, -inf  ;;  %v1456_v56 = vsel %vm1401_vm1, %v5498_v26, -inf }
 0x267   : > { %7249 = vst [vmem:[#allocation19_spill] sm:$0xff] %v5500_v48  ;;  %v5502_v9 = vpop.f32.mrb[2].mxu1  ;;  %1104 = vmax.xlane.f32.xlu0 %v1103_v58  ;;  %v1097_v35 = vsel %vm406_vm0, %v5500_v48, -inf  ;;  %v1450_v50 = vsel %vm1401_vm1, %v5500_v48, -inf }
 0x268   : > { %7250 = vst [vmem:[#allocation20_spill] sm:$0xff] %v5502_v9  ;;  %v5506_v6 = vpop.f32.mrb[3].mxu1  ;;  %v1106_v18 = vsel %vm406_vm0, %v5502_v9, -inf  ;;  %v1459_v12 = vsel %vm1401_vm1, %v5502_v9, -inf }
 0x269   : > { %7251 = vst [vmem:[#allocation21_spill] sm:$0xff] %v5506_v6  ;;  %1107 = vmax.xlane.f32.xlu1 %v1106_v18  ;;  %v1100_v17 = vsel %vm406_vm0, %v5506_v6, -inf  ;;  %v1453_v38 = vsel %vm1401_vm1, %v5506_v6, -inf }
 0x26b   : > { %1409 = vmax.xlane.f32.xlu0 %v1408_v28  ;;  %v1420_v28 = vsel %vm1401_vm1, %v5470_v61, -inf }
 0x26d   : > { %1412 = vmax.xlane.f32.xlu1 %v1411_v52  ;;  %v1423_v52 = vsel %vm1401_vm1, %v5474_v43, -inf }
 0x26f   : > { %1457 = vmax.xlane.f32.xlu0 %v1456_v56 }
 0x271   : > { %v5520_v32 = vpop.f32.mrb[12].mxu0  ;;  %1460 = vmax.xlane.f32.xlu1 %v1459_v12 }
 0x272   : > { %7252 = vst [vmem:[#allocation22_spill] sm:$0xff] %v5520_v32  ;;  %v5524_v2 = vpop.f32.mrb[13].mxu0  ;;  %v5528_v11 = vsel %vm1401_vm1, %v5520_v32, -inf }
 0x273   : > { %7253 = vst [vmem:[#allocation23_spill] sm:$0xff] %v5524_v2  ;;  %v5530_v59 = vpop.f32.mrb[14].mxu0  ;;  %v5534_v57 = vsel %vm1401_vm1, %v5524_v2, -inf  ;;  %1050 = vmax.xlane.f32.xlu0 %v1049_v23  ;;  %v1061_v23 = vsel %vm406_vm0, %v5472_v5, -inf }
 0x274   : > { %7254 = vst [vmem:[#allocation24_spill] sm:$0xff] %v5530_v59  ;;  %v5538_v34 = vpop.f32.mrb[15].mxu0  ;;  %v5542_v37 = vsel %vm1401_vm1, %v5530_v59, -inf }
 0x275   : > { %7255 = vst [vmem:[#allocation25_spill] sm:$0xff] %v5538_v34  ;;  %v5544_v41 = vpop.f32.mrb[4].mxu1  ;;  %v5548_v16 = vsel %vm1401_vm1, %v5538_v34, -inf  ;;  %1053 = vmax.xlane.f32.xlu1 %v1052_v7  ;;  %v1064_v7 = vsel %vm406_vm0, %v5476_v46, -inf }
 0x276   : > { %7256 = vst [vmem:[#allocation26_spill] sm:$0xff] %v5544_v41  ;;  %v5552_v10 = vpop.f32.mrb[5].mxu1  ;;  %v1115_v3 = vsel %vm406_vm0, %v5544_v41, -inf  ;;  %v1468_v56 = vsel %vm1401_vm1, %v5544_v41, -inf }
 0x277   : > { %7257 = vst [vmem:[#allocation27_spill] sm:$0xff] %v5552_v10  ;;  %v5554_v14 = vpop.f32.mrb[6].mxu1  ;;  %1098 = vmax.xlane.f32.xlu0 %v1097_v35  ;;  %v1109_v35 = vsel %vm406_vm0, %v5552_v10, -inf }
 0x278   : > { %7258 = vst [vmem:[#allocation28_spill] sm:$0xff] %v5554_v14  ;;  %v5558_v39 = vpop.f32.mrb[7].mxu1  ;;  %v1118_v58 = vsel %vm406_vm0, %v5554_v14, -inf  ;;  %v1471_v12 = vsel %vm1401_vm1, %v5554_v14, -inf }
 0x279   : > { %7259 = vst [vmem:[#allocation29_spill] sm:$0xff] %v5558_v39  ;;  %1101 = vmax.xlane.f32.xlu1 %v1100_v17  ;;  %v1112_v17 = vsel %vm406_vm0, %v5558_v39, -inf }
 0x27b   : > { %1403 = vmax.xlane.f32.xlu0 %v1402_v44  ;;  %v1414_v44 = vsel %vm1401_vm1, %v5472_v5, -inf }
 0x27d   : > { %v5564_v19 = vpop.f32.mrb[8].mxu1  ;;  %1406 = vmax.xlane.f32.xlu1 %v1405_v22  ;;  %v1417_v22 = vsel %vm1401_vm1, %v5476_v46, -inf }
 0x27e   : > { %7260 = vst [vmem:[#allocation30_spill] sm:$0xff] %v5564_v19  ;;  %v5568_v45 = vpop.f32.mrb[9].mxu1  ;;  %v1480_v1 = vsel %vm1401_vm1, %v5564_v19, -inf }
 0x27f   : > { %7261 = vst [vmem:[#allocation31_spill] sm:$0xff] %v5568_v45  ;;  %v5570_v0 = vpop.f32.mrb[10].mxu1  ;;  %1451 = vmax.xlane.f32.xlu0 %v1450_v50  ;;  %v5584_v27 = vsel %vm1401_vm1, %v5568_v45, -inf  ;;  %v1462_v50 = vsel %vm1401_vm1, %v5552_v10, -inf }
 0x280   : > { %7262 = vst [vmem:[#allocation32_spill] sm:$0xff] %v5570_v0  ;;  %v5576_v36 = vpop.f32.mrb[11].mxu1  ;;  %v1483_v55 = vsel %vm1401_vm1, %v5570_v0, -inf }
 0x281   : > { %7263 = vst [vmem:[#allocation33_spill] sm:$0xff] %v5576_v36  ;;  %1454 = vmax.xlane.f32.xlu1 %v1453_v38  ;;  %v1477_v49 = vsel %vm1401_vm1, %v5576_v36, -inf  ;;  %v1465_v38 = vsel %vm1401_vm1, %v5558_v39, -inf }
 0x283   : > { %1068 = vmax.xlane.f32.xlu0 %v1067_v30  ;;  %v1079_v30 = vsel %vm406_vm0, %v5478_v40, -inf }
 0x285   : > { %v5590_v51 = vpop.f32.mrb[12].mxu1  ;;  %1071 = vmax.xlane.f32.xlu1 %v1070_v54  ;;  %v1082_v54 = vsel %vm406_vm0, %v5486_v24, -inf }
 0x286   : > { %7264 = vst [vmem:[#allocation34_spill] sm:$0xff] %v5590_v51  ;;  %v5594_v20 = vpop.f32.mrb[13].mxu1  ;;  %v5598_v21 = vsel %vm1401_vm1, %v5590_v51, -inf }
 0x287   : > { %7265 = vst [vmem:[#allocation35_spill] sm:$0xff] %v5594_v20  ;;  %v5600_v33 = vpop.f32.mrb[14].mxu1  ;;  %v5604_v29 = vsel %vm1401_vm1, %v5594_v20, -inf  ;;  %1116 = vmax.xlane.f32.xlu0 %v1115_v3  ;;  %v1127_v3 = vsel %vm406_vm0, %v5564_v19, -inf }
 0x288   : > { %7266 = vst [vmem:[#allocation36_spill] sm:$0xff] %v5600_v33  ;;  %v5608_v63 = vpop.f32.mrb[15].mxu1  ;;  %v1495_v60 = vsel %vm1401_vm1, %v5600_v33, -inf }
 0x289   : > { %7267 = vst [vmem:[#allocation37_spill] sm:$0xff] %v5608_v63  ;;  %1119 = vmax.xlane.f32.xlu1 %v1118_v58  ;;  %v5616_v18 = vsel %vm1401_vm1, %v5608_v63, -inf  ;;  %v1130_v58 = vsel %vm406_vm0, %v5570_v0, -inf }
 0x28b   : > { %1421 = vmax.xlane.f32.xlu0 %v1420_v28  ;;  %v1073_v28 = vsel %vm406_vm0, %v5480_v15, -inf }
 0x28d   : > { %1424 = vmax.xlane.f32.xlu1 %v1423_v52  ;;  %v1076_v52 = vsel %vm406_vm0, %v5492_v47, -inf }
 0x28f   : > { %1469 = vmax.xlane.f32.xlu0 %v1468_v56  ;;  %v1121_v56 = vsel %vm406_vm0, %v5568_v45, -inf }
 0x291   : > { %1472 = vmax.xlane.f32.xlu1 %v1471_v12  ;;  %v1124_v12 = vsel %vm406_vm0, %v5576_v36, -inf }
 0x293   : > { %1062 = vmax.xlane.f32.xlu0 %v1061_v23 }
 0x295   : > { %1065 = vmax.xlane.f32.xlu1 %v1064_v7 }
 0x297   : > { %1110 = vmax.xlane.f32.xlu0 %v1109_v35 }
 0x299   : > { %1113 = vmax.xlane.f32.xlu1 %v1112_v17 }
 0x29b   : > { %1415 = vmax.xlane.f32.xlu0 %v1414_v44 }
 0x29d   : > { %1418 = vmax.xlane.f32.xlu1 %v1417_v22 }
 0x29f   : > { %1463 = vmax.xlane.f32.xlu0 %v1462_v50 }
 0x2a1   : > { %1466 = vmax.xlane.f32.xlu1 %v1465_v38 }
 0x2a3   : > { %1080 = vmax.xlane.f32.xlu0 %v1079_v30 }
 0x2a5   : > { %1083 = vmax.xlane.f32.xlu1 %v1082_v54 }
 0x2a7   : > { %1128 = vmax.xlane.f32.xlu0 %v1127_v3 }
 0x2a9   : > { %1131 = vmax.xlane.f32.xlu1 %v1130_v58 }
 0x2ab   : > { %1433 = vmax.xlane.f32.xlu0 %v5484_v53  ;;  %v1091_v53 = vsel %vm406_vm0, %v5520_v32, -inf }
 0x2ad   : > { %1436 = vmax.xlane.f32.xlu1 %v5496_v8  ;;  %v1094_v8 = vsel %vm406_vm0, %v5530_v59, -inf }
 0x2af   : > { %1481 = vmax.xlane.f32.xlu0 %v1480_v1  ;;  %v1139_v1 = vsel %vm406_vm0, %v5590_v51, -inf }
 0x2b1   : > { %1484 = vmax.xlane.f32.xlu1 %v1483_v55  ;;  %v1088_v55 = vsel %vm406_vm0, %v5538_v34, -inf }
 0x2b3   : > { %1074 = vmax.xlane.f32.xlu0 %v1073_v28 }
 0x2b5   : > { %1077 = vmax.xlane.f32.xlu1 %v1076_v52 }
 0x2b7   : > { %1122 = vmax.xlane.f32.xlu0 %v1121_v56 }
 0x2b9   : > { %1125 = vmax.xlane.f32.xlu1 %v1124_v12 }
 0x2bb   : > { %1427 = vmax.xlane.f32.xlu0 %v5490_v25  ;;  %v1142_v25 = vsel %vm406_vm0, %v5600_v33, -inf }
 0x2bd   : > { %1430 = vmax.xlane.f32.xlu1 %v5514_v42  ;;  %v1085_v42 = vsel %vm406_vm0, %v5524_v2, -inf }
 0x2bf   : > { %1475 = vmax.xlane.f32.xlu0 %v5584_v27  ;;  %v1133_v27 = vsel %vm406_vm0, %v5594_v20, -inf }
 0x2c1   : > { %1478 = vmax.xlane.f32.xlu1 %v1477_v49 }
 0x2c3   : > { %1092 = vmax.xlane.f32.xlu0 %v1091_v53 }
 0x2c5   : > { %1095 = vmax.xlane.f32.xlu1 %v1094_v8 }
 0x2c7   : > { %1140 = vmax.xlane.f32.xlu0 %v1139_v1 }
 0x2c9   : > { %1143 = vmax.xlane.f32.xlu1 %v1142_v25 }
 0x2cb   : > { %1445 = vmax.xlane.f32.xlu0 %v5528_v11  ;;  %v1136_v11 = vsel %vm406_vm0, %v5608_v63, -inf }
 0x2cd   : > { %1448 = vmax.xlane.f32.xlu1 %v5542_v37 }
 0x2cf   : > { %1493 = vmax.xlane.f32.xlu0 %v5598_v21 }
 0x2d1   : > { %1496 = vmax.xlane.f32.xlu1 %v1495_v60 }
 0x2d3   : > { %1086 = vmax.xlane.f32.xlu0 %v1085_v42 }
 0x2d5   : > { %1089 = vmax.xlane.f32.xlu1 %v1088_v55 }
 0x2d7   : > { %1134 = vmax.xlane.f32.xlu0 %v1133_v27 }
 0x2d9   : > { %1137 = vmax.xlane.f32.xlu1 %v1136_v11 }
 0x2db   : > { %1439 = vmax.xlane.f32.xlu0 %v5534_v57 }
 0x2dc   : > { %v1057_v37 = vpop.xlane.xlu0 %1056 }
 0x2dd   : > { %v1147_v49 = vsub.f32 %v5458_v62, %v1057_v37  ;;  %1442 = vmax.xlane.f32.xlu1 %v5548_v16 }
 0x2de   : > { %v1060_v7 = vpop.xlane.xlu1 %1059 }
 0x2df   : > { %v1181_v21 = vmul.f32 1.442695, %v1147_v49  ;;  %1487 = vmax.xlane.f32.xlu0 %v5604_v29 }
 0x2e1   : > { %4459 = vpow2.f32 %v1181_v21  ;;  %1490 = vmax.xlane.f32.xlu1 %v5616_v18 }
 0x2eb   : > { %v5687_v60 = vpop.eup %4459 }
 0x2ec   : > { %v1247_v23 = vsel %vm406_vm0, %v5687_v60, 0.0 }
 0x2ed   : > { %1248 = vadd.xlane.f32.xlu0 %v1247_v23 }
 0x2f4   : > { %v1105_v35 = vpop.xlane.xlu0 %1104 }
 0x2f5   : > { %v1163_v57 = vsub.f32 %v5498_v26, %v1105_v35 }
 0x2f6   : > { %v1108_v17 = vpop.xlane.xlu1 %1107 }
 0x2f7   : > { %v1213_v44 = vmul.f32 1.442695, %v1163_v57 }
 0x2f8   : > { %v1410_v22 = vpop.xlane.xlu0 %1409 }
 0x2f9   : > { %4461 = vpow2.f32 %v1213_v44  ;;  %v1500_v16 = vsub.f32 %v5458_v62, %v1410_v22  ;;  %v1148_v44 = vsub.f32 %v5464_v13, %v1060_v7 }
 0x2fa   : > { %v1413_v50 = vpop.xlane.xlu1 %1412 }
 0x2fb   : > { %v1534_v29 = vmul.f32 1.442695, %v1500_v16  ;;  %v1501_v18 = vsub.f32 %v5464_v13, %v1413_v50  ;;  %v1183_v50 = vmul.f32 1.442695, %v1148_v44 }
 0x2fc   : > { %v5694_v38 = vpop.xlane.xlu0 %1457 }
 0x2fd   : > { %7268 = vst [vmem:[#allocation38_spill] sm:$0xff] %v5694_v38  ;;  %4463 = vpow2.f32 %v1534_v29  ;;  %v1536_v30 = vmul.f32 1.442695, %v1501_v18  ;;  %v1164_v29 = vsub.f32 %v5502_v9, %v1108_v17 }
 0x2fe   : > { %v5696_v54 = vpop.xlane.xlu1 %1460 }
 0x2ff   : > { %7269 = vst [vmem:[#allocation39_spill] sm:$0xff] %v5696_v54  ;;  %4465 = vpow2.f32 %v1536_v30 }
 0x300   : > { %v1051_v3 = vpop.xlane.xlu0 %1050 }
 0x301   : > { %v1145_v7 = vsub.f32 %v5460_v31, %v1051_v3 }
 0x302   : > { %v5698_v58 = vpop.xlane.xlu1 %1053 }
 0x303   : > { %v5700_v28 = vpop.eup %4461  ;;  %v1177_v13 = vmul.f32 1.442695, %v1145_v7 }
 0x304   : > { %v1099_v52 = vpop.xlane.xlu0 %1098  ;;  %v1295_v56 = vsel %vm406_vm0, %v5700_v28, 0.0 }
 0x305   : > { %1296 = vadd.xlane.f32.xlu0 %v1295_v56  ;;  %v1215_v56 = vmul.f32 1.442695, %v1164_v29  ;;  %v1161_v44 = vsub.f32 %v5500_v48, %v1099_v52 }
 0x306   : > { %v5704_v12 = vpop.xlane.xlu1 %1101 }
 0x307   : > { %v5706_v53 = vpop.eup %4463 }
 0x308   : > { %7270 = vst [vmem:[#allocation40_spill] sm:$0xff] %v5706_v53  ;;  %1630 = vrot.lane.b32.xlu1 %v5706_v53, %s4915_s28  ;;  %v1404_v8 = vpop.xlane.xlu0 %1403 }
 0x309   : > { %v1498_v1 = vsub.f32 %v5460_v31, %v1404_v8  ;;  %v5711_v42 = vpop.eup %4465 }
 0x30a   : > { %v1407_v25 = vpop.xlane.xlu1 %1406  ;;  %7271 = vst [vmem:[#allocation41_spill] sm:$0xff] %v5711_v42 }
 0x30b   : > { %v1530_v55 = vmul.f32 1.442695, %v1498_v1  ;;  %v1499_v7 = vsub.f32 %v5466_v4, %v1407_v25 }
 0x30c   : > { %1632 = vrot.lane.b32.xlu1 %v5711_v42, %s4915_s28  ;;  %v5715_v27 = vpop.xlane.xlu0 %1451 }
 0x30d   : > { %7272 = vst [vmem:[#allocation42_spill] sm:$0xff] %v5715_v27  ;;  %4467 = vpow2.f32 %v1530_v55 }
 0x30e   : > { %v5717_v11 = vpop.xlane.xlu1 %1454  ;;  %4469 = vpow2.f32 %v1183_v50  ;;  %v1209_v50 = vmul.f32 1.442695, %v1161_v44 }
 0x30f   : > { %7273 = vst [vmem:[#allocation43_spill] sm:$0xff] %v5717_v11  ;;  %4471 = vpow2.f32 %v1215_v56 }
 0x310   : > { %v5719_v37 = vpop.xlane.xlu0 %1068  ;;  %4473 = vpow2.f32 %v1177_v13 }
 0x311   : > { %4475 = vpow2.f32 %v1209_v50 }
 0x312   : > { %v5721_v49 = vpop.xlane.xlu1 %1071 }
 0x314   : > { %v5723_v21 = vpop.xlane.xlu0 %1116 }
 0x316   : > { %v5725_v23 = vpop.xlane.xlu1 %1119 }
 0x317   : > { %v5727_v57 = vpop.eup %4467 }
 0x318   : > { %v1422_v35 = vpop.xlane.xlu0 %1421  ;;  %7274 = vst [vmem:[#allocation44_spill] sm:$0xff] %v5727_v57 }
 0x31a   : > { %v5730_v22 = vpop.xlane.xlu1 %1424 }
 0x31b   : > { %1626 = vrot.lane.b32.xlu0 %v5727_v57, %s4915_s28  ;;  %v5753_v57 = vpop.eup %4469 }
 0x31c   : > { %v5734_v16 = vpop.xlane.xlu0 %1469  ;;  %v1250_v3 = vsel %vm406_vm0, %v5753_v57, 0.0  ;;  %v5761_v56 = vpop.eup %4471 }
 0x31d   : > { %7275 = vst [vmem:[#allocation45_spill] sm:$0xff] %v5734_v16  ;;  %v1298_v13 = vsel %vm406_vm0, %v5761_v56, 0.0  ;;  %v5772_v53 = vpop.eup %4473  ;;  %v1504_v16 = vsub.f32 %v5470_v61, %v1422_v35 }
 0x31e   : > { %v5737_v18 = vpop.xlane.xlu1 %1472  ;;  %v1241_v50 = vsel %vm406_vm0, %v5772_v53, 0.0 }
 0x31f   : > { %7276 = vst [vmem:[#allocation46_spill] sm:$0xff] %v5737_v18  ;;  %v1532_v18 = vmul.f32 1.442695, %v1499_v7  ;;  %v1542_v38 = vmul.f32 1.442695, %v1504_v16  ;;  %v1146_v16 = vsub.f32 %v5466_v4, %v5698_v58  ;;  %v1151_v58 = vsub.f32 %v5470_v61, %v5719_v37 }
 0x320   : > { %v5739_v30 = vpop.xlane.xlu0 %1062 }
 0x321   : > { %4477 = vpow2.f32 %v1532_v18  ;;  %v1179_v34 = vmul.f32 1.442695, %v1146_v16  ;;  %v1189_v16 = vmul.f32 1.442695, %v1151_v58  ;;  %v1505_v58 = vsub.f32 %v5474_v43, %v5730_v22 }
 0x322   : > { %v5741_v8 = vpop.xlane.xlu1 %1065  ;;  %4479 = vpow2.f32 %v1542_v38 }
 0x323   : > { %4481 = vpow2.f32 %v1179_v34 }
 0x324   : > { %v5744_v1 = vpop.xlane.xlu0 %1110 }
 0x326   : > { %v5746_v55 = vpop.xlane.xlu1 %1113 }
 0x328   : > { %v5749_v62 = vpop.xlane.xlu0 %1415 }
 0x32a   : > { %v5751_v17 = vpop.xlane.xlu1 %1418 }
 0x32c   : > { %v5755_v29 = vpop.xlane.xlu0 %1463 }
 0x32d   : > { %7277 = vst [vmem:[#allocation47_spill] sm:$0xff] %v5755_v29 }
 0x32e   : > { %v5757_v42 = vpop.xlane.xlu1 %1466 }
 0x32f   : > { %7278 = vst [vmem:[#allocation48_spill] sm:$0xff] %v5757_v42 }
 0x330   : > { %1251 = vadd.xlane.f32.xlu1 %v1250_v3  ;;  %v5763_v52 = vpop.xlane.xlu0 %1080  ;;  %v5780_v3 = vpop.eup %4475 }
 0x331   : > { %v5795_v26 = vpop.eup %4477 }
 0x332   : > { %v5766_v31 = vpop.xlane.xlu1 %1083  ;;  %7282 = vst [vmem:[#allocation52_spill] sm:$0xff] %v5795_v26 }
 0x334   : > { %1299 = vadd.xlane.f32.xlu1 %v1298_v13  ;;  %v5770_v44 = vpop.xlane.xlu0 %1128  ;;  %v1289_v13 = vsel %vm406_vm0, %v5780_v3, 0.0 }
 0x336   : > { %v5774_v42 = vpop.xlane.xlu1 %1131 }
 0x338   : > { %v5776_v9 = vpop.xlane.xlu0 %1433 }
 0x33a   : > { %v5782_v25 = vpop.xlane.xlu1 %1436  ;;  %1242 = vadd.xlane.f32.xlu0 %v1241_v50 }
 0x33b   : > { %7279 = vst [vmem:[#allocation49_spill] sm:$0xff] %v5782_v25  ;;  %v5815_v25 = vpop.eup %4479 }
 0x33c   : > { %v5784_v54 = vpop.xlane.xlu0 %1481  ;;  %7286 = vst [vmem:[#allocation56_spill] sm:$0xff] %v5815_v25  ;;  %v5845_v34 = vpop.eup %4481 }
 0x33d   : > { %7280 = vst [vmem:[#allocation50_spill] sm:$0xff] %v5784_v54 }
 0x33e   : > { %v5788_v11 = vpop.xlane.xlu1 %1484  ;;  %1290 = vadd.xlane.f32.xlu0 %v1289_v13 }
 0x33f   : > { %7281 = vst [vmem:[#allocation51_spill] sm:$0xff] %v5788_v11 }
 0x340   : > { %v5790_v7 = vpop.xlane.xlu0 %1074 }
 0x342   : > { %v5793_v29 = vpop.xlane.xlu1 %1077 }
 0x344   : > { %v5797_v18 = vpop.xlane.xlu0 %1122 }
 0x345   : > { %1628 = vrot.lane.b32.xlu1 %v5795_v26, %s4915_s28 }
 0x346   : > { %v5801_v50 = vpop.xlane.xlu1 %1125 }
 0x348   : > { %v5803_v54 = vpop.xlane.xlu0 %1427 }
 0x34a   : > { %v5805_v13 = vpop.xlane.xlu1 %1430 }
 0x34c   : > { %v5807_v11 = vpop.xlane.xlu0 %1475 }
 0x34d   : > { %7283 = vst [vmem:[#allocation53_spill] sm:$0xff] %v5807_v11 }
 0x34e   : > { %v5809_v35 = vpop.xlane.xlu1 %1478 }
 0x34f   : > { %7284 = vst [vmem:[#allocation54_spill] sm:$0xff] %v5809_v35  ;;  %v1162_v35 = vsub.f32 %v5506_v6, %v5704_v12  ;;  %v1167_v12 = vsub.f32 %v5544_v41, %v5723_v21 }
 0x350   : > { %v5811_v48 = vpop.xlane.xlu0 %1092 }
 0x351   : > { %v1211_v59 = vmul.f32 1.442695, %v1162_v35  ;;  %v1221_v35 = vmul.f32 1.442695, %v1167_v12 }
 0x352   : > { %v5813_v27 = vpop.xlane.xlu1 %1095 }
 0x353   : > { %7285 = vst [vmem:[#allocation55_spill] sm:$0xff] %v5813_v27  ;;  %4483 = vpow2.f32 %v1211_v59  ;;  %v1244_v59 = vsel %vm406_vm0, %v5845_v34, 0.0 }
 0x354   : > { %1638 = vrot.lane.b32.xlu0 %v5815_v25, %s4915_s28  ;;  %v5821_v26 = vpop.xlane.xlu0 %1140  ;;  %4485 = vpow2.f32 %v1189_v16 }
 0x355   : > { %4487 = vpow2.f32 %v1221_v35  ;;  %v1544_v35 = vmul.f32 1.442695, %v1505_v58 }
 0x356   : > { %v5823_v38 = vpop.xlane.xlu1 %1143 }
 0x357   : > { %4489 = vpow2.f32 %v1544_v35  ;;  %v1883_v35 = vld [vmem:[%s7140_s2 + $0x8] sm:$0xff] }
 0x358   : > { %v5827_v11 = vpop.xlane.xlu0 %1445 }
 0x359   : > { %7287 = vst [vmem:[#allocation57_spill] sm:$0xff] %v5827_v11 }
 0x35a   : > { %v5829_v33 = vpop.xlane.xlu1 %1448 }
 0x35b   : > { %7288 = vst [vmem:[#allocation58_spill] sm:$0xff] %v5829_v33 }
 0x35c   : > { %v5831_v27 = vpop.xlane.xlu0 %1493 }
 0x35d   : > { %7289 = vst [vmem:[#allocation59_spill] sm:$0xff] %v5831_v27  ;;  %v5853_v61 = vpop.eup %4483 }
 0x35e   : > { %v5835_v4 = vpop.xlane.xlu1 %1496  ;;  %v1292_v16 = vsel %vm406_vm0, %v5853_v61, 0.0 }
 0x35f   : > { %7290 = vst [vmem:[#allocation60_spill] sm:$0xff] %v5835_v4 }
 0x360   : > { %v5837_v25 = vpop.xlane.xlu0 %1086 }
 0x362   : > { %v5841_v6 = vpop.xlane.xlu1 %1089 }
 0x364   : > { %v5843_v11 = vpop.xlane.xlu0 %1134 }
 0x366   : > { %v5847_v33 = vpop.xlane.xlu1 %1137 }
 0x367   : > { %7291 = vst [vmem:[#allocation61_spill] sm:$0xff] %v5847_v33  ;;  %v5867_v33 = vpop.eup %4485 }
 0x368   : > { %v5849_v37 = vpop.xlane.xlu0 %1439  ;;  %v1259_v22 = vsel %vm406_vm0, %v5867_v33, 0.0 }
 0x369   : > { %1245 = vadd.xlane.f32.xlu1 %v1244_v59  ;;  %v1882_v59 = vld [vmem:[%s7140_s2] sm:$0xff] }
 0x36a   : > { %v5855_v21 = vpop.xlane.xlu1 %1442 }
 0x36b   : > { %7292 = vst [vmem:[#allocation62_spill] sm:$0xff] %v5855_v21  ;;  %v5873_v21 = vpop.eup %4487 }
 0x36c   : > { %v5859_v4 = vpop.xlane.xlu0 %1487  ;;  %7294 = vst [vmem:[#allocation64_spill] sm:$0xff] %v5873_v21  ;;  %v1307_v41 = vsel %vm406_vm0, %v5873_v21, 0.0  ;;  %v5879_v12 = vpop.eup %4489  ;;  %v1889_v21 = vld [vmem:[%s7140_s2 + $0x38] sm:$0xff] }
 0x36d   : > { %1293 = vadd.xlane.f32.xlu1 %v1292_v16  ;;  %v1502_v16 = vsub.f32 %v5472_v5, %v5749_v62  ;;  %7295 = vst [vmem:[#allocation65_spill] sm:$0xff] %v5879_v12  ;;  %v1884_v62 = vld [vmem:[%s7140_s2 + $0x10] sm:$0xff] }
 0x36e   : > { %v5865_v27 = vpop.xlane.xlu1 %1490 }
 0x36f   : > { %7293 = vst [vmem:[#allocation63_spill] sm:$0xff] %v5865_v27  ;;  %v1538_v58 = vmul.f32 1.442695, %v1502_v16  ;;  %v1886_v16 = vld [vmem:[%s7140_s2 + $0x20] sm:$0xff]  ;;  %v1888_v27 = vld [vmem:[%s7140_s2 + $0x30] sm:$0xff] }
 0x371   : > { %4491 = vpow2.f32 %v1538_v58  ;;  %v1893_v58 = vpack.c.bf16 %v1889_v21, %v1888_v27  ;;  %v1165_v21 = vsub.f32 %v5552_v10, %v5744_v1  ;;  %v1503_v1 = vsub.f32 %v5476_v46, %v5751_v17 }
 0x373   : > { %1260 = vadd.xlane.f32.xlu0 %v1259_v22  ;;  %v1890_v22 = vpack.c.bf16 %v1883_v35, %v1882_v59  ;;  %v1887_v59 = vld [vmem:[%s7140_s2 + $0x28] sm:$0xff] }
 0x374   : > { %v1892_v35 = vpack.c.bf16 %v1887_v59, %v1886_v16  ;;  %v1149_v59 = vsub.f32 %v5472_v5, %v5739_v30  ;;  %v1171_v30 = vsub.f32 %v5564_v19, %v5770_v44  ;;  %v1157_v5 = vsub.f32 %v5524_v2, %v5837_v25 }
 0x375   : > { %4143 = vmatprep.subr.bf16.mxu0 %v1890_v22 }
 0x376   : > { %4144 = vmatpush3.bf16.msra.mxu0 %v1890_v22  ;;  %4179 = vmatprep.subr.bf16.mxu1 %v1892_v35  ;;  %v1185_v27 = vmul.f32 1.442695, %v1149_v59  ;;  %v1540_v59 = vmul.f32 1.442695, %v1503_v1 }
 0x377   : > { %1308 = vadd.xlane.f32.xlu0 %v1307_v41  ;;  %v1885_v41 = vld [vmem:[%s7140_s2 + $0x18] sm:$0xff]  ;;  %4180 = vmatpush3.bf16.msra.mxu1 %v1892_v35 }
 0x378   : > { %4181 = vmatprep.subr.bf16.mxu1 %v1893_v58 }
 0x37b   : > { %4182 = vmatpush3.bf16.msra.mxu1 %v1893_v58  ;;  %v5907_v22 = vpop.eup %4491  ;;  %v1155_v58 = vsub.f32 %v5478_v40, %v5763_v52 }
 0x37c   : > { %7296 = vst [vmem:[#allocation66_spill] sm:$0xff] %v5907_v22 }
 0x37e   : > { %1640 = vrot.lane.b32.xlu1 %v5879_v12, %s4915_s28  ;;  %v1891_v12 = vpack.c.bf16 %v1885_v41, %v1884_v62  ;;  %v1152_v62 = vsub.f32 %v5474_v43, %v5721_v49  ;;  %v1168_v41 = vsub.f32 %v5554_v14, %v5725_v23  ;;  %v1217_v49 = vmul.f32 1.442695, %v1165_v21 }
 0x380   : > { %4145 = vmatprep.subr.bf16.mxu0 %v1891_v12  ;;  %v1223_v16 = vmul.f32 1.442695, %v1168_v41 }
 0x381   : > { %4146 = vmatpush3.bf16.msra.mxu0 %v1891_v12  ;;  %v1191_v12 = vmul.f32 1.442695, %v1152_v62 }
 0x383   : > { %4493 = vpow2.f32 %v1191_v12  ;;  %v1197_v12 = vmul.f32 1.442695, %v1155_v58 }
 0x384   : > { %4495 = vpow2.f32 %v1223_v16  ;;  %v1229_v16 = vmul.f32 1.442695, %v1171_v30  ;;  %v1506_v30 = vsub.f32 %v5480_v15, %v5803_v54 }
 0x385   : > { %4497 = vpow2.f32 %v1185_v27 }
 0x386   : > { %4499 = vpow2.f32 %v1217_v49  ;;  %v1546_v1 = vmul.f32 1.442695, %v1506_v30 }
 0x387   : > { %4501 = vpow2.f32 %v1197_v12 }
 0x388   : > { %4503 = vpow2.f32 %v1229_v16 }
 0x389   : > { %4505 = vpow2.f32 %v1540_v59  ;;  %v1166_v59 = vsub.f32 %v5558_v39, %v5746_v55  ;;  %v1153_v55 = vsub.f32 %v5480_v15, %v5790_v7 }
 0x38a   : > { %4507 = vpow2.f32 %v1546_v1 }
 0x38d   : > { %1634 = vrot.lane.b32.xlu0 %v5907_v22, %s4915_s28  ;;  %v5919_v35 = vpop.eup %4493 }
 0x38e   : > { %v1262_v23 = vsel %vm406_vm0, %v5919_v35, 0.0  ;;  %v5925_v62 = vpop.eup %4495 }
 0x38f   : > { %v1310_v41 = vsel %vm406_vm0, %v5925_v62, 0.0  ;;  %v5933_v52 = vpop.eup %4497 }
 0x390   : > { %v1253_v27 = vsel %vm406_vm0, %v5933_v52, 0.0  ;;  %v5937_v21 = vpop.eup %4499 }
 0x391   : > { %v1301_v17 = vsel %vm406_vm0, %v5937_v21, 0.0  ;;  %v5941_v44 = vpop.eup %4501 }
 0x392   : > { %v1271_v49 = vsel %vm406_vm0, %v5941_v44, 0.0  ;;  %v5945_v58 = vpop.eup %4503 }
 0x393   : > { %v1319_v12 = vsel %vm406_vm0, %v5945_v58, 0.0 }
 0x3a2   : > { %1263 = vadd.xlane.f32.xlu1 %v1262_v23  ;;  %v5947_v23 = vpop.eup %4505 }
 0x3a3   : > { %7297 = vst [vmem:[#allocation67_spill] sm:$0xff] %v5947_v23 }
 0x3a6   : > { %1311 = vadd.xlane.f32.xlu1 %v1310_v41  ;;  %v1150_v41 = vsub.f32 %v5476_v46, %v5741_v8 }
 0x3a8   : > { %v1187_v16 = vmul.f32 1.442695, %v1150_v41  ;;  %v1193_v41 = vmul.f32 1.442695, %v1153_v55 }
 0x3aa   : > { %4509 = vpow2.f32 %v1187_v16  ;;  %v1169_v16 = vsub.f32 %v5568_v45, %v5797_v18 }
 0x3ac   : > { %1254 = vadd.xlane.f32.xlu0 %v1253_v27  ;;  %v5959_v27 = vpop.eup %4507  ;;  %v1225_v7 = vmul.f32 1.442695, %v1169_v16 }
 0x3ad   : > { %7298 = vst [vmem:[#allocation68_spill] sm:$0xff] %v5959_v27 }
 0x3b0   : > { %1302 = vadd.xlane.f32.xlu0 %v1301_v17  ;;  %v1219_v17 = vmul.f32 1.442695, %v1166_v59  ;;  %v5977_v59 = vpop.permute.xlu1 %1630 }
 0x3b2   : > { %4511 = vpow2.f32 %v1219_v17 }
 0x3b4   : > { %1272 = vadd.xlane.f32.xlu0 %v1271_v49  ;;  %v1156_v49 = vsub.f32 %v5486_v24, %v5766_v31  ;;  %v5967_v30 = vpop.eup %4509 }
 0x3b5   : > { %v1256_v1 = vsel %vm406_vm0, %v5967_v30, 0.0 }
 0x3b6   : > { %v1199_v54 = vmul.f32 1.442695, %v1156_v49  ;;  %v1159_v49 = vsub.f32 %v5520_v32, %v5811_v48 }
 0x3b7   : > { %1636 = vrot.lane.b32.xlu1 %v5947_v23, %s4915_s28 }
 0x3b8   : > { %1320 = vadd.xlane.f32.xlu0 %v1319_v12  ;;  %v1172_v12 = vsub.f32 %v5570_v0, %v5774_v42  ;;  %4513 = vpow2.f32 %v1199_v54  ;;  %v1249_v54 = vpop.xlane.xlu0 %1248  ;;  %v1205_v55 = vmul.f32 1.442695, %v1159_v49 }
 0x3ba   : > { %v1231_v8 = vmul.f32 1.442695, %v1172_v12  ;;  %v5985_v12 = vpop.permute.xlu1 %1632 }
 0x3bb   : > { %7299 = vst [vmem:[#allocation69_spill] sm:$0xff] %v5985_v12 }
 0x3bc   : > { %4515 = vpow2.f32 %v1231_v8  ;;  %v5973_v31 = vpop.eup %4511  ;;  %v1297_v16 = vpop.xlane.xlu0 %1296 }
 0x3bd   : > { %v1304_v42 = vsel %vm406_vm0, %v5973_v31, 0.0  ;;  %4517 = vpow2.f32 %v1193_v41  ;;  %v1507_v41 = vsub.f32 %v5492_v47, %v5805_v13 }
 0x3be   : > { %4519 = vpow2.f32 %v1225_v7  ;;  %v1252_v48 = vpop.xlane.xlu1 %1251 }
 0x3bf   : > { %4521 = vpow2.f32 %v1205_v55  ;;  %v1548_v49 = vmul.f32 1.442695, %v1507_v41 }
 0x3c2   : > { %v5981_v17 = vpop.eup %4513  ;;  %v1300_v46 = vpop.xlane.xlu1 %1299 }
 0x3c3   : > { %v1274_v18 = vsel %vm406_vm0, %v5981_v17, 0.0 }
 0x3c6   : > { %v5989_v8 = vpop.eup %4515 }
 0x3c7   : > { %v5999_v7 = vpop.eup %4517 }
 0x3c8   : > { %v1265_v13 = vsel %vm406_vm0, %v5999_v7, 0.0  ;;  %v6005_v43 = vpop.eup %4519 }
 0x3c9   : > { %v1313_v25 = vsel %vm406_vm0, %v6005_v43, 0.0 }
 0x3ce   : > { %1642 = vrot.lane.b32.xlu0 %v5959_v27, %s4915_s28 }
 0x3db   : > { %1257 = vadd.xlane.f32.xlu1 %v1256_v1  ;;  %v1175_v1 = vsub.f32 %v5590_v51, %v5821_v26  ;;  %v1201_v26 = vmul.f32 1.442695, %v1157_v5 }
 0x3dd   : > { %v1237_v15 = vmul.f32 1.442695, %v1175_v1  ;;  %v6009_v1 = vpop.eup %4521 }
 0x3de   : > { %v1283_v5 = vsel %vm406_vm0, %v6009_v1, 0.0 }
 0x3df   : > { %1305 = vadd.xlane.f32.xlu1 %v1304_v42  ;;  %v1322_v42 = vsel %vm406_vm0, %v5989_v8, 0.0  ;;  %4523 = vpow2.f32 %v1237_v15  ;;  %v6011_v15 = vpop.permute.xlu1 %1628 }
 0x3e0   : > { %4525 = vpow2.f32 %v1548_v49  ;;  %7300 = vst [vmem:[#allocation70_spill] sm:$0xff] %v6011_v15 }
 0x3e1   : > { %4527 = vpow2.f32 %v1201_v26 }
 0x3e2   : > { %4529 = vrcp.f32 %v1252_v48 }
 0x3e3   : > { %1275 = vadd.xlane.f32.xlu1 %v1274_v18  ;;  %v6001_v18 = vpop.permute.xlu0 %1626 }
 0x3e7   : > { %1323 = vadd.xlane.f32.xlu1 %v1322_v42  ;;  %v1243_v55 = vpop.xlane.xlu0 %1242 }
 0x3e8   : > { %4531 = vrcp.f32 %v1243_v55 }
 0x3e9   : > { %v6015_v41 = vpop.eup %4523  ;;  %4533 = vrcp.f32 %v1249_v54 }
 0x3ea   : > { %7301 = vst [vmem:[#allocation71_spill] sm:$0xff] %v6015_v41  ;;  %v6017_v26 = vpop.eup %4525  ;;  %v1331_v48 = vsel %vm406_vm0, %v6015_v41, 0.0 }
 0x3eb   : > { %v1291_v42 = vpop.xlane.xlu0 %1290  ;;  %7302 = vst [vmem:[#allocation72_spill] sm:$0xff] %v6017_v26 }
 0x3ed   : > { %1266 = vadd.xlane.f32.xlu0 %v1265_v13  ;;  %v6023_v13 = vpop.eup %4527 }
 0x3ee   : > { %v1277_v54 = vsel %vm406_vm0, %v6023_v13, 0.0 }
 0x3f1   : > { %1314 = vadd.xlane.f32.xlu0 %v1313_v25  ;;  %v4530_v25 = vpop.eup %4529 }
 0x3f2   : > { %v1372_v27 = vmul.f32 %v4530_v25, %v5753_v57  ;;  %v1154_v57 = vsub.f32 %v5492_v47, %v5793_v29  ;;  %v1170_v29 = vsub.f32 %v5576_v36, %v5801_v50  ;;  %v7323_v47 = vld [vmem:[#allocation58_spill] sm:$0xff] }
 0x3f5   : > { %1284 = vadd.xlane.f32.xlu0 %v1283_v5  ;;  %v4532_v5 = vpop.eup %4531 }
 0x3f6   : > { %v1246_v49 = vpop.xlane.xlu1 %1245 }
 0x3f7   : > { %4535 = vrcp.f32 %v1246_v49  ;;  %v1508_v49 = vsub.f32 %v5478_v40, %v5776_v9  ;;  %v7324_v40 = vld [vmem:[#allocation62_spill] sm:$0xff] }
 0x3f8   : > { %4537 = vrcp.f32 %v1300_v46  ;;  %1644 = vrot.lane.b32.xlu1 %v6017_v26, %s4915_s28  ;;  %v4534_v46 = vpop.eup %4533 }
 0x3f9   : > { %4539 = vrcp.f32 %v1291_v42  ;;  %1332 = vadd.xlane.f32.xlu0 %v1331_v48  ;;  %v1369_v42 = vmul.f32 %v4532_v5, %v5772_v53  ;;  %v1550_v15 = vmul.f32 1.442695, %v1508_v49  ;;  %v7308_v5 = vld [vmem:[#allocation25_spill] sm:$0xff] }
 0x3fa   : > { %4541 = vrcp.f32 %v1297_v16  ;;  %v1294_v55 = vpop.xlane.xlu1 %1293 }
 0x3fb   : > { %4543 = vrcp.f32 %v1294_v55  ;;  %v1371_v55 = vmul.f32 %v4534_v46, %v5687_v60  ;;  %v1158_v46 = vsub.f32 %v7308_v5, %v5841_v6 }
 0x3fc   : > { %4545 = vpow2.f32 %v1550_v15 }
 0x3fd   : > { %1278 = vadd.xlane.f32.xlu0 %v1277_v54  ;;  %v6035_v12 = vpack.c.bf16 %v1372_v27, %v1371_v55 }
 0x401   : > { %v4536_v26 = vpop.eup %4535 }
 0x402   : > { %v4538_v23 = vpop.eup %4537  ;;  %v1370_v16 = vmul.f32 %v4536_v26, %v5845_v34 }
 0x403   : > { %v4540_v48 = vpop.eup %4539  ;;  %v1388_v9 = vmul.f32 %v4538_v23, %v5761_v56  ;;  %v1195_v56 = vmul.f32 1.442695, %v1154_v57 }
 0x404   : > { %v4542_v22 = vpop.eup %4541  ;;  %v6033_v54 = vpack.c.bf16 %v1370_v16, %v1369_v42  ;;  %v1385_v53 = vmul.f32 %v4540_v48, %v5780_v3  ;;  %v7306_v3 = vld [vmem:[#allocation24_spill] sm:$0xff]  ;;  %v1203_v42 = vmul.f32 1.442695, %v1158_v46 }
 0x405   : > { %v4544_v41 = vpop.eup %4543  ;;  %v1387_v60 = vmul.f32 %v4542_v22, %v5700_v28  ;;  %4547 = vpow2.f32 %v1195_v56  ;;  %v7305_v28 = vld [vmem:[#allocation55_spill] sm:$0xff] }
 0x406   : > { %4147 = vmatprep.mubr.msk.bf16.mxu0 %vm406_vm0, %v6033_v54  ;;  %v1386_v34 = vmul.f32 %v4544_v41, %v5853_v61  ;;  %v1227_v61 = vmul.f32 1.442695, %v1170_v29  ;;  %v1160_v22 = vsub.f32 %v7306_v3, %v7305_v28  ;;  %v6059_v23 = vpop.eup %4545  ;;  %v7307_v41 = vld [vmem:[#allocation36_spill] sm:$0xff] }
 0x407   : > { %4148 = vmatmul.mubr.msk.bf16.vlgmr.msra.gmra.mrb[16].mxu0 %vm406_vm0, %v6035_v12  ;;  %v6049_v26 = vpack.c.bf16 %v1388_v9, %v1387_v60  ;;  %v1176_v25 = vsub.f32 %v7307_v41, %v5823_v38  ;;  %v1173_v38 = vsub.f32 %v5594_v20, %v5843_v11  ;;  %v7309_v60 = vld [vmem:[#allocation49_spill] sm:$0xff] }
 0x408   : > { %v6047_v27 = vpack.c.bf16 %v1386_v34, %v1385_v53  ;;  %4549 = vpow2.f32 %v1227_v61  ;;  %v1207_v15 = vmul.f32 1.442695, %v1160_v22  ;;  %v1509_v56 = vsub.f32 %v5486_v24, %v7309_v60  ;;  %v7330_v24 = vld [vmem:[#allocation20_spill] sm:$0xff] }
 0x409   : > { %7304 = vst [vmem:[#allocation74_spill] sm:$0xff] %v6049_v26  ;;  %v1239_v50 = vmul.f32 1.442695, %v1176_v25  ;;  %v1233_v6 = vmul.f32 1.442695, %v1173_v38  ;;  %v7310_v25 = vld [vmem:[#allocation57_spill] sm:$0xff] }
 0x40a   : > { %7303 = vst [vmem:[#allocation73_spill] sm:$0xff] %v6047_v27  ;;  %4183 = vmatprep.mubr.msk.bf16.mxu1 %vm406_vm0, %v6047_v27  ;;  %4551 = vpow2.f32 %v1207_v15  ;;  %v1552_v28 = vmul.f32 1.442695, %v1509_v56  ;;  %v1510_v15 = vsub.f32 %v5524_v2, %v5849_v37  ;;  %v7312_v38 = vld [vmem:[#allocation19_spill] sm:$0xff] }
 0x40b   : > { %4184 = vmatmul.mubr.msk.bf16.vlgmr.msra.gmra.mrb[16].mxu1 %vm406_vm0, %v6049_v26  ;;  %4553 = vpow2.f32 %v1239_v50  ;;  %v1512_v50 = vsub.f32 %v5520_v32, %v7310_v25  ;;  %v7317_v25 = vld [vmem:[#allocation26_spill] sm:$0xff] }
 0x40c   : > { %4555 = vpow2.f32 %v1203_v42  ;;  %v1554_v46 = vmul.f32 1.442695, %v1510_v15  ;;  %v7316_v15 = vld [vmem:[#allocation45_spill] sm:$0xff] }
 0x40d   : > { %4557 = vpow2.f32 %v1233_v6  ;;  %v1558_v6 = vmul.f32 1.442695, %v1512_v50  ;;  %v1520_v50 = vsub.f32 %v7317_v25, %v7316_v15 }
 0x40e   : > { %4559 = vpow2.f32 %v1552_v28 }
 0x40f   : > { %v6067_v49 = vpop.eup %4547  ;;  %4561 = vpow2.f32 %v1554_v46 }
 0x410   : > { %v1268_v16 = vsel %vm406_vm0, %v6067_v49, 0.0  ;;  %4563 = vpow2.f32 %v1558_v6  ;;  %v1574_v6 = vmul.f32 1.442695, %v1520_v50  ;;  %v6133_v50 = vpop.permute.xlu1 %1640 }
 0x412   : > { %v6071_v48 = vpop.eup %4549 }
 0x413   : > { %1646 = vrot.lane.b32.xlu0 %v6059_v23, %s4915_s28  ;;  %v1316_v55 = vsel %vm406_vm0, %v6071_v48, 0.0 }
 0x414   : > { %v6077_v9 = vpop.eup %4551 }
 0x415   : > { %v1286_v57 = vsel %vm406_vm0, %v6077_v9, 0.0  ;;  %v6081_v53 = vpop.eup %4553 }
 0x416   : > { %v1334_v34 = vsel %vm406_vm0, %v6081_v53, 0.0  ;;  %v6085_v11 = vpop.eup %4555 }
 0x417   : > { %v1280_v29 = vsel %vm406_vm0, %v6085_v11, 0.0  ;;  %v6091_v61 = vpop.eup %4557 }
 0x418   : > { %v1325_v22 = vsel %vm406_vm0, %v6091_v61, 0.0  ;;  %v6099_v42 = vpop.eup %4559 }
 0x41c   : > { %1269 = vadd.xlane.f32.xlu1 %v1268_v16  ;;  %v7311_v16 = vld [vmem:[#allocation42_spill] sm:$0xff] }
 0x420   : > { %1317 = vadd.xlane.f32.xlu1 %v1316_v55  ;;  %v1514_v55 = vsub.f32 %v7312_v38, %v7311_v16 }
 0x422   : > { %v1562_v56 = vmul.f32 1.442695, %v1514_v55 }
 0x424   : > { %1287 = vadd.xlane.f32.xlu1 %v1286_v57  ;;  %v7313_v57 = vld [vmem:[#allocation38_spill] sm:$0xff]  ;;  %4565 = vpow2.f32 %v1562_v56 }
 0x428   : > { %1335 = vadd.xlane.f32.xlu1 %v1334_v34  ;;  %v7314_v34 = vld [vmem:[#allocation18_spill] sm:$0xff] }
 0x429   : > { %v1516_v60 = vsub.f32 %v7314_v34, %v7313_v57  ;;  %v7318_v57 = vld [vmem:[#allocation61_spill] sm:$0xff] }
 0x42a   : > { %v1174_v55 = vsub.f32 %v5608_v63, %v7318_v57 }
 0x42b   : > { %v1566_v37 = vmul.f32 1.442695, %v1516_v60  ;;  %v7319_v60 = vld [vmem:[#allocation53_spill] sm:$0xff] }
 0x42c   : > { %1281 = vadd.xlane.f32.xlu1 %v1280_v29  ;;  %v7315_v29 = vld [vmem:[#allocation47_spill] sm:$0xff]  ;;  %v1522_v56 = vsub.f32 %v5568_v45, %v7319_v60  ;;  %v1235_v2 = vmul.f32 1.442695, %v1174_v55 }
 0x42d   : > { %v1518_v28 = vsub.f32 %v5552_v10, %v7315_v29  ;;  %4567 = vpow2.f32 %v1566_v37  ;;  %v6123_v29 = vpop.permute.xlu0 %1638 }
 0x42e   : > { %v1578_v57 = vmul.f32 1.442695, %v1522_v56 }
 0x42f   : > { %v1570_v46 = vmul.f32 1.442695, %v1518_v28  ;;  %v7320_v28 = vld [vmem:[#allocation50_spill] sm:$0xff]  ;;  %v1264_v45 = vpop.xlane.xlu1 %1263 }
 0x430   : > { %v1524_v15 = vsub.f32 %v5564_v19, %v7320_v28 }
 0x431   : > { %4569 = vpow2.f32 %v1570_v46  ;;  %v1261_v32 = vpop.xlane.xlu0 %1260 }
 0x432   : > { %1326 = vadd.xlane.f32.xlu0 %v1325_v22  ;;  %v6109_v22 = vpop.eup %4561  ;;  %4571 = vpow2.f32 %v1574_v6  ;;  %v1582_v46 = vmul.f32 1.442695, %v1524_v15  ;;  %v7321_v6 = vld [vmem:[#allocation59_spill] sm:$0xff]  ;;  %v1513_v15 = vsub.f32 %v7306_v3, %v7323_v47 }
 0x433   : > { %v6115_v16 = vpop.eup %4563  ;;  %4573 = vpow2.f32 %v1235_v2  ;;  %v1528_v56 = vsub.f32 %v5590_v51, %v7321_v6  ;;  %v7322_v2 = vsub.f32 %v5594_v20, %v5859_v4  ;;  %v1312_v51 = vpop.xlane.xlu1 %1311 }
 0x434   : > { %v6125_v37 = vpop.eup %4565  ;;  %4575 = vpow2.f32 %v1578_v57 }
 0x435   : > { %v1309_v60 = vpop.xlane.xlu0 %1308  ;;  %4577 = vpow2.f32 %v1582_v46  ;;  %v1586_v28 = vmul.f32 1.442695, %v7322_v2  ;;  %v1590_v34 = vmul.f32 1.442695, %v1528_v56  ;;  %v1511_v46 = vsub.f32 %v7308_v5, %v7324_v40  ;;  %v7327_v5 = vld [vmem:[#allocation21_spill] sm:$0xff] }
 0x436   : > { %v1560_v2 = vmul.f32 1.442695, %v1513_v15  ;;  %v7326_v15 = vld [vmem:[#allocation43_spill] sm:$0xff] }
 0x437   : > { %v6131_v25 = vpop.eup %4567  ;;  %4579 = vpow2.f32 %v1586_v28  ;;  %v1556_v20 = vmul.f32 1.442695, %v1511_v46  ;;  %v6166_v40 = vpop.permute.xlu1 %1636  ;;  %v1515_v10 = vsub.f32 %v7327_v5, %v7326_v15 }
 0x438   : > { %4581 = vpow2.f32 %v1590_v34 }
 0x439   : > { %v6156_v6 = vpop.permute.xlu0 %1634  ;;  %4583 = vpow2.f32 %v1560_v2 }
 0x43a   : > { %4585 = vpow2.f32 %v1556_v20 }
 0x43b   : > { %v6137_v55 = vpop.eup %4569  ;;  %4587 = vrcp.f32 %v1264_v45  ;;  %v1564_v45 = vmul.f32 1.442695, %v1515_v10  ;;  %v7332_v10 = vld [vmem:[#allocation46_spill] sm:$0xff] }
 0x43c   : > { %v6146_v19 = vpop.eup %4571 }
 0x43d   : > { %1648 = vrot.lane.b32.xlu1 %v6099_v42, %s4915_s28  ;;  %v6152_v57 = vpop.eup %4573  ;;  %v1255_v56 = vpop.xlane.xlu0 %1254 }
 0x43e   : > { %v6158_v4 = vpop.eup %4575  ;;  %v1328_v47 = vsel %vm406_vm0, %v6152_v57, 0.0  ;;  %4589 = vrcp.f32 %v1255_v56 }
 0x43f   : > { %v6164_v3 = vpop.eup %4577  ;;  %4591 = vrcp.f32 %v1261_v32 }
 0x441   : > { %v6170_v28 = vpop.eup %4579  ;;  %v1303_v34 = vpop.xlane.xlu0 %1302 }
 0x442   : > { %7325 = vst [vmem:[#allocation55_spill] sm:$0xff] %v6170_v28  ;;  %v6176_v2 = vpop.eup %4581 }
 0x443   : > { %7328 = vst [vmem:[#allocation49_spill] sm:$0xff] %v6176_v2  ;;  %v6182_v32 = vpop.eup %4583 }
 0x444   : > { %v6184_v56 = vpop.eup %4585 }
 0x445   : > { %v4588_v5 = vpop.eup %4587 }
 0x448   : > { %1650 = vrot.lane.b32.xlu0 %v6109_v22, %s4915_s28  ;;  %v4590_v26 = vpop.eup %4589 }
 0x44c   : > { %1654 = vrot.lane.b32.xlu0 %v6115_v16, %s4915_s28 }
 0x450   : > { %1658 = vrot.lane.b32.xlu0 %v6125_v37, %s4915_s28 }
 0x454   : > { %1662 = vrot.lane.b32.xlu0 %v6131_v25, %s4915_s28 }
 0x458   : > { %1666 = vrot.lane.b32.xlu0 %v6137_v55, %s4915_s28 }
 0x45c   : > { %1670 = vrot.lane.b32.xlu0 %v6146_v19, %s4915_s28 }
 0x460   : > { %1674 = vrot.lane.b32.xlu0 %v6158_v4, %s4915_s28 }
 0x461   : > { %1329 = vadd.xlane.f32.xlu1 %v1328_v47  ;;  %v7329_v47 = vld [vmem:[#allocation39_spill] sm:$0xff] }
 0x462   : > { %v1517_v20 = vsub.f32 %v7330_v24, %v7329_v47  ;;  %v4592_v47 = vpop.eup %4591  ;;  %v1376_v24 = vmul.f32 %v4588_v5, %v5919_v35 }
 0x464   : > { %1678 = vrot.lane.b32.xlu0 %v6164_v3, %s4915_s28  ;;  %v1568_v15 = vmul.f32 1.442695, %v1517_v20  ;;  %v1373_v20 = vmul.f32 %v4590_v26, %v5933_v52 }
 0x468   : > { %v1258_v46 = vpop.xlane.xlu1 %1257  ;;  %1682 = vrot.lane.b32.xlu0 %v6170_v28, %s4915_s28 }
 0x469   : > { %4593 = vrcp.f32 %v1258_v46 }
 0x46a   : > { %4595 = vrcp.f32 %v1312_v51  ;;  %v7331_v51 = vld [vmem:[#allocation48_spill] sm:$0xff] }
 0x46b   : > { %4597 = vrcp.f32 %v1303_v34  ;;  %v1519_v46 = vsub.f32 %v5558_v39, %v7331_v51  ;;  %v1375_v39 = vmul.f32 %v4592_v47, %v5867_v33 }
 0x46c   : > { %4599 = vrcp.f32 %v1309_v60  ;;  %v1306_v38 = vpop.xlane.xlu1 %1305  ;;  %1686 = vrot.lane.b32.xlu0 %v6176_v2, %s4915_s28  ;;  %v1521_v60 = vsub.f32 %v5554_v14, %v7332_v10 }
 0x46d   : > { %4601 = vrcp.f32 %v1306_v38  ;;  %v1572_v38 = vmul.f32 1.442695, %v1519_v46  ;;  %v6202_v5 = vpack.c.bf16 %v1376_v24, %v1375_v39  ;;  %v7334_v46 = vld [vmem:[#allocation64_spill] sm:$0xff]  ;;  %v7336_v39 = vld [vmem:[#allocation51_spill] sm:$0xff] }
 0x46e   : > { %4603 = vpow2.f32 %v1564_v45  ;;  %v1576_v28 = vmul.f32 1.442695, %v1521_v60 }
 0x46f   : > { %4605 = vpow2.f32 %v1568_v15  ;;  %v7333_v15 = vld [vmem:[#allocation54_spill] sm:$0xff] }
 0x470   : > { %4607 = vpow2.f32 %v1572_v38  ;;  %v1523_v35 = vsub.f32 %v5576_v36, %v7333_v15 }
 0x471   : > { %4609 = vpow2.f32 %v1576_v28 }
 0x472   : > { %1652 = vrot.lane.b32.xlu1 %v6184_v56, %s4915_s28 }
 0x473   : > { %v4594_v34 = vpop.eup %4593 }
 0x474   : > { %v4596_v27 = vpop.eup %4595  ;;  %v1374_v45 = vmul.f32 %v4594_v34, %v5967_v30  ;;  %v7339_v34 = vld [vmem:[#allocation63_spill] sm:$0xff] }
 0x475   : > { %v4598_v51 = vpop.eup %4597  ;;  %v1392_v52 = vmul.f32 %v4596_v27, %v5925_v62  ;;  %v1525_v62 = vsub.f32 %v5570_v0, %v7336_v39  ;;  %v1580_v27 = vmul.f32 1.442695, %v1523_v35  ;;  %v7340_v38 = vsub.f32 %v5608_v63, %v7339_v34  ;;  %v1276_v39 = vpop.xlane.xlu1 %1275 }
 0x476   : > { %v4600_v2 = vpop.eup %4599  ;;  %1656 = vrot.lane.b32.xlu1 %v6182_v32, %s4915_s28  ;;  %v6198_v10 = vpack.c.bf16 %v1374_v45, %v1373_v20  ;;  %v1389_v33 = vmul.f32 %v4598_v51, %v5937_v21  ;;  %v1728_v35 = vsel %vm406_vm0, %v5977_v59, 0.0 }
 0x477   : > { %v4602_v14 = vpop.eup %4601  ;;  %v1391_v47 = vmul.f32 %v4600_v2, %v7334_v46  ;;  %4611 = vpow2.f32 %v1580_v27  ;;  %v7338_v2 = vld [vmem:[#allocation60_spill] sm:$0xff]  ;;  %v1588_v20 = vmul.f32 1.442695, %v7340_v38 }
 0x478   : > { %4151 = vmatprep.mubr.msk.bf16.mxu0 %vm406_vm0, %v6198_v10  ;;  %v1390_v30 = vmul.f32 %v4602_v14, %v5973_v31  ;;  %v6209_v26 = vpop.eup %4603  ;;  %v1584_v31 = vmul.f32 1.442695, %v1525_v62  ;;  %v1529_v60 = vsub.f32 %v7307_v41, %v7338_v2 }
 0x479   : > { %4152 = vmatmul.mubr.msk.bf16.gmra.mrb[20].mxu0 %vm406_vm0, %v6202_v5  ;;  %v6220_v21 = vpack.c.bf16 %v1392_v52, %v1391_v47  ;;  %v6224_v14 = vpop.eup %4605  ;;  %v1324_v27 = vpop.xlane.xlu1 %1323 }
 0x47a   : > { %1660 = vrot.lane.b32.xlu1 %v6209_v26, %s4915_s28  ;;  %v6216_v24 = vpack.c.bf16 %v1390_v30, %v1389_v33  ;;  %v6230_v28 = vpop.eup %4607  ;;  %4613 = vpow2.f32 %v1584_v31  ;;  %v1592_v51 = vmul.f32 1.442695, %v1529_v60  ;;  %v1273_v33 = vpop.xlane.xlu0 %1272 }
 0x47b   : > { %7337 = vst [vmem:[#allocation42_spill] sm:$0xff] %v6220_v21  ;;  %v6239_v45 = vpop.eup %4609  ;;  %4615 = vpow2.f32 %v1588_v20 }
 0x47c   : > { %7335 = vst [vmem:[#allocation57_spill] sm:$0xff] %v6216_v24  ;;  %4187 = vmatprep.mubr.msk.bf16.mxu1 %vm406_vm0, %v6216_v24  ;;  %4617 = vpow2.f32 %v1592_v51 }
 0x47d   : > { %4188 = vmatmul.mubr.msk.bf16.gmra.mrb[20].mxu1 %vm406_vm0, %v6220_v21  ;;  %v6263_v2 = vpop.permute.xlu1 %1644  ;;  %4619 = vrcp.f32 %v1276_v39 }
 0x47e   : > { %1664 = vrot.lane.b32.xlu1 %v6224_v14, %s4915_s28  ;;  %v1321_v46 = vpop.xlane.xlu0 %1320 }
 0x481   : > { %v6243_v15 = vpop.eup %4611 }
 0x482   : > { %1668 = vrot.lane.b32.xlu1 %v6230_v28, %s4915_s28  ;;  %v6261_v59 = vpop.permute.xlu0 %1642 }
 0x484   : > { %v6249_v52 = vpop.eup %4613 }
 0x485   : > { %v6253_v30 = vpop.eup %4615 }
 0x486   : > { %1672 = vrot.lane.b32.xlu1 %v6239_v45, %s4915_s28  ;;  %v6257_v47 = vpop.eup %4617  ;;  %v1267_v62 = vpop.xlane.xlu0 %1266 }
 0x487   : > { %7341 = vst [vmem:[#allocation38_spill] sm:$0xff] %v6257_v47  ;;  %4621 = vrcp.f32 %v1267_v62  ;;  %v4620_v51 = vpop.eup %4619 }
 0x488   : > { %4623 = vrcp.f32 %v1273_v33  ;;  %v1380_v41 = vmul.f32 %v4620_v51, %v5981_v17 }
 0x48a   : > { %1676 = vrot.lane.b32.xlu1 %v6243_v15, %s4915_s28  ;;  %v1315_v31 = vpop.xlane.xlu0 %1314 }
 0x48b   : > { %1729 = vadd.xlane.f32.xlu0 %v1728_v35 }
 0x48e   : > { %1680 = vrot.lane.b32.xlu1 %v6249_v52, %s4915_s28  ;;  %v1285_v60 = vpop.xlane.xlu0 %1284 }
 0x491   : > { %v4622_v21 = vpop.eup %4621 }
 0x492   : > { %1684 = vrot.lane.b32.xlu1 %v6253_v30, %s4915_s28  ;;  %v6265_v20 = vpop.xlane.xlu0 %1332  ;;  %v4624_v24 = vpop.eup %4623 }
 0x496   : > { %1688 = vrot.lane.b32.xlu1 %v6257_v47, %s4915_s28  ;;  %v1279_v62 = vpop.xlane.xlu0 %1278 }
 0x4a9   : > { %v1270_v34 = vpop.xlane.xlu1 %1269 }
 0x4aa   : > { %4625 = vrcp.f32 %v1270_v34  ;;  %v1377_v34 = vmul.f32 %v4622_v21, %v5999_v7 }
 0x4ab   : > { %4627 = vrcp.f32 %v1324_v27 }
 0x4ac   : > { %4629 = vrcp.f32 %v1315_v31  ;;  %v1379_v31 = vmul.f32 %v4624_v24, %v5941_v44 }
 0x4ad   : > { %4631 = vrcp.f32 %v1321_v46  ;;  %v1318_v38 = vpop.xlane.xlu1 %1317 }
 0x4ae   : > { %4633 = vrcp.f32 %v1318_v38  ;;  %v6275_v47 = vpack.c.bf16 %v1380_v41, %v1379_v31 }
 0x4b1   : > { %v1288_v35 = vpop.xlane.xlu1 %1287 }
 0x4b2   : > { %4635 = vrcp.f32 %v1288_v35 }
 0x4b3   : > { %4637 = vrcp.f32 %v1279_v62 }
 0x4b4   : > { %v4626_v63 = vpop.eup %4625  ;;  %4639 = vrcp.f32 %v1285_v60 }
 0x4b5   : > { %v4628_v39 = vpop.eup %4627  ;;  %v6268_v33 = vpop.xlane.xlu1 %1335  ;;  %v1378_v27 = vmul.f32 %v4626_v63, %v6067_v49 }
 0x4b6   : > { %v4630_v46 = vpop.eup %4629  ;;  %v1396_v17 = vmul.f32 %v4628_v39, %v5989_v8  ;;  %v1647_v49 = vpop.permute.xlu0 %1646 }
 0x4b7   : > { %v4632_v38 = vpop.eup %4631  ;;  %v6273_v0 = vpack.c.bf16 %v1378_v27, %v1377_v34  ;;  %v1393_v63 = vmul.f32 %v4630_v46, %v6005_v43 }
 0x4b8   : > { %v4634_v36 = vpop.eup %4633  ;;  %v1395_v44 = vmul.f32 %v4632_v38, %v5945_v58 }
 0x4b9   : > { %v1282_v51 = vpop.xlane.xlu1 %1281  ;;  %4155 = vmatprep.mubr.msk.bf16.mxu0 %vm406_vm0, %v6273_v0  ;;  %v1394_v7 = vmul.f32 %v4634_v36, %v6071_v48 }
 0x4ba   : > { %4641 = vrcp.f32 %v1282_v51  ;;  %4156 = vmatmul.mubr.msk.bf16.gmra.mrb[24].mxu0 %vm406_vm0, %v6275_v47  ;;  %v6287_v24 = vpack.c.bf16 %v1396_v17, %v1395_v44 }
 0x4bb   : > { %v6285_v41 = vpack.c.bf16 %v1394_v7, %v1393_v63  ;;  %v7344_v63 = vld [vmem:[#allocation69_spill] sm:$0xff]  ;;  %4643 = vrcp.f32 %v6268_v33 }
 0x4bc   : > { %7343 = vst [vmem:[#allocation45_spill] sm:$0xff] %v6287_v24  ;;  %v4636_v8 = vpop.eup %4635  ;;  %v1731_v7 = vsel %vm406_vm0, %v7344_v63, 0.0 }
 0x4bd   : > { %7342 = vst [vmem:[#allocation47_spill] sm:$0xff] %v6285_v41  ;;  %4191 = vmatprep.mubr.msk.bf16.mxu1 %vm406_vm0, %v6285_v41  ;;  %v4638_v36 = vpop.eup %4637  ;;  %v1384_v58 = vmul.f32 %v4636_v8, %v6077_v9 }
 0x4be   : > { %4192 = vmatmul.mubr.msk.bf16.gmra.mrb[24].mxu1 %vm406_vm0, %v6287_v24  ;;  %v4640_v48 = vpop.eup %4639  ;;  %v1381_v35 = vmul.f32 %v4638_v36, %v6023_v13 }
 0x4bf   : > { %v1327_v43 = vpop.xlane.xlu0 %1326  ;;  %v1383_v62 = vmul.f32 %v4640_v48, %v6009_v1  ;;  %v1722_v1 = vsel %vm406_vm0, %v6001_v18, 0.0 }
 0x4c0   : > { %4645 = vrcp.f32 %v1327_v43  ;;  %v1746_v43 = vsel %vm406_vm0, %v6261_v59, 0.0 }
 0x4c1   : > { %v6303_v46 = vpack.c.bf16 %v1384_v58, %v1383_v62  ;;  %v1734_v62 = vsel %vm406_vm0, %v6156_v6, 0.0  ;;  %4647 = vrcp.f32 %v6265_v20 }
 0x4c3   : > { %v6293_v21 = vpop.permute.xlu0 %1650 }
 0x4c4   : > { %v4642_v60 = vpop.eup %4641 }
 0x4c5   : > { %v1382_v39 = vmul.f32 %v4642_v60, %v6085_v11  ;;  %v1740_v60 = vsel %vm406_vm0, %v6123_v29, 0.0 }
 0x4c7   : > { %v6299_v34 = vpop.permute.xlu0 %1654  ;;  %v6301_v27 = vpack.c.bf16 %v1382_v39, %v1381_v35 }
 0x4c9   : > { %4159 = vmatprep.mubr.msk.bf16.mxu0 %vm406_vm0, %v6301_v27 }
 0x4ca   : > { %4160 = vmatmul.mubr.msk.bf16.gmra.mrb[28].mxu0 %vm406_vm0, %v6303_v46 }
 0x4cb   : > { %v1659_v31 = vpop.permute.xlu0 %1658 }
 0x4cc   : > { %v1770_v11 = vsel %vm406_vm0, %v1659_v31, 0.0  ;;  %v1649_v31 = vpop.permute.xlu1 %1648 }
 0x4cf   : > { %v1663_v9 = vpop.permute.xlu0 %1662 }
 0x4d0   : > { %v1776_v13 = vsel %vm406_vm0, %v1663_v9, 0.0 }
 0x4d1   : > { %1777 = vadd.xlane.f32.xlu0 %v1776_v13 }
 0x4d3   : > { %v1667_v17 = vpop.permute.xlu0 %1666 }
 0x4d4   : > { %v1782_v13 = vsel %vm406_vm0, %v1667_v17, 0.0 }
 0x4d5   : > { %1723 = vadd.xlane.f32.xlu0 %v1722_v1  ;;  %v1752_v1 = vsel %vm406_vm0, %v1647_v49, 0.0 }
 0x4d7   : > { %v1671_v58 = vpop.permute.xlu0 %1670 }
 0x4d8   : > { %v1788_v39 = vsel %vm406_vm0, %v1671_v58, 0.0 }
 0x4d9   : > { %1771 = vadd.xlane.f32.xlu0 %v1770_v11 }
 0x4da   : > { %v6313_v38 = vpop.f32.mrb[16].mxu0 }
 0x4db   : > { %v6315_v51 = vpop.f32.mrb[17].mxu0  ;;  %v1675_v9 = vpop.permute.xlu0 %1674 }
 0x4dc   : > { %v6319_v44 = vpop.f32.mrb[18].mxu0 }
 0x4dd   : > { %v6321_v8 = vpop.f32.mrb[19].mxu0  ;;  %1732 = vadd.xlane.f32.xlu0 %v1731_v7  ;;  %v4644_v7 = vpop.eup %4643 }
 0x4de   : > { %v6323_v36 = vpop.f32.mrb[16].mxu1  ;;  %v4646_v33 = vpop.eup %4645  ;;  %v1400_v20 = vmul.f32 %v4644_v7, %v6081_v53 }
 0x4df   : > { %v6325_v18 = vpop.f32.mrb[17].mxu1  ;;  %v1679_v11 = vpop.permute.xlu0 %1678  ;;  %v1397_v49 = vmul.f32 %v4646_v33, %v6091_v61  ;;  %v1764_v61 = vsel %vm406_vm0, %v6299_v34, 0.0  ;;  %v1743_v34 = vsel %vm406_vm0, %v6133_v50, 0.0 }
 0x4e0   : > { %v6327_v48 = vpop.f32.mrb[18].mxu1  ;;  %v1800_v6 = vsel %vm406_vm0, %v1679_v11, 0.0  ;;  %v4648_v58 = vpop.eup %4647  ;;  %v1794_v11 = vsel %vm406_vm0, %v1675_v9, 0.0  ;;  %v7348_v9 = vld [vmem:[#allocation70_spill] sm:$0xff] }
 0x4e1   : > { %v6331_v35 = vpop.f32.mrb[19].mxu1  ;;  %1741 = vadd.xlane.f32.xlu0 %v1740_v60  ;;  %v1725_v7 = vsel %vm406_vm0, %v7348_v9, 0.0 }
 0x4e5   : > { %1789 = vadd.xlane.f32.xlu0 %v1788_v39 }
 0x4e9   : > { %1735 = vadd.xlane.f32.xlu0 %v1734_v62 }
 0x4ed   : > { %1783 = vadd.xlane.f32.xlu0 %v1782_v13  ;;  %v1683_v13 = vpop.permute.xlu0 %1682 }
 0x4ee   : > { %v1330_v29 = vpop.xlane.xlu1 %1329 }
 0x4ef   : > { %4649 = vrcp.f32 %v1330_v29  ;;  %v7345_v29 = vld [vmem:[#allocation71_spill] sm:$0xff] }
 0x4f1   : > { %1753 = vadd.xlane.f32.xlu0 %v1752_v1  ;;  %v1399_v1 = vmul.f32 %v4648_v58, %v7345_v29  ;;  %v1737_v29 = vsel %vm406_vm0, %v6166_v40, 0.0 }
 0x4f2   : > { %v6340_v63 = vpop.permute.xlu1 %1652 }
 0x4f3   : > { %v6352_v24 = vpack.c.bf16 %v1400_v20, %v1399_v1 }
 0x4f5   : > { %1801 = vadd.xlane.f32.xlu0 %v1800_v6  ;;  %7347 = vst [vmem:[#allocation53_spill] sm:$0xff] %v6352_v24 }
 0x4f6   : > { %v1657_v60 = vpop.permute.xlu1 %1656 }
 0x4f7   : > { %v1767_v40 = vsel %vm406_vm0, %v1657_v60, 0.0 }
 0x4f9   : > { %v4650_v17 = vpop.eup %4649  ;;  %1747 = vadd.xlane.f32.xlu0 %v1746_v43 }
 0x4fa   : > { %v1661_v39 = vpop.permute.xlu1 %1660  ;;  %v1398_v62 = vmul.f32 %v4650_v17, %v6152_v57  ;;  %v1687_v57 = vpop.permute.xlu0 %1686  ;;  %v1758_v17 = vsel %vm406_vm0, %v6293_v21, 0.0  ;;  %v1755_v21 = vsel %vm406_vm0, %v1649_v31, 0.0  ;;  %v1761_v31 = vsel %vm406_vm0, %v6340_v63, 0.0 }
 0x4fb   : > { %v1812_v33 = vsel %vm406_vm0, %v1687_v57, 0.0  ;;  %v1773_v43 = vsel %vm406_vm0, %v1661_v39, 0.0 }
 0x4fc   : > { %v6350_v6 = vpack.c.bf16 %v1398_v62, %v1397_v49  ;;  %v1806_v49 = vsel %vm406_vm0, %v1683_v13, 0.0  ;;  %v1749_v13 = vsel %vm406_vm0, %v6263_v2, 0.0 }
 0x4fd   : > { %1795 = vadd.xlane.f32.xlu0 %v1794_v11 }
 0x4fe   : > { %7346 = vst [vmem:[#allocation61_spill] sm:$0xff] %v6350_v6  ;;  %v1665_v59 = vpop.permute.xlu1 %1664  ;;  %4195 = vmatprep.mubr.msk.bf16.mxu1 %vm406_vm0, %v6350_v6 }
 0x4ff   : > { %4196 = vmatmul.mubr.msk.bf16.gmra.mrb[28].mxu1 %vm406_vm0, %v6352_v24  ;;  %v1779_v53 = vsel %vm406_vm0, %v1665_v59, 0.0 }
 0x500   : > { %1780 = vadd.xlane.f32.xlu1 %v1779_v53 }
 0x501   : > { %1765 = vadd.xlane.f32.xlu0 %v1764_v61 }
 0x502   : > { %v1669_v58 = vpop.permute.xlu1 %1668 }
 0x503   : > { %v1785_v1 = vsel %vm406_vm0, %v1669_v58, 0.0 }
 0x504   : > { %1726 = vadd.xlane.f32.xlu1 %v1725_v7 }
 0x505   : > { %1813 = vadd.xlane.f32.xlu0 %v1812_v33 }
 0x506   : > { %v1673_v20 = vpop.permute.xlu1 %1672 }
 0x507   : > { %v1791_v62 = vsel %vm406_vm0, %v1673_v20, 0.0 }
 0x508   : > { %1774 = vadd.xlane.f32.xlu1 %v1773_v43 }
 0x509   : > { %1759 = vadd.xlane.f32.xlu0 %v1758_v17 }
 0x50a   : > { %v1677_v39 = vpop.permute.xlu1 %1676 }
 0x50b   : > { %v1797_v53 = vsel %vm406_vm0, %v1677_v39, 0.0  ;;  %v7351_v39 = vld [vmem:[#allocation41_spill] sm:$0xff] }
 0x50c   : > { %1744 = vadd.xlane.f32.xlu1 %v1743_v34 }
 0x50d   : > { %1807 = vadd.xlane.f32.xlu0 %v1806_v49 }
 0x50e   : > { %v1681_v11 = vpop.permute.xlu1 %1680 }
 0x50f   : > { %v1803_v50 = vsel %vm406_vm0, %v1681_v11, 0.0 }
 0x510   : > { %1792 = vadd.xlane.f32.xlu1 %v1791_v62  ;;  %v7350_v62 = vld [vmem:[#allocation40_spill] sm:$0xff] }
 0x512   : > { %v1685_v59 = vpop.permute.xlu1 %1684 }
 0x513   : > { %v1809_v9 = vsel %vm406_vm0, %v1685_v59, 0.0 }
 0x514   : > { %1738 = vadd.xlane.f32.xlu1 %v1737_v29 }
 0x516   : > { %v1689_v61 = vpop.permute.xlu1 %1688 }
 0x517   : > { %v1815_v57 = vsel %vm406_vm0, %v1689_v61, 0.0 }
 0x518   : > { %1786 = vadd.xlane.f32.xlu1 %v1785_v1 }
 0x51c   : > { %1756 = vadd.xlane.f32.xlu1 %v1755_v21 }
 0x520   : > { %1804 = vadd.xlane.f32.xlu1 %v1803_v50 }
 0x524   : > { %1750 = vadd.xlane.f32.xlu1 %v1749_v13 }
 0x528   : > { %1798 = vadd.xlane.f32.xlu1 %v1797_v53 }
 0x52c   : > { %1768 = vadd.xlane.f32.xlu1 %v1767_v40 }
 0x530   : > { %1816 = vadd.xlane.f32.xlu1 %v1815_v57 }
 0x534   : > { %1762 = vadd.xlane.f32.xlu1 %v1761_v31 }
 0x538   : > { %1810 = vadd.xlane.f32.xlu1 %v1809_v9 }
 0x53a   : > { %2568 = vxpose.xlu0.c.b16.start [1/2] (short) (narrow) %v6033_v54, 32 }
 0x53e   : > { %2569 = vxpose.xlu0.c.b16.end [2/2] (short) (narrow) %v6035_v12, 32  ;;  %v1730_v12 = vpop.xlane.xlu0 %1729 }
 0x53f   : > { %4651 = vrcp.f32 %v1730_v12 }
 0x542   : > { %2726 = vxpose.xlu0.c.b16.start [1/2] (short) (narrow) %v6273_v0, 32 }
 0x546   : > { %2727 = vxpose.xlu0.c.b16.end [2/2] (short) (narrow) %v6275_v47, 32 }
 0x549   : > { %v4652_v20 = vpop.eup %4651 }
 0x54a   : > { %v1852_v29 = vmul.f32 %v4652_v20, %v7350_v62 }
 0x54c   : > { %v6388_v2 = vpop.f32.mrb[20].mxu0 }
 0x54d   : > { %v6390_v60 = vpop.f32.mrb[21].mxu0 }
 0x54e   : > { %v6392_v7 = vpop.f32.mrb[22].mxu0 }
 0x54f   : > { %v6394_v33 = vpop.f32.mrb[23].mxu0 }
 0x550   : > { %v6396_v63 = vpop.f32.mrb[20].mxu1 }
 0x551   : > { %v6398_v58 = vpop.f32.mrb[21].mxu1 }
 0x552   : > { %v6400_v43 = vpop.f32.mrb[22].mxu1 }
 0x553   : > { %7349 = vst [vmem:[#allocation50_spill] sm:$0xff] %v6400_v43  ;;  %v6402_v54 = vpop.f32.mrb[23].mxu1 }
 0x55e   : > { %v6404_v0 = vpop.xlane.xlu0 %1777 }
 0x562   : > { %v1724_v47 = vpop.xlane.xlu0 %1723 }
 0x565   : > { %2647 = vxpose.xlu1.c.b16.start [1/2] (short) (narrow) %v6198_v10, 32 }
 0x566   : > { %v1772_v17 = vpop.xlane.xlu0 %1771 }
 0x569   : > { %2648 = vxpose.xlu1.c.b16.end [2/2] (short) (narrow) %v6202_v5, 32 }
 0x56a   : > { %v1733_v34 = vpop.xlane.xlu0 %1732 }
 0x56b   : > { %4653 = vrcp.f32 %v1733_v34 }
 0x56c   : > { %4655 = vrcp.f32 %v1724_v47 }
 0x56d   : > { %2805 = vxpose.xlu1.c.b16.start [1/2] (short) (narrow) %v6301_v27, 32 }
 0x56e   : > { %v1742_v10 = vpop.xlane.xlu0 %1741 }
 0x571   : > { %2806 = vxpose.xlu1.c.b16.end [2/2] (short) (narrow) %v6303_v46, 32 }
 0x572   : > { %v6413_v11 = vpop.xlane.xlu0 %1789 }
 0x575   : > { %v4654_v49 = vpop.eup %4653 }
 0x576   : > { %v1853_v1 = vmul.f32 %v4654_v49, %v7351_v39  ;;  %v1736_v50 = vpop.xlane.xlu0 %1735  ;;  %v4656_v49 = vpop.eup %4655 }
 0x578   : > { %v1911_v21 = vpack.c.bf16 %v1853_v1, %v1852_v29  ;;  %v7357_v1 = vld [vmem:[#allocation44_spill] sm:$0xff] }
 0x57a   : > { %1944 = vrot.lane.b32.xlu1 %v1911_v21, %s4915_s28  ;;  %v1784_v59 = vpop.xlane.xlu0 %1783  ;;  %v1850_v21 = vmul.f32 %v4656_v49, %v7357_v1 }
 0x57e   : > { %v1754_v34 = vpop.xlane.xlu0 %1753 }
 0x582   : > { %v6433_v62 = vpop.xlane.xlu0 %1801 }
 0x58d   : > { %v6415_v5 = vpop.xlane.xlu1 %1780  ;;  %v6417_v13 = vpop.f32.mrb[24].mxu0 }
 0x58e   : > { %v6419_v27 = vpop.f32.mrb[25].mxu0 }
 0x58f   : > { %v6421_v46 = vpop.f32.mrb[26].mxu0 }
 0x590   : > { %v6423_v53 = vpop.f32.mrb[27].mxu0 }
 0x591   : > { %v1727_v40 = vpop.xlane.xlu1 %1726  ;;  %v6425_v61 = vpop.f32.mrb[24].mxu1 }
 0x592   : > { %7352 = vst [vmem:[#allocation59_spill] sm:$0xff] %v6425_v61  ;;  %4657 = vrcp.f32 %v1727_v40  ;;  %v6427_v57 = vpop.f32.mrb[25].mxu1  ;;  %v7358_v40 = vld [vmem:[#allocation52_spill] sm:$0xff] }
 0x593   : > { %7353 = vst [vmem:[#allocation58_spill] sm:$0xff] %v6427_v57  ;;  %v6429_v31 = vpop.f32.mrb[26].mxu1  ;;  %4659 = vrcp.f32 %v1772_v17 }
 0x594   : > { %7354 = vst [vmem:[#allocation62_spill] sm:$0xff] %v6429_v31  ;;  %v6431_v9 = vpop.f32.mrb[27].mxu1 }
 0x595   : > { %7355 = vst [vmem:[#allocation43_spill] sm:$0xff] %v6431_v9  ;;  %v1775_v12 = vpop.xlane.xlu1 %1774 }
 0x596   : > { %4661 = vrcp.f32 %v1775_v12 }
 0x597   : > { %4663 = vrcp.f32 %v1736_v50 }
 0x599   : > { %v1745_v20 = vpop.xlane.xlu1 %1744 }
 0x59a   : > { %4665 = vrcp.f32 %v1745_v20 }
 0x59c   : > { %v4658_v47 = vpop.eup %4657 }
 0x59d   : > { %v6435_v29 = vpop.xlane.xlu1 %1792  ;;  %v6437_v39 = vpop.f32.mrb[28].mxu0  ;;  %v1851_v24 = vmul.f32 %v4658_v47, %v7358_v40 }
 0x59e   : > { %7356 = vst [vmem:[#allocation39_spill] sm:$0xff] %v6437_v39  ;;  %v4660_v6 = vpop.eup %4659  ;;  %v6441_v17 = vpop.f32.mrb[29].mxu0 }
 0x59f   : > { %7359 = vst [vmem:[#allocation48_spill] sm:$0xff] %v6441_v17  ;;  %v6443_v41 = vpop.f32.mrb[30].mxu0  ;;  %v1910_v31 = vpack.c.bf16 %v1851_v24, %v1850_v21  ;;  %v1866_v39 = vmul.f32 %v4660_v6, %v6125_v37  ;;  %v1748_v47 = vpop.xlane.xlu0 %1747  ;;  %v7362_v6 = vld [vmem:[#allocation66_spill] sm:$0xff] }
 0x5a0   : > { %7360 = vst [vmem:[#allocation46_spill] sm:$0xff] %v6443_v41  ;;  %v4662_v12 = vpop.eup %4661  ;;  %v6445_v61 = vpop.f32.mrb[31].mxu0 }
 0x5a1   : > { %7361 = vst [vmem:[#allocation54_spill] sm:$0xff] %v6445_v61  ;;  %v1739_v9 = vpop.xlane.xlu1 %1738  ;;  %1942 = vrot.lane.b32.xlu0 %v1910_v31, %s4915_s28  ;;  %v1867_v49 = vmul.f32 %v4662_v12, %v6209_v26  ;;  %v4664_v20 = vpop.eup %4663 }
 0x5a2   : > { %4667 = vrcp.f32 %v1739_v9  ;;  %v1854_v26 = vmul.f32 %v4664_v20, %v7362_v6  ;;  %v7363_v9 = vld [vmem:[#allocation67_spill] sm:$0xff] }
 0x5a3   : > { %4669 = vrcp.f32 %v1742_v10  ;;  %v1918_v1 = vpack.c.bf16 %v1867_v49, %v1866_v39  ;;  %v1796_v24 = vpop.xlane.xlu0 %1795  ;;  %v7364_v49 = vld [vmem:[#allocation65_spill] sm:$0xff] }
 0x5a4   : > { %4671 = vrcp.f32 %v1784_v59  ;;  %v4666_v21 = vpop.eup %4665 }
 0x5a5   : > { %v1787_v40 = vpop.xlane.xlu1 %1786  ;;  %1958 = vrot.lane.b32.xlu0 %v1918_v1, %s4915_s28  ;;  %v1857_v61 = vmul.f32 %v4666_v21, %v7364_v49  ;;  %v7366_v21 = vld [vmem:[#allocation68_spill] sm:$0xff] }
 0x5a6   : > { %4673 = vrcp.f32 %v1787_v40  ;;  %v7365_v40 = vld [vmem:[#allocation56_spill] sm:$0xff] }
 0x5a7   : > { %4675 = vrcp.f32 %v1754_v34  ;;  %v1766_v39 = vpop.xlane.xlu0 %1765 }
 0x5a9   : > { %v1757_v50 = vpop.xlane.xlu1 %1756 }
 0x5aa   : > { %4677 = vrcp.f32 %v1757_v50 }
 0x5ab   : > { %4679 = vrcp.f32 %v1748_v47 }
 0x5ac   : > { %v4668_v31 = vpop.eup %4667 }
 0x5ad   : > { %v4670_v17 = vpop.eup %4669  ;;  %v1805_v37 = vpop.xlane.xlu1 %1804  ;;  %v1855_v10 = vmul.f32 %v4668_v31, %v7363_v9 }
 0x5ae   : > { %v4672_v12 = vpop.eup %4671  ;;  %v1856_v50 = vmul.f32 %v4670_v17, %v7365_v40 }
 0x5af   : > { %v1912_v59 = vpack.c.bf16 %v1855_v10, %v1854_v26  ;;  %v1870_v41 = vmul.f32 %v4672_v12, %v6137_v55  ;;  %v1814_v26 = vpop.xlane.xlu0 %1813 }
 0x5b0   : > { %v4674_v1 = vpop.eup %4673  ;;  %v1913_v20 = vpack.c.bf16 %v1857_v61, %v1856_v50 }
 0x5b1   : > { %v1751_v34 = vpop.xlane.xlu1 %1750  ;;  %1946 = vrot.lane.b32.xlu1 %v1912_v59, %s4915_s28  ;;  %v1871_v57 = vmul.f32 %v4674_v1, %v6230_v28  ;;  %v4676_v43 = vpop.eup %4675 }
 0x5b2   : > { %4681 = vrcp.f32 %v1751_v34  ;;  %v1860_v47 = vmul.f32 %v4676_v43, %v6059_v23  ;;  %v7367_v23 = vld [vmem:[#allocation72_spill] sm:$0xff] }
 0x5b3   : > { %v1920_v31 = vpack.c.bf16 %v1871_v57, %v1870_v41  ;;  %4683 = vrcp.f32 %v1796_v24  ;;  %v1760_v61 = vpop.xlane.xlu0 %1759 }
 0x5b4   : > { %v4678_v6 = vpop.eup %4677 }
 0x5b5   : > { %v1799_v9 = vpop.xlane.xlu1 %1798  ;;  %1948 = vrot.lane.b32.xlu1 %v1913_v20, %s4915_s28  ;;  %1962 = vrot.lane.b32.xlu0 %v1920_v31, %s4915_s28  ;;  %v1861_v17 = vmul.f32 %v4678_v6, %v6099_v42  ;;  %v4680_v41 = vpop.eup %4679 }
 0x5b6   : > { %4685 = vrcp.f32 %v1799_v9  ;;  %v1858_v10 = vmul.f32 %v4680_v41, %v7366_v21 }
 0x5b7   : > { %v1915_v55 = vpack.c.bf16 %v1861_v17, %v1860_v47  ;;  %4687 = vrcp.f32 %v1766_v39  ;;  %v1808_v39 = vpop.xlane.xlu0 %1807 }
 0x5b8   : > { %4689 = vrcp.f32 %v6415_v5 }
 0x5b9   : > { %v1769_v28 = vpop.xlane.xlu1 %1768  ;;  %1952 = vrot.lane.b32.xlu1 %v1915_v55, %s4915_s28 }
 0x5ba   : > { %4691 = vrcp.f32 %v1769_v28 }
 0x5bb   : > { %4693 = vrcp.f32 %v6404_v0 }
 0x5bc   : > { %v4682_v57 = vpop.eup %4681  ;;  %4695 = vrcp.f32 %v6435_v29 }
 0x5bd   : > { %v1817_v24 = vpop.xlane.xlu1 %1816  ;;  %v1859_v43 = vmul.f32 %v4682_v57, %v7367_v23  ;;  %v4684_v42 = vpop.eup %4683  ;;  %4697 = vrcp.f32 %v6413_v11 }
 0x5be   : > { %4699 = vrcp.f32 %v1760_v61  ;;  %v1874_v0 = vmul.f32 %v4684_v42, %v6158_v4 }
 0x5bf   : > { %v1914_v5 = vpack.c.bf16 %v1859_v43, %v1858_v10  ;;  %4701 = vrcp.f32 %v1805_v37  ;;  %v7368_v10 = vld [vmem:[#allocation55_spill] sm:$0xff] }
 0x5c0   : > { %v4686_v12 = vpop.eup %4685 }
 0x5c1   : > { %v1763_v59 = vpop.xlane.xlu1 %1762  ;;  %1950 = vrot.lane.b32.xlu0 %v1914_v5, %s4915_s28  ;;  %v1875_v49 = vmul.f32 %v4686_v12, %v6243_v15  ;;  %v4688_v1 = vpop.eup %4687  ;;  %v7369_v12 = vld [vmem:[#allocation38_spill] sm:$0xff] }
 0x5c2   : > { %4703 = vrcp.f32 %v1763_v59  ;;  %v4690_v34 = vpop.eup %4689  ;;  %v1864_v37 = vmul.f32 %v4688_v1, %v6115_v16 }
 0x5c3   : > { %4705 = vrcp.f32 %v6433_v62  ;;  %v1922_v29 = vpack.c.bf16 %v1875_v49, %v1874_v0  ;;  %v1869_v15 = vmul.f32 %v4690_v34, %v6224_v14  ;;  %v7370_v0 = vld [vmem:[#allocation49_spill] sm:$0xff] }
 0x5c4   : > { %v4692_v40 = vpop.eup %4691  ;;  %4707 = vrcp.f32 %v1808_v39 }
 0x5c5   : > { %4709 = vrcp.f32 %v1817_v24  ;;  %v1811_v11 = vpop.xlane.xlu1 %1810  ;;  %1966 = vrot.lane.b32.xlu0 %v1922_v29, %s4915_s28  ;;  %v1865_v50 = vmul.f32 %v4692_v40, %v6182_v32  ;;  %v4694_v20 = vpop.eup %4693  ;;  %v7380_v40 = vld [vmem:[#allocation73_spill] sm:$0xff] }
 0x5c6   : > { %4711 = vrcp.f32 %v1811_v11  ;;  %v4696_v31 = vpop.eup %4695  ;;  %v1868_v62 = vmul.f32 %v4694_v20, %v6131_v25 }
 0x5c7   : > { %v1917_v4 = vpack.c.bf16 %v1865_v50, %v1864_v37  ;;  %4713 = vrcp.f32 %v1814_v26  ;;  %v4698_v6 = vpop.eup %4697  ;;  %v1873_v55 = vmul.f32 %v4696_v31, %v6239_v45  ;;  %v7381_v50 = vld [vmem:[#allocation74_spill] sm:$0xff] }
 0x5c8   : > { %v4700_v9 = vpop.eup %4699  ;;  %v1919_v17 = vpack.c.bf16 %v1869_v15, %v1868_v62  ;;  %v1872_v32 = vmul.f32 %v4698_v6, %v6146_v19 }
 0x5c9   : > { %1956 = vrot.lane.b32.xlu1 %v1917_v4, %s4915_s28  ;;  %v4702_v47 = vpop.eup %4701  ;;  %v1862_v14 = vmul.f32 %v4700_v9, %v6109_v22 }
 0x5ca   : > { %v1921_v57 = vpack.c.bf16 %v1873_v55, %v1872_v32  ;;  %v1877_v25 = vmul.f32 %v4702_v47, %v6249_v52 }
 0x5cc   : > { %v4704_v16 = vpop.eup %4703 }
 0x5cd   : > { %v4706_v28 = vpop.eup %4705  ;;  %1960 = vrot.lane.b32.xlu1 %v1919_v17, %s4915_s28  ;;  %v1863_v26 = vmul.f32 %v4704_v16, %v6184_v56 }
 0x5ce   : > { %v4708_v41 = vpop.eup %4707  ;;  %v1876_v45 = vmul.f32 %v4706_v28, %v6164_v3 }
 0x5cf   : > { %v4710_v61 = vpop.eup %4709  ;;  %v1916_v24 = vpack.c.bf16 %v1863_v26, %v1862_v14  ;;  %v1878_v23 = vmul.f32 %v4708_v41, %v7368_v10  ;;  %v7382_v14 = vld [vmem:[#allocation6_spill] sm:$0xff]  ;;  %v7383_v41 = vld [vmem:[#allocation9_spill] sm:$0xff] }
 0x5d0   : > { %v4712_v21 = vpop.eup %4711  ;;  %v1923_v42 = vpack.c.bf16 %v1877_v25, %v1876_v45  ;;  %v1881_v39 = vmul.f32 %v4710_v61, %v7369_v12  ;;  %v7385_v25 = vld [vmem:[#allocation7_spill] sm:$0xff] }
 0x5d1   : > { %1964 = vrot.lane.b32.xlu1 %v1921_v57, %s4915_s28  ;;  %1954 = vrot.lane.b32.xlu0 %v1916_v24, %s4915_s28  ;;  %v1879_v19 = vmul.f32 %v4712_v21, %v6253_v30  ;;  %v4714_v22 = vpop.eup %4713  ;;  %v2576_v30 = vpop.trf.xlu0  ;;  %v7384_v57 = vld [vmem:[#allocation8_spill] sm:$0xff] }
 0x5d2   : > { %v4197_v43 = vpop.f32.mrb[28].mxu1  ;;  %v1880_v49 = vmul.f32 %v4714_v22, %v7370_v0 }
 0x5d3   : > { %v2313_v56 = vpop.f32.mrb[29].mxu1  ;;  %v1924_v5 = vpack.c.bf16 %v1879_v19, %v1878_v23 }
 0x5d4   : > { %v4198_v59 = vpop.f32.mrb[30].mxu1  ;;  %v1925_v3 = vpack.c.bf16 %v1881_v39, %v1880_v49 }
 0x5d5   : > { %v2316_v52 = vpop.f32.mrb[31].mxu1  ;;  %1968 = vrot.lane.b32.xlu1 %v1923_v42, %s4915_s28  ;;  %1970 = vrot.lane.b32.xlu0 %v1924_v5, %s4915_s28  ;;  %v7387_v5 = vld [vmem:[#allocation10_spill] sm:$0xff] }
 0x5d9   : > { %1972 = vrot.lane.b32.xlu1 %v1925_v3, %s4915_s28  ;;  %2428 = vrot.lane.b32.xlu0 %v6313_v38, %s4916_s30  ;;  %v6529_v38 = vpop.trf.xlu1  ;;  %s4917_s28 = smov 96   ;;  %v7388_v3 = vld [vmem:[#allocation13_spill] sm:$0xff] }
 0x5dd   : > { %2426 = vrot.lane.b32.xlu1 %v6321_v8, %s4916_s30  ;;  %2460 = vrot.lane.b32.xlu0 %v6323_v36, %s4916_s30  ;;  %v6539_v8 = vpop.trf.xlu0  ;;  %v6541_v36 = vpop.trf.xlu1 }
 0x5e1   : > { %2430 = vrot.lane.b32.xlu1 %v6319_v44, %s4916_s30  ;;  %2424 = vrot.lane.b32.xlu0 %v6315_v51, %s4916_s30  ;;  %v7371_v51 = vld [vmem:[#allocation50_spill] sm:$0xff] }
 0x5e2   : > { %v7372_v44 = vld [vmem:[#allocation58_spill] sm:$0xff] }
 0x5e5   : > { %2434 = vrot.lane.b32.xlu1 %v6394_v33, %s4916_s30  ;;  %2456 = vrot.lane.b32.xlu0 %v6325_v18, %s4916_s30  ;;  %v7373_v18 = vld [vmem:[#allocation46_spill] sm:$0xff]  ;;  %v7377_v33 = vld [vmem:[#allocation43_spill] sm:$0xff] }
 0x5e9   : > { %2438 = vrot.lane.b32.xlu1 %v6392_v7, %s4916_s30  ;;  %2436 = vrot.lane.b32.xlu0 %v6388_v2, %s4916_s30  ;;  %v6549_v2 = vpop.trf.xlu1  ;;  %v7376_v7 = vld [vmem:[#allocation48_spill] sm:$0xff] }
 0x5ed   : > { %2442 = vrot.lane.b32.xlu1 %v6423_v53, %s4916_s30  ;;  %2468 = vrot.lane.b32.xlu0 %v6396_v63, %s4916_s30  ;;  %v7378_v63 = vld [vmem:[#allocation59_spill] sm:$0xff] }
 0x5f1   : > { %2446 = vrot.lane.b32.xlu1 %v6421_v46, %s4916_s30  ;;  %2432 = vrot.lane.b32.xlu0 %v6390_v60, %s4916_s30  ;;  %v7375_v60 = vld [vmem:[#allocation54_spill] sm:$0xff] }
 0x5f5   : > { %2458 = vrot.lane.b32.xlu1 %v6331_v35, %s4916_s30  ;;  %2464 = vrot.lane.b32.xlu0 %v6398_v58, %s4916_s30  ;;  %v7374_v35 = vld [vmem:[#allocation39_spill] sm:$0xff] }
 0x5f9   : > { %2466 = vrot.lane.b32.xlu1 %v6402_v54, %s4916_s30  ;;  %2444 = vrot.lane.b32.xlu0 %v6417_v13, %s4916_s30  ;;  %v6561_v54 = vpop.trf.xlu1  ;;  %v7379_v13 = vld [vmem:[#allocation62_spill] sm:$0xff] }
 0x5fd   : > { %2462 = vrot.lane.b32.xlu1 %v6327_v48, %s4916_s30  ;;  %2440 = vrot.lane.b32.xlu0 %v6419_v27, %s4916_s30  ;;  %v6547_v48 = vpop.trf.xlu0  ;;  %v1945_v46 = vpop.permute.xlu1 %1944 }
 0x601   : > { %2470 = vrot.lane.b32.xlu1 %v7371_v51, %s4916_s30  ;;  %2472 = vrot.lane.b32.xlu0 %v7372_v44, %s4916_s30  ;;  %v6559_v58 = vpop.trf.xlu0  ;;  %v7389_v51 = vld [vmem:[#allocation11_spill] sm:$0xff] }
 0x605   : > { %2454 = vrot.lane.b32.xlu1 %v7373_v18, %s4916_s30  ;;  %2452 = vrot.lane.b32.xlu0 %v7374_v35, %s4916_s30 }
 0x609   : > { %2450 = vrot.lane.b32.xlu1 %v7375_v60, %s4916_s30  ;;  %2448 = vrot.lane.b32.xlu0 %v7376_v7, %s4916_s30  ;;  %v7390_v7 = vld [vmem:[#allocation19_spill] sm:$0xff] }
 0x60d   : > { %2474 = vrot.lane.b32.xlu1 %v7377_v33, %s4916_s30  ;;  %2476 = vrot.lane.b32.xlu0 %v7378_v63, %s4916_s30  ;;  %v7391_v33 = vld [vmem:[#allocation21_spill] sm:$0xff] }
 0x611   : > { %2478 = vrot.lane.b32.xlu1 %v7379_v13, %s4916_s30  ;;  %2484 = vrot.lane.b32.xlu0 %v4197_v43, %s4916_s30 }
 0x613   : > { %v1943_v27 = vpop.permute.xlu0 %1942 }
 0x614   : > { %4163 = vmatprep.mubr.msk.bf16.mxu0 %vm406_vm0, %v1943_v27 }
 0x615   : > { %2486 = vrot.lane.b32.xlu1 %v4198_v59, %s4916_s30  ;;  %2480 = vrot.lane.b32.xlu0 %v2313_v56, %s4916_s30  ;;  %v7386_v56 = vld [vmem:[#allocation12_spill] sm:$0xff] }
 0x616   : > { %4164 = vmatmul.mubr.msk.bf16.gmra.mrb[32].mxu0 %vm406_vm0, %v1945_v46 }
 0x617   : > { %v1959_v53 = vpop.permute.xlu0 %1958 }
 0x618   : > { %4199 = vmatprep.mubr.msk.bf16.mxu1 %vm406_vm0, %v1959_v53  ;;  %v7392_v53 = vld [vmem:[#allocation16_spill] sm:$0xff] }
 0x619   : > { %2482 = vrot.lane.b32.xlu1 %v2316_v52, %s4916_s30 }
 0x623   : > { %v1947_v1 = vpop.permute.xlu1 %1946 }
 0x624   : > { %4167 = vmatprep.mubr.msk.bf16.mxu0 %vm406_vm0, %v1947_v1 }
 0x627   : > { %v1949_v34 = vpop.permute.xlu1 %1948  ;;  %v1963_v29 = vpop.permute.xlu0 %1962 }
 0x628   : > { %4168 = vmatmul.mubr.msk.bf16.gmra.mrb[36].mxu0 %vm406_vm0, %v1949_v34  ;;  %v7393_v34 = vld [vmem:[#allocation27_spill] sm:$0xff] }
 0x62b   : > { %v1953_v37 = vpop.permute.xlu1 %1952 }
 0x633   : > { %2884 = vxpose.xlu0.c.b16.start [1/2] (short) (narrow) %v7380_v40, 32  ;;  %v1951_v11 = vpop.permute.xlu0 %1950  ;;  %v7394_v40 = vld [vmem:[#allocation29_spill] sm:$0xff] }
 0x634   : > { %4171 = vmatprep.mubr.msk.bf16.mxu0 %vm406_vm0, %v1951_v11 }
 0x635   : > { %4172 = vmatmul.mubr.msk.bf16.gmra.mrb[40].mxu0 %vm406_vm0, %v1953_v37  ;;  %v7395_v37 = vld [vmem:[#allocation14_spill] sm:$0xff] }
 0x637   : > { %2885 = vxpose.xlu0.c.b16.end [2/2] (short) (narrow) %v7381_v50, 32  ;;  %v1967_v4 = vpop.permute.xlu0 %1966 }
 0x63b   : > { %v1957_v20 = vpop.permute.xlu1 %1956 }
 0x63f   : > { %v1961_v15 = vpop.permute.xlu1 %1960 }
 0x640   : > { %4200 = vmatmul.mubr.msk.bf16.gmra.mrb[32].mxu1 %vm406_vm0, %v1961_v15 }
 0x641   : > { %4203 = vmatprep.mubr.msk.bf16.mxu1 %vm406_vm0, %v1963_v29 }
 0x643   : > { %v1965_v31 = vpop.permute.xlu1 %1964  ;;  %v1955_v6 = vpop.permute.xlu0 %1954 }
 0x644   : > { %4175 = vmatprep.mubr.msk.bf16.mxu0 %vm406_vm0, %v1955_v6  ;;  %v7396_v6 = vld [vmem:[#allocation18_spill] sm:$0xff] }
 0x645   : > { %4176 = vmatmul.mubr.msk.bf16.gmra.mrb[44].mxu0 %vm406_vm0, %v1957_v20 }
 0x646   : > { %4219 = vmatprep.mubr.msk.bf16.mxu0 %vm406_vm0, %v2576_v30 }
 0x647   : > { %v1969_v62 = vpop.permute.xlu1 %1968  ;;  %v1971_v9 = vpop.permute.xlu0 %1970 }
 0x648   : > { %4204 = vmatmul.mubr.msk.bf16.gmra.mrb[36].mxu1 %vm406_vm0, %v1965_v31 }
 0x649   : > { %4207 = vmatprep.mubr.msk.bf16.mxu1 %vm406_vm0, %v1967_v4 }
 0x64b   : > { %v1973_v47 = vpop.permute.xlu1 %1972  ;;  %v2429_v17 = vpop.permute.xlu0 %2428 }
 0x64c   : > { %v2522_v26 = vsub.f32 %v7382_v14, %v2429_v17  ;;  %v7398_v17 = vld [vmem:[#allocation20_spill] sm:$0xff] }
 0x64f   : > { %v2427_v55 = vpop.permute.xlu1 %2426  ;;  %v2461_v16 = vpop.permute.xlu0 %2460 }
 0x650   : > { %4208 = vmatmul.mubr.msk.bf16.gmra.mrb[40].mxu1 %vm406_vm0, %v1969_v62  ;;  %v2521_v61 = vsub.f32 %v7383_v41, %v2427_v55  ;;  %v2538_v62 = vsub.f32 %v7396_v6, %v2461_v16  ;;  %v7402_v16 = vld [vmem:[#allocation24_spill] sm:$0xff] }
 0x651   : > { %4211 = vmatprep.mubr.msk.bf16.mxu1 %vm406_vm0, %v1971_v9  ;;  %v7397_v9 = vld [vmem:[#allocation17_spill] sm:$0xff] }
 0x653   : > { %v2431_v28 = vpop.permute.xlu1 %2430  ;;  %v2425_v32 = vpop.permute.xlu0 %2424 }
 0x654   : > { %v2523_v24 = vsub.f32 %v7384_v57, %v2431_v28  ;;  %v2520_v21 = vsub.f32 %v7385_v25, %v2425_v32  ;;  %v7399_v28 = vld [vmem:[#allocation15_spill] sm:$0xff] }
 0x656   : > { %v2553_v45 = vpack.c.bf16 %v2523_v24, %v2522_v26  ;;  %v2552_v10 = vpack.c.bf16 %v2521_v61, %v2520_v21 }
 0x657   : > { %v2435_v23 = vpop.permute.xlu1 %2434  ;;  %v2457_v19 = vpop.permute.xlu0 %2456 }
 0x658   : > { %4212 = vmatmul.mubr.msk.bf16.gmra.mrb[44].mxu1 %vm406_vm0, %v1973_v47  ;;  %2588 = vrot.lane.b32.xlu1 %v2553_v45, %s4917_s28  ;;  %v2525_v30 = vsub.f32 %v7388_v3, %v2435_v23  ;;  %v7400_v45 = vld [vmem:[#allocation26_spill] sm:$0xff] }
 0x659   : > { %4227 = vmatprep.mubr.msk.bf16.mxu1 %vm406_vm0, %v6529_v38  ;;  %v2536_v38 = vsub.f32 %v7390_v7, %v2457_v19  ;;  %v7401_v19 = vld [vmem:[#allocation28_spill] sm:$0xff] }
 0x65b   : > { %v2439_v22 = vpop.permute.xlu1 %2438  ;;  %v2437_v43 = vpop.permute.xlu0 %2436 }
 0x65c   : > { %v2527_v42 = vsub.f32 %v7386_v56, %v2439_v22  ;;  %v2526_v12 = vsub.f32 %v7387_v5, %v2437_v43 }
 0x65e   : > { %v2555_v39 = vpack.c.bf16 %v2527_v42, %v2526_v12 }
 0x65f   : > { %v2443_v59 = vpop.permute.xlu1 %2442  ;;  %v2469_v52 = vpop.permute.xlu0 %2468 }
 0x660   : > { %v2529_v47 = vsub.f32 %v7397_v9, %v2443_v59  ;;  %v2542_v23 = vsub.f32 %v7400_v45, %v2469_v52  ;;  %v7403_v59 = vld [vmem:[#allocation22_spill] sm:$0xff] }
 0x663   : > { %v2447_v0 = vpop.permute.xlu1 %2446  ;;  %v2433_v49 = vpop.permute.xlu0 %2432 }
 0x664   : > { %v2524_v44 = vsub.f32 %v7389_v51, %v2433_v49  ;;  %v2531_v1 = vsub.f32 %v7392_v53, %v2447_v0 }
 0x666   : > { %v2554_v18 = vpack.c.bf16 %v2525_v30, %v2524_v44 }
 0x667   : > { %v2459_v35 = vpop.permute.xlu1 %2458  ;;  %v2465_v60 = vpop.permute.xlu0 %2464 }
 0x668   : > { %v2537_v63 = vsub.f32 %v7391_v33, %v2459_v35  ;;  %v2540_v29 = vsub.f32 %v7393_v34, %v2465_v60  ;;  %v7404_v60 = vld [vmem:[#allocation25_spill] sm:$0xff] }
 0x66a   : > { %v2560_v13 = vpack.c.bf16 %v2537_v63, %v2536_v38  ;;  %v7405_v38 = vld [vmem:[#allocation23_spill] sm:$0xff] }
 0x66b   : > { %v2467_v27 = vpop.permute.xlu1 %2466  ;;  %v2445_v46 = vpop.permute.xlu0 %2444 }
 0x66c   : > { %v2541_v11 = vsub.f32 %v7394_v40, %v2467_v27  ;;  %v2530_v50 = vsub.f32 %v7395_v37, %v2445_v46  ;;  %2902 = vrot.lane.b32.xlu0 %v2560_v13, %s4917_s28 }
 0x66e   : > { %v2562_v20 = vpack.c.bf16 %v2541_v11, %v2540_v29  ;;  %v2557_v4 = vpack.c.bf16 %v2531_v1, %v2530_v50  ;;  %v7406_v1 = vld [vmem:[#allocation31_spill] sm:$0xff]  ;;  %v7407_v11 = vld [vmem:[#allocation33_spill] sm:$0xff] }
 0x66f   : > { %v2463_v15 = vpop.permute.xlu1 %2462  ;;  %v2441_v31 = vpop.permute.xlu0 %2440 }
 0x670   : > { %v2539_v55 = vsub.f32 %v7398_v17, %v2463_v15  ;;  %v2528_v32 = vsub.f32 %v7399_v28, %v2441_v31 }
 0x672   : > { %v2561_v26 = vpack.c.bf16 %v2539_v55, %v2538_v62  ;;  %v2556_v61 = vpack.c.bf16 %v2529_v47, %v2528_v32  ;;  %v7408_v62 = vld [vmem:[#allocation30_spill] sm:$0xff]  ;;  %v7409_v55 = vld [vmem:[#allocation32_spill] sm:$0xff] }
 0x673   : > { %v2471_v24 = vpop.permute.xlu1 %2470  ;;  %v2473_v21 = vpop.permute.xlu0 %2472 }
 0x674   : > { %v2543_v22 = vsub.f32 %v7401_v19, %v2471_v24  ;;  %2904 = vrot.lane.b32.xlu1 %v2561_v26, %s4917_s28  ;;  %v2544_v29 = vsub.f32 %v7406_v1, %v2473_v21  ;;  %v7410_v24 = vld [vmem:[#allocation34_spill] sm:$0xff] }
 0x676   : > { %v2563_v43 = vpack.c.bf16 %v2543_v22, %v2542_v23  ;;  %v7411_v22 = vld [vmem:[#allocation36_spill] sm:$0xff] }
 0x677   : > { %v2455_v42 = vpop.permute.xlu1 %2454  ;;  %v2453_v12 = vpop.permute.xlu0 %2452 }
 0x678   : > { %v2535_v0 = vsub.f32 %v7402_v16, %v2455_v42  ;;  %v2534_v49 = vsub.f32 %v7403_v59, %v2453_v12  ;;  %2586 = vrot.lane.b32.xlu1 %v2552_v10, %s4917_s28  ;;  %2983 = vrot.lane.b32.xlu0 %v2563_v43, %s4917_s28  ;;  %v7412_v12 = vld [vmem:[#allocation35_spill] sm:$0xff] }
 0x67a   : > { %v2559_v30 = vpack.c.bf16 %v2535_v0, %v2534_v49  ;;  %v7413_v49 = vld [vmem:[#allocation37_spill] sm:$0xff] }
 0x67b   : > { %v2451_v44 = vpop.permute.xlu1 %2450  ;;  %v2449_v35 = vpop.permute.xlu0 %2448 }
 0x67c   : > { %v2533_v52 = vsub.f32 %v7404_v60, %v2451_v44  ;;  %v2532_v63 = vsub.f32 %v7405_v38, %v2449_v35  ;;  %2667 = vrot.lane.b32.xlu1 %v2555_v39, %s4917_s28 }
 0x67e   : > { %v2558_v13 = vpack.c.bf16 %v2533_v52, %v2532_v63  ;;  %v3203_v52 = vsub.f32 0.0, %v7384_v57  ;;  %v3211_v57 = vsub.f32 0.0, %v7392_v53 }
 0x67f   : > { %v2475_v27 = vpop.permute.xlu1 %2474  ;;  %v2477_v46 = vpop.permute.xlu0 %2476 }
 0x680   : > { %v2545_v50 = vsub.f32 %v7407_v11, %v2475_v27  ;;  %2665 = vrot.lane.b32.xlu1 %v2554_v18, %s4917_s28  ;;  %v2546_v47 = vsub.f32 %v7408_v62, %v2477_v46  ;;  %v3238_v63 = vmul.f32 1.442695, %v3203_v52  ;;  %v3207_v27 = vsub.f32 0.0, %v7386_v56 }
 0x682   : > { %v2564_v10 = vpack.c.bf16 %v2545_v50, %v2544_v29  ;;  %v3201_v29 = vsub.f32 0.0, %v7383_v41  ;;  %v3246_v50 = vmul.f32 1.442695, %v3207_v27  ;;  %v3204_v41 = vsub.f32 0.0, %v7389_v51  ;;  %v7416_v27 = vld [vmem:[#allocation57_spill] sm:$0xff] }
 0x683   : > { %v2479_v15 = vpop.permute.xlu1 %2478  ;;  %v2485_v31 = vpop.permute.xlu0 %2484 }
 0x684   : > { %v2547_v32 = vsub.f32 %v7409_v55, %v2479_v15  ;;  %2981 = vrot.lane.b32.xlu1 %v2562_v20, %s4917_s28  ;;  %v2550_v23 = vsub.f32 %v7410_v24, %v2485_v31  ;;  %v3240_v53 = vmul.f32 1.442695, %v3204_v41 }
 0x686   : > { %v2565_v26 = vpack.c.bf16 %v2547_v32, %v2546_v47  ;;  %v7414_v47 = vld [vmem:[#allocation47_spill] sm:$0xff]  ;;  %v3254_v32 = vmul.f32 1.442695, %v3211_v57 }
 0x687   : > { %v2487_v39 = vpop.permute.xlu1 %2486  ;;  %v2481_v18 = vpop.permute.xlu0 %2480 }
 0x688   : > { %v2551_v43 = vsub.f32 %v7411_v22, %v2487_v39  ;;  %2746 = vrot.lane.b32.xlu1 %v2557_v4, %s4917_s28  ;;  %3062 = vrot.lane.b32.xlu0 %v2565_v26, %s4917_s28  ;;  %v2548_v0 = vsub.f32 %v7412_v12, %v2481_v18  ;;  %v3200_v4 = vsub.f32 0.0, %v7385_v25  ;;  %v3206_v39 = vsub.f32 0.0, %v7387_v5 }
 0x68a   : > { %v2567_v21 = vpack.c.bf16 %v2551_v43, %v2550_v23  ;;  %v3232_v35 = vmul.f32 1.442695, %v3200_v4  ;;  %v7415_v23 = vld [vmem:[#allocation45_spill] sm:$0xff]  ;;  %v3215_v43 = vsub.f32 0.0, %v7402_v16 }
 0x68b   : > { %v2483_v42 = vpop.permute.xlu1 %2482 }
 0x68c   : > { %v2549_v44 = vsub.f32 %v7413_v49, %v2483_v42  ;;  %2744 = vrot.lane.b32.xlu1 %v2556_v61, %s4917_s28  ;;  %3141 = vrot.lane.b32.xlu0 %v2567_v21, %s4917_s28  ;;  %4715 = vpow2.f32 %v3232_v35  ;;  %v3205_v61 = vsub.f32 0.0, %v7388_v3  ;;  %v3244_v42 = vmul.f32 1.442695, %v3206_v39 }
 0x68d   : > { %4717 = vpow2.f32 %v3238_v63  ;;  %v3210_v35 = vsub.f32 0.0, %v7395_v37  ;;  %v3219_v63 = vsub.f32 0.0, %v7398_v17  ;;  %v3212_v37 = vsub.f32 0.0, %v7405_v38 }
 0x68e   : > { %v2566_v20 = vpack.c.bf16 %v2549_v44, %v2548_v0  ;;  %v3242_v46 = vmul.f32 1.442695, %v3205_v61  ;;  %v3208_v0 = vsub.f32 0.0, %v7399_v28  ;;  %v3262_v44 = vmul.f32 1.442695, %v3215_v43 }
 0x68f   : > { %v4918_v28 = vmov 96   ;;  %v3221_v17 = vsub.f32 0.0, %v7394_v40 }
 0x690   : > { %3060 = vrot.lane.b32.xlu1 %v2564_v10, %s4917_s28  ;;  %3139 = vrot.lane.b32.xlu0 %v2566_v20, %s4917_s28  ;;  %4719 = vpow2.f32 %v3242_v46  ;;  %v3234_v10 = vmul.f32 1.442695, %v3201_v29  ;;  %v3248_v16 = vmul.f32 1.442695, %v3208_v0 }
 0x691   : > { %4721 = vpow2.f32 %v3246_v50  ;;  %v3274_v38 = vmul.f32 1.442695, %v3221_v17 }
 0x692   : > { %4723 = vpow2.f32 %v3234_v10  ;;  %v7417_v10 = vld [vmem:[#allocation42_spill] sm:$0xff] }
 0x694   : > { %2825 = vrot.lane.b32.xlu1 %v2559_v30, %s4917_s28  ;;  %v3209_v30 = vsub.f32 0.0, %v7397_v9  ;;  %v3213_v9 = vsub.f32 0.0, %v7404_v60  ;;  %v3217_v60 = vsub.f32 0.0, %v7391_v33 }
 0x696   : > { %v4716_v25 = vpop.eup %4715  ;;  %v3250_v15 = vmul.f32 1.442695, %v3209_v30  ;;  %v3258_v18 = vmul.f32 1.442695, %v3213_v9  ;;  %v3266_v61 = vmul.f32 1.442695, %v3217_v60 }
 0x697   : > { %v3296_v31 = vadd.f32 1.0, %v4716_v25  ;;  %v4718_v3 = vpop.eup %4717  ;;  %v3252_v30 = vmul.f32 1.442695, %v3210_v35 }
 0x698   : > { %2823 = vrot.lane.b32.xlu1 %v2558_v13, %s4917_s28  ;;  %v3202_v13 = vsub.f32 0.0, %v7382_v14  ;;  %4725 = vpow2.f32 %v3250_v15  ;;  %v3299_v26 = vadd.f32 1.0, %v4718_v3  ;;  %s3829_s28 = sshll.u32 %s6819_s6, 4  ;;  %s6974_s28 = int_to_ptr.vmem [resolvable:$true] %s3829_s28 }
 0x699   : > { %4727 = vrcp.f32 %v3296_v31  ;;  %s4851_s7 = scalar_lea.vmem %s6974_s28, 2048 }
 0x69a   : > { %v3236_v56 = vmul.f32 1.442695, %v3202_v13  ;;  %v4720_v14 = vpop.eup %4719  ;;  %v3270_v13 = vmul.f32 1.442695, %v3219_v63  ;;  %p4852_p13 = scmp.ne.s32.totalorder %s6974_s28, %s4851_s7 }
 0x69b   : > { %v3301_v21 = vadd.f32 1.0, %v4720_v14  ;;  %v4722_v51 = vpop.eup %4721 }
 0x69c   : > { %4729 = vpow2.f32 %v3236_v56  ;;  %v4724_v5 = vpop.eup %4723  ;;  %v3303_v20 = vadd.f32 1.0, %v4722_v51  ;;  %v3256_v56 = vmul.f32 1.442695, %v3212_v37  ;;  %v3222_v37 = vsub.f32 0.0, %v7400_v45  ;;  %p4853_p0 = pnand %p4852_p13, %p4986_p6 }
 0x69d   : > { %4731 = vpow2.f32 %v3254_v32  ;;  %v3297_v46 = vadd.f32 1.0, %v4724_v5  ;;  %v7418_v32 = vld [vmem:[#allocation61_spill] sm:$0xff] }
 0x69e   : > { %4733 = vrcp.f32 %v3299_v26  ;;  %v3223_v26 = vsub.f32 0.0, %v7401_v19  ;;  %v3225_v19 = vsub.f32 0.0, %v7407_v11  ;;  %p4854_p1 = pneg %p4853_p0 }
 0x69f   : > { %4735 = vpow2.f32 %v3240_v53 }
 0x6a0   : > { %4737 = vpow2.f32 %v3258_v18  ;;  %v7419_v18 = vld [vmem:[#allocation53_spill] sm:$0xff]  ;;  %v3278_v51 = vmul.f32 1.442695, %v3223_v26  ;;  %v3282_v63 = vmul.f32 1.442695, %v3225_v19 }
 0x6a1   : > { %4739 = vrcp.f32 %v3301_v21 }
 0x6a2   : > { %v4726_v4 = vpop.eup %4725  ;;  %4741 = vpow2.f32 %v3244_v42 }
 0x6a3   : > { %v4728_v52 = vpop.eup %4727  ;;  %4743 = vpow2.f32 %v3262_v44  ;;  %v3305_v29 = vadd.f32 1.0, %v4726_v4  ;;  %v3218_v44 = vsub.f32 0.0, %v7396_v6  ;;  %v3220_v6 = vsub.f32 0.0, %v7393_v34 }
 0x6a4   : > { %4745 = vrcp.f32 %v3303_v20 }
 0x6a5   : > { %4747 = vpow2.f32 %v3248_v16 }
 0x6a6   : > { %v4730_v33 = vpop.eup %4729  ;;  %4749 = vpow2.f32 %v3266_v61  ;;  %v3268_v61 = vmul.f32 1.442695, %v3218_v44 }
 0x6a7   : > { %v4732_v50 = vpop.eup %4731  ;;  %v3298_v57 = vadd.f32 1.0, %v4730_v33  ;;  %4751 = vrcp.f32 %v3297_v46 }
 0x6a8   : > { %v4734_v25 = vpop.eup %4733  ;;  %v3307_v31 = vadd.f32 1.0, %v4732_v50  ;;  %4753 = vrcp.f32 %v3305_v29 }
 0x6a9   : > { %v4736_v15 = vpop.eup %4735  ;;  %4755 = vpow2.f32 %v3252_v30  ;;  %v3229_v30 = vsub.f32 0.0, %v7413_v49  ;;  %v3276_v49 = vmul.f32 1.442695, %v3222_v37 }
 0x6aa   : > { %v4738_v3 = vpop.eup %4737  ;;  %4757 = vpow2.f32 %v3270_v13  ;;  %v3300_v40 = vadd.f32 1.0, %v4736_v15 }
 0x6ab   : > { %v4740_v41 = vpop.eup %4739  ;;  %4759 = vrcp.f32 %v3298_v57  ;;  %v3309_v14 = vadd.f32 1.0, %v4738_v3  ;;  %v3231_v57 = vsub.f32 0.0, %v7411_v22  ;;  %v3224_v22 = vsub.f32 0.0, %v7406_v1 }
 0x6ac   : > { %v4742_v9 = vpop.eup %4741  ;;  %4761 = vrcp.f32 %v3307_v31  ;;  %v3290_v31 = vmul.f32 1.442695, %v3229_v30 }
 0x6ad   : > { %v4744_v39 = vpop.eup %4743  ;;  %4763 = vpow2.f32 %v3256_v56  ;;  %v3302_v43 = vadd.f32 1.0, %v4742_v9 }
 0x6ae   : > { %3042 = vxpose.xlu0.c.b16.start [1/2] (short) (narrow) %v7414_v47, 32  ;;  %v3214_v47 = vsub.f32 0.0, %v7403_v59  ;;  %v4746_v59 = vpop.eup %4745  ;;  %4765 = vpow2.f32 %v3274_v38  ;;  %v3311_v0 = vadd.f32 1.0, %v4744_v39 }
 0x6af   : > { %v4748_v21 = vpop.eup %4747  ;;  %4767 = vrcp.f32 %v3300_v40 }
 0x6b0   : > { %v3260_v53 = vmul.f32 1.442695, %v3214_v47  ;;  %v4750_v42 = vpop.eup %4749  ;;  %4769 = vrcp.f32 %v3309_v14  ;;  %v3304_v20 = vadd.f32 1.0, %v4748_v21 }
 0x6b1   : > { %v4752_v60 = vpop.eup %4751  ;;  %v3313_v35 = vadd.f32 1.0, %v4750_v42 }
 0x6b2   : > { %3043 = vxpose.xlu0.c.b16.end [2/2] (short) (narrow) %v7415_v23, 32  ;;  %v3216_v23 = vsub.f32 0.0, %v7390_v7  ;;  %4771 = vpow2.f32 %v3260_v53  ;;  %v4754_v5 = vpop.eup %4753  ;;  %v3280_v53 = vmul.f32 1.442695, %v3224_v22 }
 0x6b3   : > { %4773 = vrcp.f32 %v3302_v43  ;;  %v4756_v4 = vpop.eup %4755 }
 0x6b4   : > { %v3264_v7 = vmul.f32 1.442695, %v3216_v23  ;;  %4775 = vpow2.f32 %v3278_v51  ;;  %v4758_v16 = vpop.eup %4757  ;;  %v3306_v46 = vadd.f32 1.0, %v4756_v4  ;;  %v3226_v23 = vsub.f32 0.0, %v7408_v62 }
 0x6b5   : > { %4777 = vrcp.f32 %v3311_v0  ;;  %v4760_v11 = vpop.eup %4759  ;;  %v3228_v0 = vsub.f32 0.0, %v7412_v12 }
 0x6b6   : > { %4779 = vpow2.f32 %v3264_v7  ;;  %v3284_v42 = vmul.f32 1.442695, %v3226_v23 }
 0x6b7   : > { %4781 = vrcp.f32 %v3304_v20  ;;  %v3230_v20 = vsub.f32 0.0, %v7410_v24 }
 0x6b8   : > { %4783 = vrcp.f32 %v3313_v35  ;;  %v3288_v35 = vmul.f32 1.442695, %v3228_v0 }
 0x6b9   : > { %4785 = vpow2.f32 %v3282_v63 }
 0x6ba   : > { %4787 = vpow2.f32 %v3268_v61 }
 0x6bb   : > { %2963 = vxpose.xlu1.c.b16.start [1/2] (short) (narrow) %v7416_v27, 32  ;;  %4325 = vset.pattern.permute.xlu0 %v4918_v28  ;;  %v4762_v27 = vpop.eup %4761  ;;  %4789 = vrcp.f32 %v3306_v46 }
 0x6bc   : > { %3394 = vperm.xlu0 %4325, %v4728_v52   ;;  %v3227_v52 = vsub.f32 0.0, %v7409_v55  ;;  %v4764_v33 = vpop.eup %4763 }
 0x6bd   : > { %v4766_v29 = vpop.eup %4765  ;;  %v3308_v34 = vadd.f32 1.0, %v4764_v33 }
 0x6be   : > { %v3286_v50 = vmul.f32 1.442695, %v3227_v52  ;;  %v4768_v55 = vpop.eup %4767 }
 0x6bf   : > { %2964 = vxpose.xlu1.c.b16.end [2/2] (short) (narrow) %v7417_v10, 32  ;;  %v4770_v13 = vpop.eup %4769  ;;  %v3317_v10 = vadd.f32 1.0, %v4766_v29 }
 0x6c0   : > { %3409 = vperm.xlu0 %4325, %v4734_v25   ;;  %v3272_v25 = vmul.f32 1.442695, %v3220_v6  ;;  %v4772_v17 = vpop.eup %4771 }
 0x6c1   : > { %v4774_v15 = vpop.eup %4773  ;;  %v3310_v56 = vadd.f32 1.0, %v4772_v17 }
 0x6c2   : > { %v4776_v3 = vpop.eup %4775 }
 0x6c3   : > { %3121 = vxpose.xlu1.c.b16.start [1/2] (short) (narrow) %v7418_v32, 32  ;;  %v4778_v47 = vpop.eup %4777  ;;  %v3319_v32 = vadd.f32 1.0, %v4776_v3 }
 0x6c4   : > { %3419 = vperm.xlu0 %4325, %v4740_v41   ;;  %v4780_v45 = vpop.eup %4779  ;;  %v3294_v41 = vmul.f32 1.442695, %v3231_v57 }
 0x6c5   : > { %v4782_v38 = vpop.eup %4781  ;;  %v3312_v14 = vadd.f32 1.0, %v4780_v45 }
 0x6c6   : > { %v4784_v9 = vpop.eup %4783 }
 0x6c7   : > { %3122 = vxpose.xlu1.c.b16.end [2/2] (short) (narrow) %v7419_v18, 32  ;;  %v4786_v40 = vpop.eup %4785 }
 0x6c8   : > { %3429 = vperm.xlu0 %4325, %v4746_v59   ;;  %v4788_v26 = vpop.eup %4787  ;;  %v3321_v43 = vadd.f32 1.0, %v4786_v40 }
 0x6c9   : > { %v4790_v39 = vpop.eup %4789  ;;  %v3314_v1 = vadd.f32 1.0, %v4788_v26 }
 0x6ca   : > { %v2589_v44 = vpop.permute.xlu1 %2588 }
 0x6cb   : > { %4326 = vset.pattern.permute.xlu1 %v4918_v28  ;;  %v3315_v28 = vadd.f32 1.0, %v4758_v16 }
 0x6cc   : > { %3399 = vperm.xlu1 %4326, %v4752_v60   ;;  %3439 = vperm.xlu0 %4325, %v4754_v5  }
 0x6cd   : > { %4791 = vrcp.f32 %v3315_v28 }
 0x6ce   : > { %4793 = vpow2.f32 %v3286_v50 }
 0x6cf   : > { %4795 = vpow2.f32 %v3272_v25 }
 0x6d0   : > { %3404 = vperm.xlu1 %4326, %v4760_v11   ;;  %3449 = vperm.xlu0 %4325, %v4762_v27   ;;  %4797 = vrcp.f32 %v3308_v34  ;;  %v3292_v11 = vmul.f32 1.442695, %v3230_v20  ;;  %v2892_v34 = vpop.trf.xlu0 }
 0x6d1   : > { %4799 = vrcp.f32 %v3317_v10 }
 0x6d2   : > { %4801 = vpow2.f32 %v3290_v31 }
 0x6d3   : > { %4803 = vpow2.f32 %v3276_v49 }
 0x6d4   : > { %3414 = vperm.xlu1 %4326, %v4768_v55   ;;  %3459 = vperm.xlu0 %4325, %v4770_v13   ;;  %4805 = vrcp.f32 %v3310_v56  ;;  %v2893_v49 = vpop.trf.xlu0 }
 0x6d5   : > { %4807 = vpow2.f32 %v3294_v41 }
 0x6d6   : > { %4809 = vrcp.f32 %v3319_v32 }
 0x6d7   : > { %v4792_v59 = vpop.eup %4791  ;;  %4811 = vrcp.f32 %v3312_v14 }
 0x6d8   : > { %3424 = vperm.xlu1 %4326, %v4774_v15   ;;  %3469 = vperm.xlu0 %4325, %v4778_v47   ;;  %v4794_v18 = vpop.eup %4793  ;;  %4813 = vpow2.f32 %v3280_v53 }
 0x6d9   : > { %v4796_v21 = vpop.eup %4795  ;;  %v3323_v60 = vadd.f32 1.0, %v4794_v18  ;;  %4815 = vrcp.f32 %v3321_v43 }
 0x6da   : > { %v4798_v51 = vpop.eup %4797  ;;  %4817 = vrcp.f32 %v3314_v1  ;;  %v3316_v5 = vadd.f32 1.0, %v4796_v21 }
 0x6db   : > { %v4800_v19 = vpop.eup %4799  ;;  %4819 = vpow2.f32 %v3284_v42 }
 0x6dc   : > { %3434 = vperm.xlu1 %4326, %v4782_v38   ;;  %3479 = vperm.xlu0 %4325, %v4784_v9   ;;  %v4802_v7 = vpop.eup %4801  ;;  %4821 = vrcp.f32 %v3323_v60 }
 0x6dd   : > { %v4804_v62 = vpop.eup %4803  ;;  %v3325_v52 = vadd.f32 1.0, %v4802_v7  ;;  %4823 = vrcp.f32 %v3316_v5 }
 0x6de   : > { %v4806_v4 = vpop.eup %4805  ;;  %v3318_v61 = vadd.f32 1.0, %v4804_v62  ;;  %4825 = vpow2.f32 %v3288_v35  ;;  %v2903_v22 = vpop.permute.xlu0 %2902 }
 0x6df   : > { %v4808_v16 = vpop.eup %4807  ;;  %4827 = vrcp.f32 %v3325_v52 }
 0x6e0   : > { %3444 = vperm.xlu1 %4326, %v4790_v39   ;;  %3489 = vperm.xlu0 %4325, %v4792_v59   ;;  %v4810_v12 = vpop.eup %4809  ;;  %v3327_v27 = vadd.f32 1.0, %v4808_v16  ;;  %4829 = vpow2.f32 %v3292_v11 }
 0x6e1   : > { %v4812_v24 = vpop.eup %4811  ;;  %4831 = vrcp.f32 %v3318_v61 }
 0x6e2   : > { %v4814_v28 = vpop.eup %4813  ;;  %4833 = vrcp.f32 %v3327_v27 }
 0x6e3   : > { %v4816_v50 = vpop.eup %4815  ;;  %v3320_v37 = vadd.f32 1.0, %v4814_v28 }
 0x6e4   : > { %3454 = vperm.xlu1 %4326, %v4798_v51   ;;  %3499 = vperm.xlu0 %4325, %v4800_v19   ;;  %v4818_v55 = vpop.eup %4817 }
 0x6e5   : > { %v4820_v13 = vpop.eup %4819  ;;  %4835 = vrcp.f32 %v3320_v37 }
 0x6e6   : > { %v6676_v63 = vpop.permute.xlu1 %2904  ;;  %v4822_v17 = vpop.eup %4821  ;;  %v3322_v57 = vadd.f32 1.0, %v4820_v13 }
 0x6e7   : > { %v4824_v10 = vpop.eup %4823 }
 0x6e8   : > { %3464 = vperm.xlu1 %4326, %v4806_v4   ;;  %3509 = vperm.xlu0 %4325, %v4810_v12   ;;  %v4826_v31 = vpop.eup %4825  ;;  %4837 = vrcp.f32 %v3322_v57 }
 0x6e9   : > { %v6678_v6 = vpop.f32.mrb[32].mxu0  ;;  %v4828_v3 = vpop.eup %4827  ;;  %v3324_v56 = vadd.f32 1.0, %v4826_v31 }
 0x6ea   : > { %v6680_v46 = vpop.f32.mrb[33].mxu0  ;;  %v2587_v33 = vpop.permute.xlu1 %2586 }
 0x6eb   : > { %v6682_v29 = vpop.f32.mrb[34].mxu0  ;;  %4215 = vmatprep.subr.bf16.mxu0 %v2587_v33  ;;  %v4830_v47 = vpop.eup %4829  ;;  %4839 = vrcp.f32 %v3324_v56 }
 0x6ec   : > { %v6684_v30 = vpop.f32.mrb[35].mxu0  ;;  %4216 = vmatpush3.bf16.msra.mxu0 %v2587_v33  ;;  %3474 = vperm.xlu1 %4326, %v4812_v24   ;;  %v4832_v41 = vpop.eup %4831 }
 0x6ed   : > { %3519 = vperm.xlu0 %4325, %v4816_v50   ;;  %4217 = vmatprep.subr.bf16.mxu0 %v2589_v44  ;;  %v4834_v38 = vpop.eup %4833  ;;  %v2984_v23 = vpop.permute.xlu0 %2983 }
 0x6ee   : > { %v2668_v25 = vpop.permute.xlu1 %2667 }
 0x6f0   : > { %4218 = vmatpush3.bf16.msra.mxu0 %v2589_v44  ;;  %3484 = vperm.xlu1 %4326, %v4818_v55  }
 0x6f1   : > { %3529 = vperm.xlu0 %4325, %v4822_v17  }
 0x6f2   : > { %v2666_v15 = vpop.permute.xlu1 %2665 }
 0x6f3   : > { %4220 = vmatmul.mubr.msk.bf16.vlgmr.msra.gmra.mrb[48].mxu0 %vm406_vm0, %v6539_v8  ;;  %4223 = vmatprep.subr.bf16.mxu1 %v2666_v15  ;;  %v3326_v8 = vadd.f32 1.0, %v4830_v47 }
 0x6f4   : > { %4224 = vmatpush3.bf16.msra.mxu1 %v2666_v15  ;;  %4235 = vmatprep.mubr.msk.bf16.mxu0 %vm406_vm0, %v6547_v48  ;;  %v4836_v48 = vpop.eup %4835 }
 0x6f5   : > { %3494 = vperm.xlu1 %4326, %v4824_v10   ;;  %3539 = vperm.xlu0 %4325, %v4828_v3   ;;  %4841 = vrcp.f32 %v3326_v8  ;;  %v4838_v53 = vpop.eup %4837 }
 0x6f6   : > { %4225 = vmatprep.subr.bf16.mxu1 %v2668_v25  ;;  %v2982_v45 = vpop.permute.xlu1 %2981  ;;  %v4840_v43 = vpop.eup %4839 }
 0x6f8   : > { %4226 = vmatpush3.bf16.msra.mxu1 %v2668_v25 }
 0x6f9   : > { %3504 = vperm.xlu1 %4326, %v4832_v41   ;;  %3549 = vperm.xlu0 %4325, %v4834_v38  }
 0x6fa   : > { %v2747_v32 = vpop.permute.xlu1 %2746  ;;  %v3063_v59 = vpop.permute.xlu0 %3062 }
 0x6fb   : > { %v6690_v9 = vpop.f32.mrb[36].mxu0  ;;  %4228 = vmatmul.mubr.msk.bf16.vlgmr.msra.gmra.mrb[48].mxu1 %vm406_vm0, %v6541_v36 }
 0x6fc   : > { %v6694_v40 = vpop.f32.mrb[37].mxu0  ;;  %4243 = vmatprep.mubr.msk.bf16.mxu1 %vm406_vm0, %v6549_v2 }
 0x6fd   : > { %3514 = vperm.xlu1 %4326, %v4836_v48   ;;  %v6698_v26 = vpop.f32.mrb[38].mxu0 }
 0x6fe   : > { %v6700_v14 = vpop.f32.mrb[39].mxu0  ;;  %v2745_v39 = vpop.permute.xlu1 %2744 }
 0x6ff   : > { %4231 = vmatprep.subr.bf16.mxu0 %v2745_v39  ;;  %v4842_v18 = vpop.eup %4841  ;;  %v6707_v1 = vpop.permute.xlu0 %3141 }
 0x700   : > { %4232 = vmatpush3.bf16.msra.mxu0 %v2745_v39 }
 0x701   : > { %3524 = vperm.xlu1 %4326, %v4838_v53   ;;  %4233 = vmatprep.subr.bf16.mxu0 %v2747_v32 }
 0x702   : > { %v3061_v36 = vpop.permute.xlu1 %3060 }
 0x704   : > { %4234 = vmatpush3.bf16.msra.mxu0 %v2747_v32 }
 0x705   : > { %3534 = vperm.xlu1 %4326, %v4840_v43   ;;  %4247 = vmatprep.subr.bf16.mxu0 %v2903_v22 }
 0x706   : > { %v2826_v2 = vpop.permute.xlu1 %2825 }
 0x707   : > { %4236 = vmatmul.mubr.msk.bf16.vlgmr.msra.gmra.mrb[52].mxu0 %vm406_vm0, %v6559_v58  ;;  %v3140_v58 = vpop.permute.xlu0 %3139 }
 0x708   : > { %v6704_v21 = vpop.f32.mrb[40].mxu0  ;;  %4248 = vmatpush3.bf16.msra.mxu0 %v2903_v22  ;;  %4251 = vmatprep.mubr.msk.bf16.mxu0 %vm406_vm0, %v2892_v34 }
 0x709   : > { %3544 = vperm.xlu1 %4326, %v4842_v18   ;;  %v6709_v51 = vpop.f32.mrb[41].mxu0  ;;  %4249 = vmatprep.subr.bf16.mxu0 %v6676_v63 }
 0x70a   : > { %v6712_v42 = vpop.f32.mrb[42].mxu0  ;;  %v2824_v0 = vpop.permute.xlu1 %2823 }
 0x70b   : > { %v6714_v19 = vpop.f32.mrb[43].mxu0  ;;  %4239 = vmatprep.subr.bf16.mxu1 %v2824_v0 }
 0x70c   : > { %4240 = vmatpush3.bf16.msra.mxu1 %v2824_v0  ;;  %4250 = vmatpush3.bf16.msra.mxu0 %v6676_v63 }
 0x70d   : > { %4241 = vmatprep.subr.bf16.mxu1 %v2826_v2  ;;  %4263 = vmatprep.subr.bf16.mxu0 %v3061_v36 }
 0x70f   : > { %4252 = vmatmul.mubr.msk.bf16.vlgmr.msra.gmra.mrb[56].mxu0 %vm406_vm0, %v2893_v49 }
 0x710   : > { %4242 = vmatpush3.bf16.msra.mxu1 %v2826_v2  ;;  %4264 = vmatpush3.bf16.msra.mxu0 %v3061_v36 }
 0x711   : > { %4255 = vmatprep.subr.bf16.mxu1 %v2982_v45  ;;  %4265 = vmatprep.subr.bf16.mxu0 %v3063_v59 }
 0x713   : > { %v4201_v60 = vpop.f32.mrb[32].mxu1  ;;  %4244 = vmatmul.mubr.msk.bf16.vlgmr.msra.gmra.mrb[52].mxu1 %vm406_vm0, %v6561_v54 }
 0x714   : > { %v2329_v44 = vpop.f32.mrb[33].mxu1  ;;  %3636 = vrot.lane.b32.xlu1 %v4201_v60, %s4916_s30  ;;  %4256 = vmatpush3.bf16.msra.mxu1 %v2982_v45  ;;  %v3050_v7 = vpop.trf.xlu0 }
 0x715   : > { %4266 = vmatpush3.bf16.msra.mxu0 %v3063_v59  ;;  %v4202_v62 = vpop.f32.mrb[34].mxu1  ;;  %4257 = vmatprep.subr.bf16.mxu1 %v2984_v23 }
 0x716   : > { %v2332_v5 = vpop.f32.mrb[35].mxu1  ;;  %3638 = vrot.lane.b32.xlu0 %v4202_v62, %s4916_s30  ;;  %4267 = vmatprep.mubr.msk.bf16.mxu0 %vm406_vm0, %v3050_v7 }
 0x718   : > { %v6723_v20 = vpop.f32.mrb[44].mxu0  ;;  %3632 = vrot.lane.b32.xlu1 %v2329_v44, %s4916_s30  ;;  %4258 = vmatpush3.bf16.msra.mxu1 %v2984_v23  ;;  %v3051_v4 = vpop.trf.xlu0 }
 0x719   : > { %v6726_v54 = vpop.f32.mrb[45].mxu0  ;;  %4268 = vmatmul.mubr.msk.bf16.vlgmr.msra.gmra.mrb[60].mxu0 %vm406_vm0, %v3051_v4  ;;  %4271 = vmatprep.subr.bf16.mxu1 %v3140_v58 }
 0x71a   : > { %v6729_v35 = vpop.f32.mrb[46].mxu0  ;;  %3634 = vrot.lane.b32.xlu0 %v2332_v5, %s4916_s30 }
 0x71b   : > { %v6732_v16 = vpop.f32.mrb[47].mxu0  ;;  %v4205_v52 = vpop.f32.mrb[36].mxu1 }
 0x71c   : > { %v2345_v63 = vpop.f32.mrb[37].mxu1  ;;  %3644 = vrot.lane.b32.xlu1 %v4205_v52, %s4916_s30 }
 0x71d   : > { %v4206_v12 = vpop.f32.mrb[38].mxu1 }
 0x71e   : > { %v2348_v11 = vpop.f32.mrb[39].mxu1  ;;  %3646 = vrot.lane.b32.xlu0 %v4206_v12, %s4916_s30 }
 0x720   : > { %3640 = vrot.lane.b32.xlu1 %v2345_v63, %s4916_s30 }
 0x721   : > { %v2971_v61 = vpop.trf.xlu1 }
 0x722   : > { %3642 = vrot.lane.b32.xlu0 %v2348_v11, %s4916_s30  ;;  %4259 = vmatprep.mubr.msk.bf16.mxu1 %vm406_vm0, %v2971_v61 }
 0x723   : > { %v4209_v24 = vpop.f32.mrb[40].mxu1 }
 0x724   : > { %v2361_v27 = vpop.f32.mrb[41].mxu1  ;;  %3652 = vrot.lane.b32.xlu1 %v4209_v24, %s4916_s30 }
 0x725   : > { %v4210_v33 = vpop.f32.mrb[42].mxu1  ;;  %v2972_v28 = vpop.trf.xlu1 }
 0x726   : > { %v2364_v50 = vpop.f32.mrb[43].mxu1  ;;  %3654 = vrot.lane.b32.xlu0 %v4210_v33, %s4916_s30  ;;  %4260 = vmatmul.mubr.msk.bf16.vlgmr.msra.gmra.mrb[56].mxu1 %vm406_vm0, %v2972_v28 }
 0x727   : > { %4272 = vmatpush3.bf16.msra.mxu1 %v3140_v58 }
 0x728   : > { %4273 = vmatprep.subr.bf16.mxu1 %v6707_v1  ;;  %3648 = vrot.lane.b32.xlu1 %v2361_v27, %s4916_s30 }
 0x729   : > { %v3129_v55 = vpop.trf.xlu1 }
 0x72a   : > { %3650 = vrot.lane.b32.xlu0 %v2364_v50, %s4916_s30  ;;  %4275 = vmatprep.mubr.msk.bf16.mxu1 %vm406_vm0, %v3129_v55 }
 0x72b   : > { %4274 = vmatpush3.bf16.msra.mxu1 %v6707_v1  ;;  %v4213_v37 = vpop.f32.mrb[44].mxu1 }
 0x72c   : > { %v2377_v25 = vpop.f32.mrb[45].mxu1  ;;  %3660 = vrot.lane.b32.xlu1 %v4213_v37, %s4916_s30 }
 0x72d   : > { %v4214_v13 = vpop.f32.mrb[46].mxu1  ;;  %v3130_v34 = vpop.trf.xlu1 }
 0x72e   : > { %v2380_v17 = vpop.f32.mrb[47].mxu1  ;;  %3662 = vrot.lane.b32.xlu0 %v4214_v13, %s4916_s30  ;;  %4276 = vmatmul.mubr.msk.bf16.vlgmr.msra.gmra.mrb[60].mxu1 %vm406_vm0, %v3130_v34 }
 0x730   : > { %3656 = vrot.lane.b32.xlu1 %v2377_v25, %s4916_s30 }
 0x732   : > { %3658 = vrot.lane.b32.xlu0 %v2380_v17, %s4916_s30 }
 0x73b   : > { %v6752_v10 = vpop.permute.xlu0 %3394 }
 0x73f   : > { %v6754_v57 = vpop.permute.xlu0 %3409 }
 0x743   : > { %v6756_v15 = vpop.permute.xlu0 %3419 }
 0x747   : > { %v6758_v31 = vpop.permute.xlu0 %3429 }
 0x74b   : > { %v6760_v3 = vpop.permute.xlu1 %3399  ;;  %v6762_v49 = vpop.permute.xlu0 %3439 }
 0x74f   : > { %v6764_v47 = vpop.permute.xlu1 %3404  ;;  %v6766_v56 = vpop.permute.xlu0 %3449 }
 0x753   : > { %v6768_v45 = vpop.permute.xlu1 %3414  ;;  %v6770_v41 = vpop.permute.xlu0 %3459 }
 0x757   : > { %v6772_v38 = vpop.permute.xlu1 %3424  ;;  %v6774_v8 = vpop.permute.xlu0 %3469 }
 0x75b   : > { %v6776_v32 = vpop.permute.xlu1 %3434  ;;  %v6778_v22 = vpop.permute.xlu0 %3479 }
 0x75f   : > { %v6780_v48 = vpop.permute.xlu1 %3444  ;;  %v6782_v39 = vpop.permute.xlu0 %3489 }
 0x763   : > { %v6784_v23 = vpop.permute.xlu1 %3454  ;;  %v6786_v53 = vpop.permute.xlu0 %3499 }
 0x767   : > { %v6788_v36 = vpop.permute.xlu1 %3464  ;;  %v6792_v43 = vpop.permute.xlu0 %3509 }
 0x76b   : > { %v6790_v59 = vpop.permute.xlu1 %3474 }
 0x76c   : > { %v6796_v18 = vpop.permute.xlu0 %3519 }
 0x76f   : > { %v6794_v2 = vpop.permute.xlu1 %3484 }
 0x770   : > { %v6800_v0 = vpop.permute.xlu0 %3529 }
 0x774   : > { %v6798_v1 = vpop.permute.xlu1 %3494  ;;  %v6806_v44 = vpop.permute.xlu0 %3539 }
 0x778   : > { %v6802_v58 = vpop.permute.xlu1 %3504  ;;  %v6810_v62 = vpop.permute.xlu0 %3549 }
 0x77c   : > { %v6804_v60 = vpop.permute.xlu1 %3514 }
 0x780   : > { %v6808_v7 = vpop.permute.xlu1 %3524 }
 0x784   : > { %v6812_v5 = vpop.permute.xlu1 %3534 }
 0x788   : > { %v6815_v4 = vpop.permute.xlu1 %3544  ;;  %v3639_v52 = vpop.permute.xlu0 %3638 }
 0x789   : > { %v3683_v63 = vsel %vm406_vm0, %v6682_v29, %v3639_v52 }
 0x78a   : > { %3700 = vst.msk [vmem:[%s6819_s6 + $0x18] sm:$0xff] %vm3696_vm2, %v3683_v63 }
 0x78c   : > { %v3637_v12 = vpop.permute.xlu1 %3636  ;;  %v3635_v11 = vpop.permute.xlu0 %3634 }
 0x78d   : > { %v3682_v61 = vsel %vm406_vm0, %v6678_v6, %v3637_v12  ;;  %v3681_v24 = vsel %vm406_vm0, %v6684_v30, %v3635_v11 }
 0x78e   : > { %3699 = vst.msk [vmem:[%s6819_s6 + $0x10] sm:$0xff] %vm3696_vm2, %v3682_v61  ;;  %3698 = vst.msk [vmem:[%s6819_s6 + $0x8] sm:$0xff] %vm3696_vm2, %v3681_v24 }
 0x790   : > { %v3633_v29 = vpop.permute.xlu1 %3632  ;;  %v3647_v27 = vpop.permute.xlu0 %3646 }
 0x791   : > { %v3680_v33 = vsel %vm406_vm0, %v6680_v46, %v3633_v29  ;;  %v3687_v28 = vsel %vm406_vm0, %v6698_v26, %v3647_v27 }
 0x792   : > { %3697 = vst.msk [vmem:[%s6819_s6] sm:$0xff] %vm3696_vm2, %v3680_v33  ;;  %3704 = vst.msk [vmem:[%s6819_s6 + $0x38] sm:$0xff] %vm3696_vm2, %v3687_v28 }
 0x794   : > { %v3645_v6 = vpop.permute.xlu1 %3644  ;;  %v3643_v30 = vpop.permute.xlu0 %3642 }
 0x795   : > { %v3686_v50 = vsel %vm406_vm0, %v6690_v9, %v3645_v6  ;;  %v3685_v55 = vsel %vm406_vm0, %v6700_v14, %v3643_v30 }
 0x796   : > { %3703 = vst.msk [vmem:[%s6819_s6 + $0x30] sm:$0xff] %vm3696_vm2, %v3686_v50  ;;  %3702 = vst.msk [vmem:[%s6819_s6 + $0x28] sm:$0xff] %vm3696_vm2, %v3685_v55 }
 0x798   : > { %v3641_v46 = vpop.permute.xlu1 %3640  ;;  %v3655_v26 = vpop.permute.xlu0 %3654 }
 0x799   : > { %v3684_v37 = vsel %vm406_vm0, %v6694_v40, %v3641_v46  ;;  %v3691_v25 = vsel %vm406_vm0, %v6712_v42, %v3655_v26 }
 0x79a   : > { %3701 = vst.msk [vmem:[%s6819_s6 + $0x20] sm:$0xff] %vm3696_vm2, %v3684_v37  ;;  %3708 = vst.msk [vmem:[%s6819_s6 + $0x58] sm:$0xff] %vm3696_vm2, %v3691_v25  ;;  %v6911_v37 = vld [vmem:[%s7140_s2 + $0x30] sm:$0xff] }
 0x79c   : > { %v3653_v9 = vpop.permute.xlu1 %3652  ;;  %v3651_v14 = vpop.permute.xlu0 %3650 }
 0x79d   : > { %v3690_v13 = vsel %vm406_vm0, %v6704_v21, %v3653_v9  ;;  %v3689_v34 = vsel %vm406_vm0, %v6714_v19, %v3651_v14 }
 0x79e   : > { %3707 = vst.msk [vmem:[%s6819_s6 + $0x50] sm:$0xff] %vm3696_vm2, %v3690_v13  ;;  %3706 = vst.msk [vmem:[%s6819_s6 + $0x48] sm:$0xff] %vm3696_vm2, %v3689_v34 }
 0x7a0   : > { %v3649_v40 = vpop.permute.xlu1 %3648  ;;  %v3663_v42 = vpop.permute.xlu0 %3662 }
 0x7a1   : > { %v3688_v17 = vsel %vm406_vm0, %v6709_v51, %v3649_v40  ;;  %v3695_v52 = vsel %vm406_vm0, %v6729_v35, %v3663_v42 }
 0x7a2   : > { %3705 = vst.msk [vmem:[%s6819_s6 + $0x40] sm:$0xff] %vm3696_vm2, %v3688_v17  ;;  %3712 = vst.msk [vmem:[%s6819_s6 + $0x78] sm:$0xff] %vm3696_vm2, %v3695_v52 }
 0x7a4   : > { %v3661_v21 = vpop.permute.xlu1 %3660  ;;  %v3659_v63 = vpop.permute.xlu0 %3658 }
 0x7a5   : > { %v3694_v19 = vsel %vm406_vm0, %v6723_v20, %v3661_v21  ;;  %v3693_v12 = vsel %vm406_vm0, %v6732_v16, %v3659_v63  ;;  %v6939_v63 = vld [vmem:[%s7140_s2 + $0x28] sm:$0xff] }
 0x7a6   : > { %3711 = vst.msk [vmem:[%s6819_s6 + $0x70] sm:$0xff] %vm3696_vm2, %v3694_v19  ;;  %3710 = vst.msk [vmem:[%s6819_s6 + $0x68] sm:$0xff] %vm3696_vm2, %v3693_v12 }
 0x7a8   : > { %v3657_v51 = vpop.permute.xlu1 %3656 }
 0x7a9   : > { %v3692_v35 = vsel %vm406_vm0, %v6726_v54, %v3657_v51 }
 0x7aa   : > { %3709 = vst.msk [vmem:[%s6819_s6 + $0x60] sm:$0xff] %vm3696_vm2, %v3692_v35  ;;  %s4919_s6 = smov [#allocation3]  }
 0x7ab   : > { %s4855_s9 = sshll.u32 %s4919_s6, 4  ;;  %s4856_s9 = int_to_ptr.vmem [resolvable:$false] %s4855_s9 }
 0x7ac   : > { %s4857_s10 = scalar_lea.vmem %s4856_s9, 4096  ;;  %p4858_p2 = scmp.lt.s32.totalorder %s6974_s28, %s4856_s9 }
 0x7ad   : > { %p4859_p3 = scmp.lt.s32.totalorder %s4857_s10, %s4851_s7 }
 0x7af   : > { %p4860_p4 = por %p4859_p3, %p4858_p2 }
 0x7b1   : > { %p4861_p5 = pnand %p4860_p4, %p4854_p1 }
 0x7c6   : > { %v6883_v11 = vpop.f32.mrb[48].mxu0 }
 0x7c7   : > { %v6885_v61 = vpop.f32.mrb[49].mxu0 }
 0x7c8   : > { %v6887_v24 = vpop.f32.mrb[50].mxu0 }
 0x7c9   : > { %v6889_v20 = vpop.f32.mrb[51].mxu0 }
 0x7ce   : > { %v6891_v29 = vpop.f32.mrb[48].mxu1 }
 0x7cf   : > { %v6893_v16 = vpop.f32.mrb[49].mxu1 }
 0x7d0   : > { %v6895_v27 = vpop.f32.mrb[50].mxu1 }
 0x7d1   : > { %v6897_v33 = vpop.f32.mrb[51].mxu1 }
 0x7da   : > { %v6899_v28 = vpop.f32.mrb[52].mxu0 }
 0x7db   : > { %v6901_v54 = vpop.f32.mrb[53].mxu0 }
 0x7dc   : > { %v6903_v6 = vpop.f32.mrb[54].mxu0 }
 0x7dd   : > { %v6905_v30 = vpop.f32.mrb[55].mxu0 }
 0x7e2   : > { %v4253_v50 = vpop.f32.mrb[56].mxu0 }
 0x7e3   : > { %v3570_v55 = vmul.f32 %v4253_v50, %v6794_v2  ;;  %v2948_v46 = vpop.f32.mrb[57].mxu0  ;;  %v6921_v2 = vld [vmem:[%s7140_s2 + $0x38] sm:$0xff] }
 0x7e4   : > { %v4254_v26 = vpop.f32.mrb[58].mxu0  ;;  %v3568_v9 = vmul.f32 %v6790_v59, %v2948_v46 }
 0x7e5   : > { %v3602_v25 = vadd.f32 %v6911_v37, %v3570_v55  ;;  %v3571_v14 = vmul.f32 %v4254_v26, %v6782_v39  ;;  %v2951_v13 = vpop.f32.mrb[59].mxu0  ;;  %v4845_v39 = vld [vmem:[%s7140_s2 + $0x20] sm:$0xff] }
 0x7e6   : > { %v6916_v34 = vpop.f32.mrb[52].mxu1  ;;  %v3569_v42 = vmul.f32 %v6778_v22, %v2951_v13  ;;  %v3600_v59 = vadd.f32 %v4845_v39, %v3568_v9 }
 0x7e7   : > { %v3603_v40 = vadd.f32 %v6921_v2, %v3571_v14  ;;  %v6925_v17 = vpop.f32.mrb[53].mxu1  ;;  %3733 = vrot.lane.b32.xlu1 %v3602_v25, %s4916_s30 }
 0x7e8   : > { %v6928_v52 = vpop.f32.mrb[54].mxu1  ;;  %v3601_v22 = vadd.f32 %v6939_v63, %v3569_v42 }
 0x7e9   : > { %v6933_v21 = vpop.f32.mrb[55].mxu1  ;;  %3735 = vrot.lane.b32.xlu0 %v3603_v40, %s4916_s30 }
 0x7eb   : > { %3729 = vrot.lane.b32.xlu1 %v3600_v59, %s4916_s30 }
 0x7ec   : > { %v4269_v19 = vpop.f32.mrb[60].mxu0 }
 0x7ed   : > { %v3106_v12 = vpop.f32.mrb[61].mxu0  ;;  %3731 = vrot.lane.b32.xlu0 %v3601_v22, %s4916_s30  ;;  %v3578_v25 = vmul.f32 %v4269_v19, %v6808_v7 }
 0x7ee   : > { %v4270_v51 = vpop.f32.mrb[62].mxu0 }
 0x7ef   : > { %v3109_v35 = vpop.f32.mrb[63].mxu0  ;;  %v3579_v40 = vmul.f32 %v4270_v51, %v6800_v0  ;;  %v3610_v59 = vadd.f32 %v6911_v37, %v3578_v25  ;;  %v3576_v51 = vmul.f32 %v6804_v60, %v3106_v12 }
 0x7f1   : > { %v3611_v7 = vadd.f32 %v6921_v2, %v3579_v40 }
 0x7f9   : > { %v4261_v50 = vpop.f32.mrb[56].mxu1 }
 0x7fa   : > { %v3574_v55 = vmul.f32 %v4261_v50, %v6802_v58  ;;  %v3027_v46 = vpop.f32.mrb[57].mxu1 }
 0x7fb   : > { %v4262_v26 = vpop.f32.mrb[58].mxu1  ;;  %v3572_v22 = vmul.f32 %v6798_v1, %v3027_v46  ;;  %v3577_v1 = vmul.f32 %v6796_v18, %v3109_v35 }
 0x7fc   : > { %v3606_v9 = vadd.f32 %v6911_v37, %v3574_v55  ;;  %v3575_v14 = vmul.f32 %v4262_v26, %v6792_v43  ;;  %v3030_v13 = vpop.f32.mrb[59].mxu1  ;;  %v3608_v26 = vadd.f32 %v4845_v39, %v3576_v51 }
 0x7fd   : > { %v3573_v19 = vmul.f32 %v6786_v53, %v3030_v13  ;;  %v3604_v50 = vadd.f32 %v4845_v39, %v3572_v22  ;;  %v3609_v18 = vadd.f32 %v6939_v63, %v3577_v1 }
 0x7fe   : > { %v3607_v42 = vadd.f32 %v6921_v2, %v3575_v14  ;;  %3741 = vrot.lane.b32.xlu1 %v3606_v9, %s4916_s30 }
 0x7ff   : > { %v3605_v46 = vadd.f32 %v6939_v63, %v3573_v19 }
 0x800   : > { %3743 = vrot.lane.b32.xlu0 %v3607_v42, %s4916_s30 }
 0x801   : > { %v4277_v58 = vpop.f32.mrb[60].mxu1 }
 0x802   : > { %v3185_v43 = vpop.f32.mrb[61].mxu1  ;;  %3749 = vrot.lane.b32.xlu1 %v3610_v59, %s4916_s30 }
 0x803   : > { %v4278_v0 = vpop.f32.mrb[62].mxu1  ;;  %v3580_v53 = vmul.f32 %v6812_v5, %v3185_v43  ;;  %v3582_v5 = vmul.f32 %v4277_v58, %v6815_v4 }
 0x804   : > { %v3188_v55 = vpop.f32.mrb[63].mxu1  ;;  %3751 = vrot.lane.b32.xlu0 %v3611_v7, %s4916_s30 }
 0x805   : > { %v3581_v60 = vmul.f32 %v6806_v44, %v3188_v55  ;;  %v3612_v12 = vadd.f32 %v4845_v39, %v3580_v53 }
 0x806   : > { %3737 = vrot.lane.b32.xlu1 %v3604_v50, %s4916_s30 }
 0x808   : > { %3739 = vrot.lane.b32.xlu0 %v3605_v46, %s4916_s30 }
 0x80a   : > { %3745 = vrot.lane.b32.xlu1 %v3608_v26, %s4916_s30 }
 0x80c   : > { %3747 = vrot.lane.b32.xlu0 %v3609_v18, %s4916_s30 }
 0x80d   : > { %4864 = shalt.err (!%p4861_p5)
}
 0x80e   : > { %s4865_s11 = scalar_lea.hbm %s6968_s29, 2048  ;;  %s4869_s14 = scalar_lea.hbm %s7141_s3, 4096 }
 0x80f   : > { %p4866_p7 = scmp.ne.s32.totalorder %s6968_s29, %s4865_s11  ;;  %p4870_p12 = scmp.lt.u32.totalorder %s6968_s29, %s7141_s3 }
 0x810   : > { %p4871_p13 = scmp.lt.u32.totalorder %s4869_s14, %s4865_s11  ;;  %p4873_p1 = scmp.lt.u32.totalorder %s4865_s11, %s6968_s29 }
 0x811   : > { %p4867_p10 = pnand %p4866_p7, %p4986_p6 }
 0x812   : > { %p4872_p0 = por %p4871_p13, %p4870_p12 }
 0x813   : > { %p4868_p11 = pneg %p4867_p10 }
 0x814   : > { %p4874_p2 = por %p4873_p1, %p4872_p0 }
 0x816   : > { %p4875_p3 = pnand %p4874_p2, %p4868_p11 }
 0x818   : > { %4878 = shalt.err (!%p4875_p3)
}
 0x819   : > { %s4920_s23 = smov 128   ;;  %s4921_s27 = smov 8   ;;  %v3583_v44 = vmul.f32 %v4278_v0, %v6810_v62  ;;  %v3613_v4 = vadd.f32 %v6939_v63, %v3581_v60  ;;  %3753 = vrot.lane.b32.xlu1 %v3612_v12, %s4916_s30  ;;  %v3614_v39 = vadd.f32 %v6911_v37, %v3582_v5  ;;  %v3554_v62 = vmul.f32 %v6883_v11, %v6764_v47  ;;  %v7018_v37 = vld [vmem:[%s7140_s2 + $0x10] sm:$0xff]  ;;  %v4849_v9 = vld [vmem:[%s7140_s2] sm:$0xff] }
 0x81a   : > { %4279 = dma.vmem_to_hbm [thread:$0]  (%p4986_p6), %s6974_s28, 2048, %s6968_s29, %s3810_s5, %s4920_s23, %s4920_s23, %s4921_s27   ;;  %v3555_v63 = vmul.f32 %v6887_v24, %v6754_v57  ;;  %v3552_v25 = vmul.f32 %v6752_v10, %v6885_v61  ;;  %v3553_v10 = vmul.f32 %v6760_v3, %v6889_v20  ;;  %v3558_v58 = vmul.f32 %v6891_v29, %v6772_v38 }
 0x81b   : > { %3755 = vrot.lane.b32.xlu0 %v3613_v4, %s4916_s30  ;;  %v3615_v35 = vadd.f32 %v6921_v2, %v3583_v44  ;;  %s3936_s7 = sshll.u32 %s4968_s19, 2  ;;  %v3586_v2 = vadd.f32 %v7018_v37, %v3554_v62  ;;  %v7031_v57 = vld [vmem:[%s7140_s2 + $0x18] sm:$0xff]  ;;  %v4850_v3 = vld [vmem:[%s7140_s2 + $0x8] sm:$0xff]  ;;  %v3559_v7 = vmul.f32 %v6895_v27, %v6758_v31  ;;  %v3562_v43 = vmul.f32 %v6899_v28, %v6780_v48 }
 0x81c   : > { %p367_p4 = scmp.lt.s32.totalorder %s3936_s7, 7  ;;  %v3587_v11 = vadd.f32 %v7031_v57, %v3555_v63  ;;  %v3584_v14 = vadd.f32 %v4849_v9, %v3552_v25  ;;  %v3585_v20 = vadd.f32 %v4850_v3, %v3553_v10  ;;  %v3590_v19 = vadd.f32 %v7018_v37, %v3558_v58 }
 0x81d   : > { %3757 = vrot.lane.b32.xlu1 %v3614_v39, %s4916_s30  ;;  %v3591_v51 = vadd.f32 %v7031_v57, %v3559_v7  ;;  %v3563_v50 = vmul.f32 %v6903_v6, %v6766_v56  ;;  %v3556_v31 = vmul.f32 %v6768_v45, %v6893_v16  ;;  %v3594_v29 = vadd.f32 %v7018_v37, %v3562_v43 }
 0x81e   : > { %s7425_s7 = smov (!%p367_p4, %s3936_s7), 7  ;;  %v3557_v56 = vmul.f32 %v6756_v15, %v6897_v33  ;;  %v3560_v16 = vmul.f32 %v6776_v32, %v6901_v54  ;;  %v3561_v15 = vmul.f32 %v6762_v49, %v6905_v30  ;;  %v3564_v32 = vmul.f32 %v6784_v23, %v6925_v17 }
 0x81f   : > { %3759 = vrot.lane.b32.xlu0 %v3615_v35, %s4916_s30  ;;  %s4013_s25 = sshll.u32 %s7425_s7, 5  ;;  %v3595_v28 = vadd.f32 %v7031_v57, %v3563_v50  ;;  %v3588_v45 = vadd.f32 %v4849_v9, %v3556_v31  ;;  %v3565_v49 = vmul.f32 %v6770_v41, %v6933_v21  ;;  %v3566_v4 = vmul.f32 %v6916_v34, %v6788_v36 }
 0x820   : > { %s7026_s28 = scalar_lea.vmem %s7142_s4, %s4013_s25  ;;  %v3589_v53 = vadd.f32 %v4850_v3, %v3557_v56  ;;  %v3592_v60 = vadd.f32 %v4849_v9, %v3560_v16  ;;  %v3593_v12 = vadd.f32 %v4850_v3, %v3561_v15  ;;  %v3596_v23 = vadd.f32 %v4849_v9, %v3564_v32 }
 0x821   : > { %v3567_v41 = vmul.f32 %v6928_v52, %v6774_v8  ;;  %v3597_v21 = vadd.f32 %v4850_v3, %v3565_v49  ;;  %v3598_v63 = vadd.f32 %v7018_v37, %v3566_v4 }
 0x859   : > { %v3734_v47 = vpop.permute.xlu1 %3733 }
 0x85a   : > { %v3779_v61 = vsel %vm406_vm0, %v3586_v2, %v3734_v47  ;;  %v3599_v2 = vadd.f32 %v7031_v57, %v3567_v41 }
 0x85b   : > { %3795 = vst.msk [vmem:[%s7026_s28 + $0x10] sm:$0xff] %vm3696_vm2, %v3779_v61  ;;  %v3736_v24 = vpop.permute.xlu0 %3735 }
 0x85c   : > { %v3780_v13 = vsel %vm406_vm0, %v3587_v11, %v3736_v24 }
 0x85d   : > { %3796 = vst.msk [vmem:[%s7026_s28 + $0x18] sm:$0xff] %vm3696_vm2, %v3780_v13  ;;  %v3730_v40 = vpop.permute.xlu1 %3729 }
 0x85e   : > { %v3777_v42 = vsel %vm406_vm0, %v3584_v14, %v3730_v40 }
 0x85f   : > { %3793 = vst.msk [vmem:[%s7026_s28] sm:$0xff] %vm3696_vm2, %v3777_v42  ;;  %v3732_v59 = vpop.permute.xlu0 %3731 }
 0x860   : > { %v3778_v22 = vsel %vm406_vm0, %v3585_v20, %v3732_v59 }
 0x861   : > { %3794 = vst.msk [vmem:[%s7026_s28 + $0x8] sm:$0xff] %vm3696_vm2, %v3778_v22 }
 0x870   : > { %v3742_v0 = vpop.permute.xlu1 %3741 }
 0x871   : > { %v3783_v55 = vsel %vm406_vm0, %v3590_v19, %v3742_v0 }
 0x872   : > { %3799 = vst.msk [vmem:[%s7026_s28 + $0x30] sm:$0xff] %vm3696_vm2, %v3783_v55  ;;  %v3744_v38 = vpop.permute.xlu0 %3743 }
 0x873   : > { %v3784_v27 = vsel %vm406_vm0, %v3591_v51, %v3744_v38 }
 0x874   : > { %3800 = vst.msk [vmem:[%s7026_s28 + $0x38] sm:$0xff] %vm3696_vm2, %v3784_v27  ;;  %v3750_v48 = vpop.permute.xlu1 %3749 }
 0x875   : > { %v3787_v6 = vsel %vm406_vm0, %v3594_v29, %v3750_v48 }
 0x876   : > { %3803 = vst.msk [vmem:[%s7026_s28 + $0x50] sm:$0xff] %vm3696_vm2, %v3787_v6  ;;  %v3752_v1 = vpop.permute.xlu0 %3751 }
 0x877   : > { %v3788_v46 = vsel %vm406_vm0, %v3595_v28, %v3752_v1 }
 0x878   : > { %3804 = vst.msk [vmem:[%s7026_s28 + $0x58] sm:$0xff] %vm3696_vm2, %v3788_v46  ;;  %v3738_v26 = vpop.permute.xlu1 %3737 }
 0x879   : > { %v3781_v33 = vsel %vm406_vm0, %v3588_v45, %v3738_v26 }
 0x87a   : > { %3797 = vst.msk [vmem:[%s7026_s28 + $0x20] sm:$0xff] %vm3696_vm2, %v3781_v33  ;;  %v3740_v18 = vpop.permute.xlu0 %3739 }
 0x87b   : > { %v3782_v54 = vsel %vm406_vm0, %v3589_v53, %v3740_v18 }
 0x87c   : > { %3798 = vst.msk [vmem:[%s7026_s28 + $0x28] sm:$0xff] %vm3696_vm2, %v3782_v54  ;;  %v3746_v5 = vpop.permute.xlu1 %3745 }
 0x87d   : > { %v3785_v30 = vsel %vm406_vm0, %v3592_v60, %v3746_v5 }
 0x87e   : > { %3801 = vst.msk [vmem:[%s7026_s28 + $0x40] sm:$0xff] %vm3696_vm2, %v3785_v30  ;;  %v3748_v44 = vpop.permute.xlu0 %3747 }
 0x87f   : > { %v3786_v17 = vsel %vm406_vm0, %v3593_v12, %v3748_v44 }
 0x880   : > { %3802 = vst.msk [vmem:[%s7026_s28 + $0x48] sm:$0xff] %vm3696_vm2, %v3786_v17 }
 0x88b   : > { %v3754_v39 = vpop.permute.xlu1 %3753 }
 0x88c   : > { %v3789_v35 = vsel %vm406_vm0, %v3596_v23, %v3754_v39 }
 0x88d   : > { %3805 = vst.msk [vmem:[%s7026_s28 + $0x60] sm:$0xff] %vm3696_vm2, %v3789_v35  ;;  %v3756_v62 = vpop.permute.xlu0 %3755 }
 0x88e   : > { %v3790_v36 = vsel %vm406_vm0, %v3597_v21, %v3756_v62 }
 0x88f   : > { %3806 = vst.msk [vmem:[%s7026_s28 + $0x68] sm:$0xff] %vm3696_vm2, %v3790_v36  ;;  %v3758_v34 = vpop.permute.xlu1 %3757 }
 0x890   : > { %v3791_v25 = vsel %vm406_vm0, %v3598_v63, %v3758_v34 }
 0x891   : > { %3807 = vst.msk [vmem:[%s7026_s28 + $0x70] sm:$0xff] %vm3696_vm2, %v3791_v25  ;;  %v3760_v8 = vpop.permute.xlu0 %3759 }
 0x892   : > { %v3792_v52 = vsel %vm406_vm0, %v3599_v2, %v3760_v8 }
 0x893   : > { %3808 = vst.msk [vmem:[%s7026_s28 + $0x78] sm:$0xff] %vm3696_vm2, %v3792_v52 }
 0x894 PF: > { %s3848_s13 = sand.u32 1, %s4901_s15   ;;  %p4282_p6 = pnand %p3929_p9, %p4990_p8 }
 0x895   : > { %s3849_s14 = scalar_lea.sflag [#allocation4], %s3848_s13 }
 0x896   : > { %4896 = dma.done.wait (!%p4282_p6), %s3849_s14, 2048  }
 0x897   : > { %4898 = vsyncadd (!%p4282_p6), %s3849_s14, 4294965248  ;;  %p15_p5 = scmp.ge.s32.totalorder %s4972_s21, 4   ;;  %s7420_s15 = smov %s4905_s16 }
 0x898   : > { %s7421_s16 = smov %s4909_s17  ;;  %s7422_s17 = smov %s4984_s24 }
 0x899   : > { %s7423_s18 = smov %s4972_s21  ;;  %17 = sbr.rel (!%p15_p5) target bundleno = 3 (0x3), region = 122 }
 0x8a0   :  { %3863 = vsyncpa [#allocation4], 1 }
 0x8a1   :  { %3865 = vsyncpa [#allocation4 + $0x1], 1 }

</bundles_post_ra>
